<compile_context>
chip_gen: v5e
topology: v5e:2x2
jax: 0.10.0
libtpu: 0.0.40
codegen_flags: <defaults>
</compile_context>

<pallas_src>
import jax
import jax.numpy as jnp
import numpy as np
from jax import lax
from jax.experimental import pallas as pl
from jax.experimental.pallas import tpu as pltpu

_EPS = 1e-5

# Tile caps.  Small for the toy test so the multi-tile / halo / masking paths
# are exercised; sweep upward (derive from the VMEM budget, 64 MiB on v7x) for
# production shapes.
_TM_MAX = 512     # target M-rows (low-res rows * W) per transpose-conv tile
_ROW_TILE = 8     # output rows per tile for the fused separable-conv kernel


def _largest_divisor_leq(n, cap):
    for d in range(min(n, cap), 0, -1):
        if n % d == 0:
            return d
    return 1


def _row_windows(a, tile, halo):
    """(N, R, C, Ch) -> (N * nT, tile + halo, C, Ch) overlapping row windows."""
    n, r, c, ch = a.shape
    n_t = (r - halo) // tile
    w = jnp.stack([a[:, i * tile:i * tile + tile + halo] for i in range(n_t)],
                  axis=1)
    return w.reshape(n * n_t, tile + halo, c, ch)


# --------------------------------------------------------------------------- #
# Kernel 1: transpose conv (4 subpixel phases) with fused in-kernel im2col
# --------------------------------------------------------------------------- #
def _transconv_rows(xw, w9, b4, *, th, w, cin, cout4):
    """xw: (G, th+2, w+2, cin) halo'd low-res row windows.
    w9: (9, cin, cout4) per-tap folded weights, cout4 = 4*Cout (phases).
    Returns (G, th*w, cout4)."""
    g = xw.shape[0]
    m = th * w

    def kernel(x_ref, w_ref, b_ref, o_ref):
        acc = jnp.zeros((m, cout4), jnp.float32)
        for kk in range(9):                      # unrolled 3x3 neighborhood
            dy, dx = divmod(kk, 3)
            win = x_ref[0, dy:dy + th, dx:dx + w, :].reshape(m, cin)
            acc = acc + jnp.dot(win, w_ref[kk],
                                preferred_element_type=jnp.float32)
        o_ref[...] = (acc + b_ref[...]).reshape(1, m, cout4)

    return pl.pallas_call(
        kernel,
        out_shape=jax.ShapeDtypeStruct((g, m, cout4), jnp.float32),
        grid=(g,),
        in_specs=[
            pl.BlockSpec((1, th + 2, w + 2, cin), lambda i: (i, 0, 0, 0)),
            pl.BlockSpec((9, cin, cout4), lambda i: (0, 0, 0)),   # resident
            pl.BlockSpec((1, cout4), lambda i: (0, 0)),
        ],
        out_specs=pl.BlockSpec((1, m, cout4), lambda i: (i, 0, 0)),
        compiler_params=pltpu.CompilerParams(dimension_semantics=("parallel",)),
    )(xw, w9, b4)


# --------------------------------------------------------------------------- #
# Kernel 2: fused concat + sepconv1 + bn1 + relu + sepconv2 + bn2 + relu
# --------------------------------------------------------------------------- #
def _fused_sepconv_block(tcw, yw, p, *, n_t, th, ow, oh, ct, cy, co):
    """tcw/yw: (G, th+4, ow+2, C) halo'd row windows (rows padded by 2, cols by
    1) of the transconv output / skip connection.  Returns (G, th, ow, co)."""
    g = tcw.shape[0]
    hh = th + 2  # rows of h1 computed per tile (incl. +-1 halo for conv2)

    def kernel(tcw_ref, yw_ref, dw1t_ref, dw1y_ref, pw1t_ref, pw1y_ref,
               s1_ref, b1_ref, dw2_ref, pw2_ref, s2_ref, b2_ref,
               o_ref, h1p_ref):
        # ---- conv1 depthwise 3x3, split over the two concat halves (VPU) ----
        d_t = jnp.zeros((hh, ow, ct), jnp.float32)
        d_y = jnp.zeros((hh, ow, cy), jnp.float32)
        for kk in range(9):
            dy, dx = divmod(kk, 3)
            d_t = d_t + tcw_ref[0, dy:dy + hh, dx:dx + ow, :] * dw1t_ref[kk]
            d_y = d_y + yw_ref[0, dy:dy + hh, dx:dx + ow, :] * dw1y_ref[kk]

        # ---- conv1 pointwise (MXU, concat folded into split weights) + BN1 + ReLU
        h1 = jnp.dot(d_t.reshape(hh * ow, ct), pw1t_ref[...],
                     preferred_element_type=jnp.float32)
        h1 = h1 + jnp.dot(d_y.reshape(hh * ow, cy), pw1y_ref[...],
                          preferred_element_type=jnp.float32)
        h1 = jnp.maximum(h1 * s1_ref[...] + b1_ref[...], 0.0).reshape(hh, ow, co)

        # h1 halo rows that fall outside the image are conv2's zero padding.
        t = pl.program_id(0) % n_t
        row = t * th - 1 + lax.broadcasted_iota(jnp.int32, (hh, ow, co), 0)
        h1 = jnp.where((row >= 0) & (row < oh), h1, 0.0)

        # Stage h1 (with 1-column zero pad) in VMEM scratch; never hits HBM.
        h1p_ref[...] = jnp.zeros((hh, ow + 2, co), jnp.float32)
        h1p_ref[:, 1:ow + 1, :] = h1

        # ---- conv2 depthwise 3x3 (VPU) ----
        d2 = jnp.zeros((th, ow, co), jnp.float32)
        for kk in range(9):
            dy, dx = divmod(kk, 3)
            d2 = d2 + h1p_ref[dy:dy + th, dx:dx + ow, :] * dw2_ref[kk]

        # ---- conv2 pointwise (MXU) + BN2 + ReLU ----
        out = jnp.dot(d2.reshape(th * ow, co), pw2_ref[...],
                      preferred_element_type=jnp.float32)
        out = jnp.maximum(out * s2_ref[...] + b2_ref[...], 0.0)
        o_ref[...] = out.reshape(1, th, ow, co)

    whole2 = lambda s: pl.BlockSpec(s, lambda i: (0, 0))
    whole4 = lambda s: pl.BlockSpec(s, lambda i: (0, 0, 0, 0))

    return pl.pallas_call(
        kernel,
        out_shape=jax.ShapeDtypeStruct((g, th, ow, co), jnp.float32),
        grid=(g,),
        in_specs=[
            pl.BlockSpec((1, th + 4, ow + 2, ct), lambda i: (i, 0, 0, 0)),
            pl.BlockSpec((1, th + 4, ow + 2, cy), lambda i: (i, 0, 0, 0)),
            whole4(p['dw1_tc'].shape), whole4(p['dw1_y'].shape),
            whole2(p['pw1_tc'].shape), whole2(p['pw1_y'].shape),
            whole2(p['scale1'].shape), whole2(p['shift1'].shape),
            whole4(p['dw2'].shape), whole2(p['pw2'].shape),
            whole2(p['scale2'].shape), whole2(p['shift2'].shape),
        ],
        out_specs=pl.BlockSpec((1, th, ow, co), lambda i: (i, 0, 0, 0)),
        scratch_shapes=[pltpu.VMEM((hh, ow + 2, co), jnp.float32)],
        compiler_params=pltpu.CompilerParams(dimension_semantics=("parallel",)),
    )(tcw, yw, p['dw1_tc'], p['dw1_y'], p['pw1_tc'], p['pw1_y'],
      p['scale1'], p['shift1'], p['dw2'], p['pw2'], p['scale2'], p['shift2'])


# ------------------------------- JAX glue ---------------------------------- #
@jax.jit
def upsample_block_forward(params, x_nchw, y_nchw):
    x = jnp.transpose(x_nchw, (0, 2, 3, 1)).astype(jnp.float32)   # (N, H, W, Cin)
    y = jnp.transpose(y_nchw, (0, 2, 3, 1)).astype(jnp.float32)   # (N, 2H, 2W, Cy)
    n, h, w, cin = x.shape
    cy = y.shape[-1]
    cout = params['pw2'].shape[-1]
    oh, ow = 2 * h, 2 * w

    # ---- transpose conv: 4 subpixel phases, in-kernel im2col over row tiles
    xp = jnp.pad(x, ((0, 0), (1, 1), (1, 1), (0, 0)))
    th_l = _largest_divisor_leq(h, max(1, _TM_MAX // max(w, 1)))
    xw = _row_windows(xp, th_l, 2)                                # (N*nTl, th_l+2, W+2, Cin)
    ph = _transconv_rows(xw, params['tc_w9'], params['tc_b4'],
                         th=th_l, w=w, cin=cin, cout4=4 * cout)
    # interleave the 4 sub-pixel phases -> (N, 2H, 2W, Cout)
    tc = ph.reshape(n, h, w, 2, 2, cout).transpose(0, 1, 3, 2, 4, 5)
    tc = tc.reshape(n, oh, ow, cout)

    # ---- fused concat + sepconv1 + bn1 + relu + sepconv2 + bn2 + relu -------
    th = _largest_divisor_leq(oh, _ROW_TILE)
    n_t = oh // th
    tcp = jnp.pad(tc, ((0, 0), (2, 2), (1, 1), (0, 0)))
    yp = jnp.pad(y, ((0, 0), (2, 2), (1, 1), (0, 0)))
    tcw = _row_windows(tcp, th, 4)
    yw = _row_windows(yp, th, 4)
    out = _fused_sepconv_block(tcw, yw, params, n_t=n_t, th=th, ow=ow, oh=oh,
                               ct=cout, cy=cy, co=cout)
    out = out.reshape(n, oh, ow, cout)
    return jnp.transpose(out, (0, 3, 1, 2))                       # back to NCHW


# ------------------------- parameter initialization ------------------------ #
def init_params(key, in_ch, out_ch):
    ks = jax.random.split(key, 14)
    torch_p = dict(
        tc_w=0.1 * jax.random.normal(ks[0], (in_ch, out_ch, 4, 4), jnp.float32),
        tc_b=0.1 * jax.random.normal(ks[1], (out_ch,), jnp.float32),
        dw1=0.1 * jax.random.normal(ks[2], (in_ch, 1, 3, 3), jnp.float32),
        pw1=0.1 * jax.random.normal(ks[3], (out_ch, in_ch, 1, 1), jnp.float32),
        g1=1.0 + 0.1 * jax.random.normal(ks[4], (out_ch,), jnp.float32),
        b1=0.1 * jax.random.normal(ks[5], (out_ch,), jnp.float32),
        m1=0.1 * jax.random.normal(ks[6], (out_ch,), jnp.float32),
        v1=jax.random.uniform(ks[7], (out_ch,), jnp.float32, 0.5, 1.5),
        dw2=0.1 * jax.random.normal(ks[8], (out_ch, 1, 3, 3), jnp.float32),
        pw2=0.1 * jax.random.normal(ks[9], (out_ch, out_ch, 1, 1), jnp.float32),
        g2=1.0 + 0.1 * jax.random.normal(ks[10], (out_ch,), jnp.float32),
        b2=0.1 * jax.random.normal(ks[11], (out_ch,), jnp.float32),
        m2=0.1 * jax.random.normal(ks[12], (out_ch,), jnp.float32),
        v2=jax.random.uniform(ks[13], (out_ch,), jnp.float32, 0.5, 1.5),
    )

    ct = out_ch                     # transconv half of the concat
    # Folded subpixel weight for ConvTranspose2d(k=4, s=2, p=1):
    # tap k = dy*3+dx over the 3x3 low-res neighborhood, rows = ci,
    # cols = (ry, rx, co) over the 4 output phases; unused taps are zero.
    w_np = np.asarray(torch_p['tc_w'], np.float32)               # (Cin, Cout, 4, 4)
    kmap = {(0, 0): 3, (0, 1): 1, (1, 1): 2, (1, 2): 0}          # (phase, tap) -> k
    w9 = np.zeros((3, 3, in_ch, 2, 2, out_ch), np.float32)
    for (ry, dy), ky in kmap.items():
        for (rx, dx), kx in kmap.items():
            w9[dy, dx, :, ry, rx, :] = w_np[:, :, ky, kx]
    w9 = jnp.asarray(w9.reshape(9, in_ch, 4 * out_ch))

    def bn_fold(g, b, mu, var):
        s = g / jnp.sqrt(var + _EPS)
        return s.reshape(1, -1), (b - mu * s).reshape(1, -1)

    s1, sh1 = bn_fold(torch_p['g1'], torch_p['b1'], torch_p['m1'], torch_p['v1'])
    s2, sh2 = bn_fold(torch_p['g2'], torch_p['b2'], torch_p['m2'], torch_p['v2'])

    def dw_taps(dw):  # (C, 1, 3, 3) -> (9, 1, 1, C), tap index k = dy*3 + dx
        return jnp.transpose(dw[:, 0], (1, 2, 0)).reshape(9, 1, 1, dw.shape[0])

    kernel_p = dict(
        tc_w9=w9,
        tc_b4=jnp.tile(torch_p['tc_b'], 4).reshape(1, 4 * out_ch),
        dw1_tc=dw_taps(torch_p['dw1'][:ct]),
        dw1_y=dw_taps(torch_p['dw1'][ct:]),
        pw1_tc=torch_p['pw1'][:, :ct, 0, 0].T,
        pw1_y=torch_p['pw1'][:, ct:, 0, 0].T,
        scale1=s1, shift1=sh1,
        dw2=dw_taps(torch_p['dw2']),
        pw2=torch_p['pw2'][:, :, 0, 0].T,
        scale2=s2, shift2=sh2,
    )
    return torch_p, kernel_p


# ----------------------- pure-JAX reference (NCHW) ------------------------- #
def reference_forward(tp, x, y):
    dn = ('NCHW', 'OIHW', 'NCHW')
    hp = lax.Precision.HIGHEST
    w = jnp.transpose(tp['tc_w'], (1, 0, 2, 3))[:, :, ::-1, ::-1]
    out = lax.conv_general_dilated(x, w, (1, 1), ((2, 2), (2, 2)),
                                   lhs_dilation=(2, 2), dimension_numbers=dn,
                                   precision=hp)
    out = out + tp['tc_b'].reshape(1, -1, 1, 1)
    cat = jnp.concatenate([out, y], axis=1)

    def sep_bn_relu(z, dwt, pwt, g, b, mu, var):
        cin = z.shape[1]
        d = lax.conv_general_dilated(z, dwt, (1, 1), ((1, 1), (1, 1)),
                                     feature_group_count=cin,
                                     dimension_numbers=dn, precision=hp)
        p = lax.conv_general_dilated(d, pwt, (1, 1), ((0, 0), (0, 0)),
                                     dimension_numbers=dn, precision=hp)
        s = (g / jnp.sqrt(var + _EPS)).reshape(1, -1, 1, 1)
        sh = (b - mu * g / jnp.sqrt(var + _EPS)).reshape(1, -1, 1, 1)
        return jax.nn.relu(p * s + sh)

    h1 = sep_bn_relu(cat, tp['dw1'], tp['pw1'], tp['g1'], tp['b1'], tp['m1'], tp['v1'])
    h2 = sep_bn_relu(h1, tp['dw2'], tp['pw2'], tp['g2'], tp['b2'], tp['m2'], tp['v2'])
    return h2


# ----------------------------------- main ----------------------------------- #
if __name__ == "__main__":
    in_ch, out_ch = 8, 4          # UNet decoder: in_channels == 2 * out_channels
    n, h, w = 2, 8, 8

    key = jax.random.PRNGKey(0)
    kp, kx, ky = jax.random.split(key, 3)
    x = jax.random.normal(kx, (n, in_ch, h, w), jnp.float32)                 # NCHW
    y = jax.random.normal(ky, (n, in_ch - out_ch, 2 * h, 2 * w), jnp.float32)

    torch_p, kernel_p = init_params(kp, in_ch, out_ch)

    out = jax.block_until_ready(upsample_block_forward(kernel_p, x, y))
    assert out.shape == (n, out_ch, 2 * h, 2 * w), out.shape

    ref = jax.block_until_ready(reference_forward(torch_p, x, y))
    np.testing.assert_allclose(np.asarray(out), np.asarray(ref), rtol=1e-3, atol=1e-3)

    print("KERNEL_OK")
</pallas_src>

<mosaic_0001>
module attributes {stable_mosaic.version = 11 : i64} {
  func.func @kernel(%arg0: i32, %arg1: memref<1x10x10x8xf32, #tpu.memory_space<vmem>>, %arg2: memref<9x8x16xf32, #tpu.memory_space<vmem>>, %arg3: memref<1x16xf32, #tpu.memory_space<vmem>>, %arg4: memref<1x64x16xf32, #tpu.memory_space<vmem>>) attributes {dimension_semantics = [#tpu.dimension_semantics<parallel>], iteration_bounds = array<i64: 2>, scalar_prefetch = 0 : i64, scratch_operands = 0 : i64, tpu.core_type = #tpu.core_type<tc>, window_params = [{transform_indices = @transform_0, window_bounds = array<i64: 1, 10, 10, 8>}, {pipeline_mode = #tpu.pipeline_mode<synchronous>, transform_indices = @transform_1, window_bounds = array<i64: 9, 8, 16>}, {pipeline_mode = #tpu.pipeline_mode<synchronous>, transform_indices = @transform_2, window_bounds = array<i64: 1, 16>}, {transform_indices = @transform_3, window_bounds = array<i64: 1, 64, 16>}]} {
    %cst = arith.constant 0.000000e+00 : f32
    %0 = vector.broadcast %cst : f32 to vector<64x16xf32>
    %c0 = arith.constant 0 : index
    %c0_0 = arith.constant 0 : index
    %c0_1 = arith.constant 0 : index
    %c0_2 = arith.constant 0 : index
    %1 = vector.load %arg1[%c0, %c0_0, %c0_1, %c0_2] : memref<1x10x10x8xf32, #tpu.memory_space<vmem>>, vector<1x8x8x8xf32>
    %2 = vector.shape_cast %1 : vector<1x8x8x8xf32> to vector<8x8x8xf32>
    %3 = vector.shape_cast %2 : vector<8x8x8xf32> to vector<64x8xf32>
    %c0_3 = arith.constant 0 : index
    %c0_4 = arith.constant 0 : index
    %c0_5 = arith.constant 0 : index
    %4 = vector.load %arg2[%c0_3, %c0_4, %c0_5] : memref<9x8x16xf32, #tpu.memory_space<vmem>>, vector<1x8x16xf32>
    %5 = vector.shape_cast %4 : vector<1x8x16xf32> to vector<8x16xf32>
    %cst_6 = arith.constant dense<0.000000e+00> : vector<64x16xf32>
    %6 = tpu.matmul %3, %5, %cst_6 {dimension_numbers = #tpu.dot_dimension_numbers<[1], [0], [0], [1], [0, 0, 1, 1], [], []>} : vector<64x8xf32>, vector<8x16xf32>, vector<64x16xf32> -> vector<64x16xf32>
    %7 = arith.addf %0, %6 : vector<64x16xf32>
    %c0_7 = arith.constant 0 : index
    %c0_8 = arith.constant 0 : index
    %c1 = arith.constant 1 : index
    %c0_9 = arith.constant 0 : index
    %8 = vector.load %arg1[%c0_7, %c0_8, %c1, %c0_9] : memref<1x10x10x8xf32, #tpu.memory_space<vmem>>, vector<1x8x8x8xf32>
    %9 = vector.shape_cast %8 : vector<1x8x8x8xf32> to vector<8x8x8xf32>
    %10 = vector.shape_cast %9 : vector<8x8x8xf32> to vector<64x8xf32>
    %c1_10 = arith.constant 1 : index
    %c0_11 = arith.constant 0 : index
    %c0_12 = arith.constant 0 : index
    %11 = vector.load %arg2[%c1_10, %c0_11, %c0_12] : memref<9x8x16xf32, #tpu.memory_space<vmem>>, vector<1x8x16xf32>
    %12 = vector.shape_cast %11 : vector<1x8x16xf32> to vector<8x16xf32>
    %cst_13 = arith.constant dense<0.000000e+00> : vector<64x16xf32>
    %13 = tpu.matmul %10, %12, %cst_13 {dimension_numbers = #tpu.dot_dimension_numbers<[1], [0], [0], [1], [0, 0, 1, 1], [], []>} : vector<64x8xf32>, vector<8x16xf32>, vector<64x16xf32> -> vector<64x16xf32>
    %14 = arith.addf %7, %13 : vector<64x16xf32>
    %c0_14 = arith.constant 0 : index
    %c0_15 = arith.constant 0 : index
    %c2 = arith.constant 2 : index
    %c0_16 = arith.constant 0 : index
    %15 = vector.load %arg1[%c0_14, %c0_15, %c2, %c0_16] : memref<1x10x10x8xf32, #tpu.memory_space<vmem>>, vector<1x8x8x8xf32>
    %16 = vector.shape_cast %15 : vector<1x8x8x8xf32> to vector<8x8x8xf32>
    %17 = vector.shape_cast %16 : vector<8x8x8xf32> to vector<64x8xf32>
    %c2_17 = arith.constant 2 : index
    %c0_18 = arith.constant 0 : index
    %c0_19 = arith.constant 0 : index
    %18 = vector.load %arg2[%c2_17, %c0_18, %c0_19] : memref<9x8x16xf32, #tpu.memory_space<vmem>>, vector<1x8x16xf32>
    %19 = vector.shape_cast %18 : vector<1x8x16xf32> to vector<8x16xf32>
    %cst_20 = arith.constant dense<0.000000e+00> : vector<64x16xf32>
    %20 = tpu.matmul %17, %19, %cst_20 {dimension_numbers = #tpu.dot_dimension_numbers<[1], [0], [0], [1], [0, 0, 1, 1], [], []>} : vector<64x8xf32>, vector<8x16xf32>, vector<64x16xf32> -> vector<64x16xf32>
    %21 = arith.addf %14, %20 : vector<64x16xf32>
    %c0_21 = arith.constant 0 : index
    %c1_22 = arith.constant 1 : index
    %c0_23 = arith.constant 0 : index
    %c0_24 = arith.constant 0 : index
    %22 = vector.load %arg1[%c0_21, %c1_22, %c0_23, %c0_24] : memref<1x10x10x8xf32, #tpu.memory_space<vmem>>, vector<1x8x8x8xf32>
    %23 = vector.shape_cast %22 : vector<1x8x8x8xf32> to vector<8x8x8xf32>
    %24 = vector.shape_cast %23 : vector<8x8x8xf32> to vector<64x8xf32>
    %c3 = arith.constant 3 : index
    %c0_25 = arith.constant 0 : index
    %c0_26 = arith.constant 0 : index
    %25 = vector.load %arg2[%c3, %c0_25, %c0_26] : memref<9x8x16xf32, #tpu.memory_space<vmem>>, vector<1x8x16xf32>
    %26 = vector.shape_cast %25 : vector<1x8x16xf32> to vector<8x16xf32>
    %cst_27 = arith.constant dense<0.000000e+00> : vector<64x16xf32>
    %27 = tpu.matmul %24, %26, %cst_27 {dimension_numbers = #tpu.dot_dimension_numbers<[1], [0], [0], [1], [0, 0, 1, 1], [], []>} : vector<64x8xf32>, vector<8x16xf32>, vector<64x16xf32> -> vector<64x16xf32>
    %28 = arith.addf %21, %27 : vector<64x16xf32>
    %c0_28 = arith.constant 0 : index
    %c1_29 = arith.constant 1 : index
    %c1_30 = arith.constant 1 : index
    %c0_31 = arith.constant 0 : index
    %29 = vector.load %arg1[%c0_28, %c1_29, %c1_30, %c0_31] : memref<1x10x10x8xf32, #tpu.memory_space<vmem>>, vector<1x8x8x8xf32>
    %30 = vector.shape_cast %29 : vector<1x8x8x8xf32> to vector<8x8x8xf32>
    %31 = vector.shape_cast %30 : vector<8x8x8xf32> to vector<64x8xf32>
    %c4 = arith.constant 4 : index
    %c0_32 = arith.constant 0 : index
    %c0_33 = arith.constant 0 : index
    %32 = vector.load %arg2[%c4, %c0_32, %c0_33] : memref<9x8x16xf32, #tpu.memory_space<vmem>>, vector<1x8x16xf32>
    %33 = vector.shape_cast %32 : vector<1x8x16xf32> to vector<8x16xf32>
    %cst_34 = arith.constant dense<0.000000e+00> : vector<64x16xf32>
    %34 = tpu.matmul %31, %33, %cst_34 {dimension_numbers = #tpu.dot_dimension_numbers<[1], [0], [0], [1], [0, 0, 1, 1], [], []>} : vector<64x8xf32>, vector<8x16xf32>, vector<64x16xf32> -> vector<64x16xf32>
    %35 = arith.addf %28, %34 : vector<64x16xf32>
    %c0_35 = arith.constant 0 : index
    %c1_36 = arith.constant 1 : index
    %c2_37 = arith.constant 2 : index
    %c0_38 = arith.constant 0 : index
    %36 = vector.load %arg1[%c0_35, %c1_36, %c2_37, %c0_38] : memref<1x10x10x8xf32, #tpu.memory_space<vmem>>, vector<1x8x8x8xf32>
    %37 = vector.shape_cast %36 : vector<1x8x8x8xf32> to vector<8x8x8xf32>
    %38 = vector.shape_cast %37 : vector<8x8x8xf32> to vector<64x8xf32>
    %c5 = arith.constant 5 : index
    %c0_39 = arith.constant 0 : index
    %c0_40 = arith.constant 0 : index
    %39 = vector.load %arg2[%c5, %c0_39, %c0_40] : memref<9x8x16xf32, #tpu.memory_space<vmem>>, vector<1x8x16xf32>
    %40 = vector.shape_cast %39 : vector<1x8x16xf32> to vector<8x16xf32>
    %cst_41 = arith.constant dense<0.000000e+00> : vector<64x16xf32>
    %41 = tpu.matmul %38, %40, %cst_41 {dimension_numbers = #tpu.dot_dimension_numbers<[1], [0], [0], [1], [0, 0, 1, 1], [], []>} : vector<64x8xf32>, vector<8x16xf32>, vector<64x16xf32> -> vector<64x16xf32>
    %42 = arith.addf %35, %41 : vector<64x16xf32>
    %c0_42 = arith.constant 0 : index
    %c2_43 = arith.constant 2 : index
    %c0_44 = arith.constant 0 : index
    %c0_45 = arith.constant 0 : index
    %43 = vector.load %arg1[%c0_42, %c2_43, %c0_44, %c0_45] : memref<1x10x10x8xf32, #tpu.memory_space<vmem>>, vector<1x8x8x8xf32>
    %44 = vector.shape_cast %43 : vector<1x8x8x8xf32> to vector<8x8x8xf32>
    %45 = vector.shape_cast %44 : vector<8x8x8xf32> to vector<64x8xf32>
    %c6 = arith.constant 6 : index
    %c0_46 = arith.constant 0 : index
    %c0_47 = arith.constant 0 : index
    %46 = vector.load %arg2[%c6, %c0_46, %c0_47] : memref<9x8x16xf32, #tpu.memory_space<vmem>>, vector<1x8x16xf32>
    %47 = vector.shape_cast %46 : vector<1x8x16xf32> to vector<8x16xf32>
    %cst_48 = arith.constant dense<0.000000e+00> : vector<64x16xf32>
    %48 = tpu.matmul %45, %47, %cst_48 {dimension_numbers = #tpu.dot_dimension_numbers<[1], [0], [0], [1], [0, 0, 1, 1], [], []>} : vector<64x8xf32>, vector<8x16xf32>, vector<64x16xf32> -> vector<64x16xf32>
    %49 = arith.addf %42, %48 : vector<64x16xf32>
    %c0_49 = arith.constant 0 : index
    %c2_50 = arith.constant 2 : index
    %c1_51 = arith.constant 1 : index
    %c0_52 = arith.constant 0 : index
    %50 = vector.load %arg1[%c0_49, %c2_50, %c1_51, %c0_52] : memref<1x10x10x8xf32, #tpu.memory_space<vmem>>, vector<1x8x8x8xf32>
    %51 = vector.shape_cast %50 : vector<1x8x8x8xf32> to vector<8x8x8xf32>
    %52 = vector.shape_cast %51 : vector<8x8x8xf32> to vector<64x8xf32>
    %c7 = arith.constant 7 : index
    %c0_53 = arith.constant 0 : index
    %c0_54 = arith.constant 0 : index
    %53 = vector.load %arg2[%c7, %c0_53, %c0_54] : memref<9x8x16xf32, #tpu.memory_space<vmem>>, vector<1x8x16xf32>
    %54 = vector.shape_cast %53 : vector<1x8x16xf32> to vector<8x16xf32>
    %cst_55 = arith.constant dense<0.000000e+00> : vector<64x16xf32>
    %55 = tpu.matmul %52, %54, %cst_55 {dimension_numbers = #tpu.dot_dimension_numbers<[1], [0], [0], [1], [0, 0, 1, 1], [], []>} : vector<64x8xf32>, vector<8x16xf32>, vector<64x16xf32> -> vector<64x16xf32>
    %56 = arith.addf %49, %55 : vector<64x16xf32>
    %c0_56 = arith.constant 0 : index
    %c2_57 = arith.constant 2 : index
    %c2_58 = arith.constant 2 : index
    %c0_59 = arith.constant 0 : index
    %57 = vector.load %arg1[%c0_56, %c2_57, %c2_58, %c0_59] : memref<1x10x10x8xf32, #tpu.memory_space<vmem>>, vector<1x8x8x8xf32>
    %58 = vector.shape_cast %57 : vector<1x8x8x8xf32> to vector<8x8x8xf32>
    %59 = vector.shape_cast %58 : vector<8x8x8xf32> to vector<64x8xf32>
    %c8 = arith.constant 8 : index
    %c0_60 = arith.constant 0 : index
    %c0_61 = arith.constant 0 : index
    %60 = vector.load %arg2[%c8, %c0_60, %c0_61] : memref<9x8x16xf32, #tpu.memory_space<vmem>>, vector<1x8x16xf32>
    %61 = vector.shape_cast %60 : vector<1x8x16xf32> to vector<8x16xf32>
    %cst_62 = arith.constant dense<0.000000e+00> : vector<64x16xf32>
    %62 = tpu.matmul %59, %61, %cst_62 {dimension_numbers = #tpu.dot_dimension_numbers<[1], [0], [0], [1], [0, 0, 1, 1], [], []>} : vector<64x8xf32>, vector<8x16xf32>, vector<64x16xf32> -> vector<64x16xf32>
    %63 = arith.addf %56, %62 : vector<64x16xf32>
    %c0_63 = arith.constant 0 : index
    %c0_64 = arith.constant 0 : index
    %64 = vector.load %arg3[%c0_63, %c0_64] : memref<1x16xf32, #tpu.memory_space<vmem>>, vector<1x16xf32>
    %65 = vector.broadcast %64 : vector<1x16xf32> to vector<64x16xf32>
    %66 = arith.addf %63, %65 : vector<64x16xf32>
    %67 = vector.shape_cast %66 : vector<64x16xf32> to vector<1x64x16xf32>
    %c0_65 = arith.constant 0 : index
    %c0_66 = arith.constant 0 : index
    %c0_67 = arith.constant 0 : index
    %68 = vector.load %arg4[%c0_65, %c0_66, %c0_67] : memref<1x64x16xf32, #tpu.memory_space<vmem>>, vector<1x64x16xf32>
    tpu.vector_store %arg4[%c0_65, %c0_66, %c0_67], %67 {strides = array<i32>} : memref<1x64x16xf32, #tpu.memory_space<vmem>>, vector<1x64x16xf32>,
    return
  }
  func.func @transform_0(%arg0: i32) -> (i32, i32, i32, i32) {
    %c0_i32 = arith.constant 0 : i32
    %c0_i32_0 = arith.constant 0 : i32
    %c0_i32_1 = arith.constant 0 : i32
    %c0_i32_2 = arith.constant 0 : i32
    return %arg0, %c0_i32, %c0_i32_0, %c0_i32_1 : i32, i32, i32, i32
  }
  func.func @transform_1(%arg0: i32) -> (i32, i32, i32) {
    %c0_i32 = arith.constant 0 : i32
    %c0_i32_0 = arith.constant 0 : i32
    %c0_i32_1 = arith.constant 0 : i32
    %c0_i32_2 = arith.constant 0 : i32
    return %c0_i32, %c0_i32_0, %c0_i32_1 : i32, i32, i32
  }
  func.func @transform_2(%arg0: i32) -> (i32, i32) {
    %c0_i32 = arith.constant 0 : i32
    %c0_i32_0 = arith.constant 0 : i32
    %c0_i32_1 = arith.constant 0 : i32
    return %c0_i32, %c0_i32_0 : i32, i32
  }
  func.func @transform_3(%arg0: i32) -> (i32, i32, i32) {
    %c0_i32 = arith.constant 0 : i32
    %c0_i32_0 = arith.constant 0 : i32
    %c0_i32_1 = arith.constant 0 : i32
    return %arg0, %c0_i32, %c0_i32_0 : i32, i32, i32
  }
}

module attributes {stable_mosaic.version = 11 : i64} {
  func.func @kernel(%arg0: i32, %arg1: memref<1x12x18x4xf32, #tpu.memory_space<vmem>>, %arg2: memref<1x12x18x4xf32, #tpu.memory_space<vmem>>, %arg3: memref<9x1x1x4xf32, #tpu.memory_space<vmem>>, %arg4: memref<9x1x1x4xf32, #tpu.memory_space<vmem>>, %arg5: memref<4x4xf32, #tpu.memory_space<vmem>>, %arg6: memref<4x4xf32, #tpu.memory_space<vmem>>, %arg7: memref<1x4xf32, #tpu.memory_space<vmem>>, %arg8: memref<1x4xf32, #tpu.memory_space<vmem>>, %arg9: memref<9x1x1x4xf32, #tpu.memory_space<vmem>>, %arg10: memref<4x4xf32, #tpu.memory_space<vmem>>, %arg11: memref<1x4xf32, #tpu.memory_space<vmem>>, %arg12: memref<1x4xf32, #tpu.memory_space<vmem>>, %arg13: memref<1x8x16x4xf32, #tpu.memory_space<vmem>>, %arg14: memref<10x18x4xf32, #tpu.memory_space<vmem>>) attributes {dimension_semantics = [#tpu.dimension_semantics<parallel>], iteration_bounds = array<i64: 4>, scalar_prefetch = 0 : i64, scratch_operands = 1 : i64, tpu.core_type = #tpu.core_type<tc>, window_params = [{transform_indices = @transform_0, window_bounds = array<i64: 1, 12, 18, 4>}, {transform_indices = @transform_1, window_bounds = array<i64: 1, 12, 18, 4>}, {pipeline_mode = #tpu.pipeline_mode<synchronous>, transform_indices = @transform_2, window_bounds = array<i64: 9, 1, 1, 4>}, {pipeline_mode = #tpu.pipeline_mode<synchronous>, transform_indices = @transform_3, window_bounds = array<i64: 9, 1, 1, 4>}, {pipeline_mode = #tpu.pipeline_mode<synchronous>, transform_indices = @transform_4, window_bounds = array<i64: 4, 4>}, {pipeline_mode = #tpu.pipeline_mode<synchronous>, transform_indices = @transform_5, window_bounds = array<i64: 4, 4>}, {pipeline_mode = #tpu.pipeline_mode<synchronous>, transform_indices = @transform_6, window_bounds = array<i64: 1, 4>}, {pipeline_mode = #tpu.pipeline_mode<synchronous>, transform_indices = @transform_7, window_bounds = array<i64: 1, 4>}, {pipeline_mode = #tpu.pipeline_mode<synchronous>, transform_indices = @transform_8, window_bounds = array<i64: 9, 1, 1, 4>}, {pipeline_mode = #tpu.pipeline_mode<synchronous>, transform_indices = @transform_9, window_bounds = array<i64: 4, 4>}, {pipeline_mode = #tpu.pipeline_mode<synchronous>, transform_indices = @transform_10, window_bounds = array<i64: 1, 4>}, {pipeline_mode = #tpu.pipeline_mode<synchronous>, transform_indices = @transform_11, window_bounds = array<i64: 1, 4>}, {transform_indices = @transform_12, window_bounds = array<i64: 1, 8, 16, 4>}]} {
    %cst = arith.constant 0.000000e+00 : f32
    %0 = vector.broadcast %cst : f32 to vector<10x16x4xf32>
    %cst_0 = arith.constant 0.000000e+00 : f32
    %1 = vector.broadcast %cst_0 : f32 to vector<10x16x4xf32>
    %c0 = arith.constant 0 : index
    %c0_1 = arith.constant 0 : index
    %c0_2 = arith.constant 0 : index
    %c0_3 = arith.constant 0 : index
    %2 = vector.load %arg1[%c0, %c0_1, %c0_2, %c0_3] : memref<1x12x18x4xf32, #tpu.memory_space<vmem>>, vector<1x10x16x4xf32>
    %3 = vector.shape_cast %2 : vector<1x10x16x4xf32> to vector<10x16x4xf32>
    %c0_4 = arith.constant 0 : index
    %c0_5 = arith.constant 0 : index
    %c0_6 = arith.constant 0 : index
    %c0_7 = arith.constant 0 : index
    %4 = vector.load %arg3[%c0_4, %c0_5, %c0_6, %c0_7] : memref<9x1x1x4xf32, #tpu.memory_space<vmem>>, vector<1x1x1x4xf32>
    %5 = vector.shape_cast %4 : vector<1x1x1x4xf32> to vector<1x1x4xf32>
    %6 = vector.broadcast %5 : vector<1x1x4xf32> to vector<10x16x4xf32>
    %7 = arith.mulf %3, %6 : vector<10x16x4xf32>
    %8 = arith.addf %0, %7 : vector<10x16x4xf32>
    %c0_8 = arith.constant 0 : index
    %c0_9 = arith.constant 0 : index
    %c0_10 = arith.constant 0 : index
    %c0_11 = arith.constant 0 : index
    %9 = vector.load %arg2[%c0_8, %c0_9, %c0_10, %c0_11] : memref<1x12x18x4xf32, #tpu.memory_space<vmem>>, vector<1x10x16x4xf32>
    %10 = vector.shape_cast %9 : vector<1x10x16x4xf32> to vector<10x16x4xf32>
    %c0_12 = arith.constant 0 : index
    %c0_13 = arith.constant 0 : index
    %c0_14 = arith.constant 0 : index
    %c0_15 = arith.constant 0 : index
    %11 = vector.load %arg4[%c0_12, %c0_13, %c0_14, %c0_15] : memref<9x1x1x4xf32, #tpu.memory_space<vmem>>, vector<1x1x1x4xf32>
    %12 = vector.shape_cast %11 : vector<1x1x1x4xf32> to vector<1x1x4xf32>
    %13 = vector.broadcast %12 : vector<1x1x4xf32> to vector<10x16x4xf32>
    %14 = arith.mulf %10, %13 : vector<10x16x4xf32>
    %15 = arith.addf %1, %14 : vector<10x16x4xf32>
    %c0_16 = arith.constant 0 : index
    %c0_17 = arith.constant 0 : index
    %c1 = arith.constant 1 : index
    %c0_18 = arith.constant 0 : index
    %16 = vector.load %arg1[%c0_16, %c0_17, %c1, %c0_18] : memref<1x12x18x4xf32, #tpu.memory_space<vmem>>, vector<1x10x16x4xf32>
    %17 = vector.shape_cast %16 : vector<1x10x16x4xf32> to vector<10x16x4xf32>
    %c1_19 = arith.constant 1 : index
    %c0_20 = arith.constant 0 : index
    %c0_21 = arith.constant 0 : index
    %c0_22 = arith.constant 0 : index
    %18 = vector.load %arg3[%c1_19, %c0_20, %c0_21, %c0_22] : memref<9x1x1x4xf32, #tpu.memory_space<vmem>>, vector<1x1x1x4xf32>
    %19 = vector.shape_cast %18 : vector<1x1x1x4xf32> to vector<1x1x4xf32>
    %20 = vector.broadcast %19 : vector<1x1x4xf32> to vector<10x16x4xf32>
    %21 = arith.mulf %17, %20 : vector<10x16x4xf32>
    %22 = arith.addf %8, %21 : vector<10x16x4xf32>
    %c0_23 = arith.constant 0 : index
    %c0_24 = arith.constant 0 : index
    %c1_25 = arith.constant 1 : index
    %c0_26 = arith.constant 0 : index
    %23 = vector.load %arg2[%c0_23, %c0_24, %c1_25, %c0_26] : memref<1x12x18x4xf32, #tpu.memory_space<vmem>>, vector<1x10x16x4xf32>
    %24 = vector.shape_cast %23 : vector<1x10x16x4xf32> to vector<10x16x4xf32>
    %c1_27 = arith.constant 1 : index
    %c0_28 = arith.constant 0 : index
    %c0_29 = arith.constant 0 : index
    %c0_30 = arith.constant 0 : index
    %25 = vector.load %arg4[%c1_27, %c0_28, %c0_29, %c0_30] : memref<9x1x1x4xf32, #tpu.memory_space<vmem>>, vector<1x1x1x4xf32>
    %26 = vector.shape_cast %25 : vector<1x1x1x4xf32> to vector<1x1x4xf32>
    %27 = vector.broadcast %26 : vector<1x1x4xf32> to vector<10x16x4xf32>
    %28 = arith.mulf %24, %27 : vector<10x16x4xf32>
    %29 = arith.addf %15, %28 : vector<10x16x4xf32>
    %c0_31 = arith.constant 0 : index
    %c0_32 = arith.constant 0 : index
    %c2 = arith.constant 2 : index
    %c0_33 = arith.constant 0 : index
    %30 = vector.load %arg1[%c0_31, %c0_32, %c2, %c0_33] : memref<1x12x18x4xf32, #tpu.memory_space<vmem>>, vector<1x10x16x4xf32>
    %31 = vector.shape_cast %30 : vector<1x10x16x4xf32> to vector<10x16x4xf32>
    %c2_34 = arith.constant 2 : index
    %c0_35 = arith.constant 0 : index
    %c0_36 = arith.constant 0 : index
    %c0_37 = arith.constant 0 : index
    %32 = vector.load %arg3[%c2_34, %c0_35, %c0_36, %c0_37] : memref<9x1x1x4xf32, #tpu.memory_space<vmem>>, vector<1x1x1x4xf32>
    %33 = vector.shape_cast %32 : vector<1x1x1x4xf32> to vector<1x1x4xf32>
    %34 = vector.broadcast %33 : vector<1x1x4xf32> to vector<10x16x4xf32>
    %35 = arith.mulf %31, %34 : vector<10x16x4xf32>
    %36 = arith.addf %22, %35 : vector<10x16x4xf32>
    %c0_38 = arith.constant 0 : index
    %c0_39 = arith.constant 0 : index
    %c2_40 = arith.constant 2 : index
    %c0_41 = arith.constant 0 : index
    %37 = vector.load %arg2[%c0_38, %c0_39, %c2_40, %c0_41] : memref<1x12x18x4xf32, #tpu.memory_space<vmem>>, vector<1x10x16x4xf32>
    %38 = vector.shape_cast %37 : vector<1x10x16x4xf32> to vector<10x16x4xf32>
    %c2_42 = arith.constant 2 : index
    %c0_43 = arith.constant 0 : index
    %c0_44 = arith.constant 0 : index
    %c0_45 = arith.constant 0 : index
    %39 = vector.load %arg4[%c2_42, %c0_43, %c0_44, %c0_45] : memref<9x1x1x4xf32, #tpu.memory_space<vmem>>, vector<1x1x1x4xf32>
    %40 = vector.shape_cast %39 : vector<1x1x1x4xf32> to vector<1x1x4xf32>
    %41 = vector.broadcast %40 : vector<1x1x4xf32> to vector<10x16x4xf32>
    %42 = arith.mulf %38, %41 : vector<10x16x4xf32>
    %43 = arith.addf %29, %42 : vector<10x16x4xf32>
    %c0_46 = arith.constant 0 : index
    %c1_47 = arith.constant 1 : index
    %c0_48 = arith.constant 0 : index
    %c0_49 = arith.constant 0 : index
    %44 = vector.load %arg1[%c0_46, %c1_47, %c0_48, %c0_49] : memref<1x12x18x4xf32, #tpu.memory_space<vmem>>, vector<1x10x16x4xf32>
    %45 = vector.shape_cast %44 : vector<1x10x16x4xf32> to vector<10x16x4xf32>
    %c3 = arith.constant 3 : index
    %c0_50 = arith.constant 0 : index
    %c0_51 = arith.constant 0 : index
    %c0_52 = arith.constant 0 : index
    %46 = vector.load %arg3[%c3, %c0_50, %c0_51, %c0_52] : memref<9x1x1x4xf32, #tpu.memory_space<vmem>>, vector<1x1x1x4xf32>
    %47 = vector.shape_cast %46 : vector<1x1x1x4xf32> to vector<1x1x4xf32>
    %48 = vector.broadcast %47 : vector<1x1x4xf32> to vector<10x16x4xf32>
    %49 = arith.mulf %45, %48 : vector<10x16x4xf32>
    %50 = arith.addf %36, %49 : vector<10x16x4xf32>
    %c0_53 = arith.constant 0 : index
    %c1_54 = arith.constant 1 : index
    %c0_55 = arith.constant 0 : index
    %c0_56 = arith.constant 0 : index
    %51 = vector.load %arg2[%c0_53, %c1_54, %c0_55, %c0_56] : memref<1x12x18x4xf32, #tpu.memory_space<vmem>>, vector<1x10x16x4xf32>
    %52 = vector.shape_cast %51 : vector<1x10x16x4xf32> to vector<10x16x4xf32>
    %c3_57 = arith.constant 3 : index
    %c0_58 = arith.constant 0 : index
    %c0_59 = arith.constant 0 : index
    %c0_60 = arith.constant 0 : index
    %53 = vector.load %arg4[%c3_57, %c0_58, %c0_59, %c0_60] : memref<9x1x1x4xf32, #tpu.memory_space<vmem>>, vector<1x1x1x4xf32>
    %54 = vector.shape_cast %53 : vector<1x1x1x4xf32> to vector<1x1x4xf32>
    %55 = vector.broadcast %54 : vector<1x1x4xf32> to vector<10x16x4xf32>
    %56 = arith.mulf %52, %55 : vector<10x16x4xf32>
    %57 = arith.addf %43, %56 : vector<10x16x4xf32>
    %c0_61 = arith.constant 0 : index
    %c1_62 = arith.constant 1 : index
    %c1_63 = arith.constant 1 : index
    %c0_64 = arith.constant 0 : index
    %58 = vector.load %arg1[%c0_61, %c1_62, %c1_63, %c0_64] : memref<1x12x18x4xf32, #tpu.memory_space<vmem>>, vector<1x10x16x4xf32>
    %59 = vector.shape_cast %58 : vector<1x10x16x4xf32> to vector<10x16x4xf32>
    %c4 = arith.constant 4 : index
    %c0_65 = arith.constant 0 : index
    %c0_66 = arith.constant 0 : index
    %c0_67 = arith.constant 0 : index
    %60 = vector.load %arg3[%c4, %c0_65, %c0_66, %c0_67] : memref<9x1x1x4xf32, #tpu.memory_space<vmem>>, vector<1x1x1x4xf32>
    %61 = vector.shape_cast %60 : vector<1x1x1x4xf32> to vector<1x1x4xf32>
    %62 = vector.broadcast %61 : vector<1x1x4xf32> to vector<10x16x4xf32>
    %63 = arith.mulf %59, %62 : vector<10x16x4xf32>
    %64 = arith.addf %50, %63 : vector<10x16x4xf32>
    %c0_68 = arith.constant 0 : index
    %c1_69 = arith.constant 1 : index
    %c1_70 = arith.constant 1 : index
    %c0_71 = arith.constant 0 : index
    %65 = vector.load %arg2[%c0_68, %c1_69, %c1_70, %c0_71] : memref<1x12x18x4xf32, #tpu.memory_space<vmem>>, vector<1x10x16x4xf32>
    %66 = vector.shape_cast %65 : vector<1x10x16x4xf32> to vector<10x16x4xf32>
    %c4_72 = arith.constant 4 : index
    %c0_73 = arith.constant 0 : index
    %c0_74 = arith.constant 0 : index
    %c0_75 = arith.constant 0 : index
    %67 = vector.load %arg4[%c4_72, %c0_73, %c0_74, %c0_75] : memref<9x1x1x4xf32, #tpu.memory_space<vmem>>, vector<1x1x1x4xf32>
    %68 = vector.shape_cast %67 : vector<1x1x1x4xf32> to vector<1x1x4xf32>
    %69 = vector.broadcast %68 : vector<1x1x4xf32> to vector<10x16x4xf32>
    %70 = arith.mulf %66, %69 : vector<10x16x4xf32>
    %71 = arith.addf %57, %70 : vector<10x16x4xf32>
    %c0_76 = arith.constant 0 : index
    %c1_77 = arith.constant 1 : index
    %c2_78 = arith.constant 2 : index
    %c0_79 = arith.constant 0 : index
    %72 = vector.load %arg1[%c0_76, %c1_77, %c2_78, %c0_79] : memref<1x12x18x4xf32, #tpu.memory_space<vmem>>, vector<1x10x16x4xf32>
    %73 = vector.shape_cast %72 : vector<1x10x16x4xf32> to vector<10x16x4xf32>
    %c5 = arith.constant 5 : index
    %c0_80 = arith.constant 0 : index
    %c0_81 = arith.constant 0 : index
    %c0_82 = arith.constant 0 : index
    %74 = vector.load %arg3[%c5, %c0_80, %c0_81, %c0_82] : memref<9x1x1x4xf32, #tpu.memory_space<vmem>>, vector<1x1x1x4xf32>
    %75 = vector.shape_cast %74 : vector<1x1x1x4xf32> to vector<1x1x4xf32>
    %76 = vector.broadcast %75 : vector<1x1x4xf32> to vector<10x16x4xf32>
    %77 = arith.mulf %73, %76 : vector<10x16x4xf32>
    %78 = arith.addf %64, %77 : vector<10x16x4xf32>
    %c0_83 = arith.constant 0 : index
    %c1_84 = arith.constant 1 : index
    %c2_85 = arith.constant 2 : index
    %c0_86 = arith.constant 0 : index
    %79 = vector.load %arg2[%c0_83, %c1_84, %c2_85, %c0_86] : memref<1x12x18x4xf32, #tpu.memory_space<vmem>>, vector<1x10x16x4xf32>
    %80 = vector.shape_cast %79 : vector<1x10x16x4xf32> to vector<10x16x4xf32>
    %c5_87 = arith.constant 5 : index
    %c0_88 = arith.constant 0 : index
    %c0_89 = arith.constant 0 : index
    %c0_90 = arith.constant 0 : index
    %81 = vector.load %arg4[%c5_87, %c0_88, %c0_89, %c0_90] : memref<9x1x1x4xf32, #tpu.memory_space<vmem>>, vector<1x1x1x4xf32>
    %82 = vector.shape_cast %81 : vector<1x1x1x4xf32> to vector<1x1x4xf32>
    %83 = vector.broadcast %82 : vector<1x1x4xf32> to vector<10x16x4xf32>
    %84 = arith.mulf %80, %83 : vector<10x16x4xf32>
    %85 = arith.addf %71, %84 : vector<10x16x4xf32>
    %c0_91 = arith.constant 0 : index
    %c2_92 = arith.constant 2 : index
    %c0_93 = arith.constant 0 : index
    %c0_94 = arith.constant 0 : index
    %86 = vector.load %arg1[%c0_91, %c2_92, %c0_93, %c0_94] : memref<1x12x18x4xf32, #tpu.memory_space<vmem>>, vector<1x10x16x4xf32>
    %87 = vector.shape_cast %86 : vector<1x10x16x4xf32> to vector<10x16x4xf32>
    %c6 = arith.constant 6 : index
    %c0_95 = arith.constant 0 : index
    %c0_96 = arith.constant 0 : index
    %c0_97 = arith.constant 0 : index
    %88 = vector.load %arg3[%c6, %c0_95, %c0_96, %c0_97] : memref<9x1x1x4xf32, #tpu.memory_space<vmem>>, vector<1x1x1x4xf32>
    %89 = vector.shape_cast %88 : vector<1x1x1x4xf32> to vector<1x1x4xf32>
    %90 = vector.broadcast %89 : vector<1x1x4xf32> to vector<10x16x4xf32>
    %91 = arith.mulf %87, %90 : vector<10x16x4xf32>
    %92 = arith.addf %78, %91 : vector<10x16x4xf32>
    %c0_98 = arith.constant 0 : index
    %c2_99 = arith.constant 2 : index
    %c0_100 = arith.constant 0 : index
    %c0_101 = arith.constant 0 : index
    %93 = vector.load %arg2[%c0_98, %c2_99, %c0_100, %c0_101] : memref<1x12x18x4xf32, #tpu.memory_space<vmem>>, vector<1x10x16x4xf32>
    %94 = vector.shape_cast %93 : vector<1x10x16x4xf32> to vector<10x16x4xf32>
    %c6_102 = arith.constant 6 : index
    %c0_103 = arith.constant 0 : index
    %c0_104 = arith.constant 0 : index
    %c0_105 = arith.constant 0 : index
    %95 = vector.load %arg4[%c6_102, %c0_103, %c0_104, %c0_105] : memref<9x1x1x4xf32, #tpu.memory_space<vmem>>, vector<1x1x1x4xf32>
    %96 = vector.shape_cast %95 : vector<1x1x1x4xf32> to vector<1x1x4xf32>
    %97 = vector.broadcast %96 : vector<1x1x4xf32> to vector<10x16x4xf32>
    %98 = arith.mulf %94, %97 : vector<10x16x4xf32>
    %99 = arith.addf %85, %98 : vector<10x16x4xf32>
    %c0_106 = arith.constant 0 : index
    %c2_107 = arith.constant 2 : index
    %c1_108 = arith.constant 1 : index
    %c0_109 = arith.constant 0 : index
    %100 = vector.load %arg1[%c0_106, %c2_107, %c1_108, %c0_109] : memref<1x12x18x4xf32, #tpu.memory_space<vmem>>, vector<1x10x16x4xf32>
    %101 = vector.shape_cast %100 : vector<1x10x16x4xf32> to vector<10x16x4xf32>
    %c7 = arith.constant 7 : index
    %c0_110 = arith.constant 0 : index
    %c0_111 = arith.constant 0 : index
    %c0_112 = arith.constant 0 : index
    %102 = vector.load %arg3[%c7, %c0_110, %c0_111, %c0_112] : memref<9x1x1x4xf32, #tpu.memory_space<vmem>>, vector<1x1x1x4xf32>
    %103 = vector.shape_cast %102 : vector<1x1x1x4xf32> to vector<1x1x4xf32>
    %104 = vector.broadcast %103 : vector<1x1x4xf32> to vector<10x16x4xf32>
    %105 = arith.mulf %101, %104 : vector<10x16x4xf32>
    %106 = arith.addf %92, %105 : vector<10x16x4xf32>
    %c0_113 = arith.constant 0 : index
    %c2_114 = arith.constant 2 : index
    %c1_115 = arith.constant 1 : index
    %c0_116 = arith.constant 0 : index
    %107 = vector.load %arg2[%c0_113, %c2_114, %c1_115, %c0_116] : memref<1x12x18x4xf32, #tpu.memory_space<vmem>>, vector<1x10x16x4xf32>
    %108 = vector.shape_cast %107 : vector<1x10x16x4xf32> to vector<10x16x4xf32>
    %c7_117 = arith.constant 7 : index
    %c0_118 = arith.constant 0 : index
    %c0_119 = arith.constant 0 : index
    %c0_120 = arith.constant 0 : index
    %109 = vector.load %arg4[%c7_117, %c0_118, %c0_119, %c0_120] : memref<9x1x1x4xf32, #tpu.memory_space<vmem>>, vector<1x1x1x4xf32>
    %110 = vector.shape_cast %109 : vector<1x1x1x4xf32> to vector<1x1x4xf32>
    %111 = vector.broadcast %110 : vector<1x1x4xf32> to vector<10x16x4xf32>
    %112 = arith.mulf %108, %111 : vector<10x16x4xf32>
    %113 = arith.addf %99, %112 : vector<10x16x4xf32>
    %c0_121 = arith.constant 0 : index
    %c2_122 = arith.constant 2 : index
    %c2_123 = arith.constant 2 : index
    %c0_124 = arith.constant 0 : index
    %114 = vector.load %arg1[%c0_121, %c2_122, %c2_123, %c0_124] : memref<1x12x18x4xf32, #tpu.memory_space<vmem>>, vector<1x10x16x4xf32>
    %115 = vector.shape_cast %114 : vector<1x10x16x4xf32> to vector<10x16x4xf32>
    %c8 = arith.constant 8 : index
    %c0_125 = arith.constant 0 : index
    %c0_126 = arith.constant 0 : index
    %c0_127 = arith.constant 0 : index
    %116 = vector.load %arg3[%c8, %c0_125, %c0_126, %c0_127] : memref<9x1x1x4xf32, #tpu.memory_space<vmem>>, vector<1x1x1x4xf32>
    %117 = vector.shape_cast %116 : vector<1x1x1x4xf32> to vector<1x1x4xf32>
    %118 = vector.broadcast %117 : vector<1x1x4xf32> to vector<10x16x4xf32>
    %119 = arith.mulf %115, %118 : vector<10x16x4xf32>
    %120 = arith.addf %106, %119 : vector<10x16x4xf32>
    %c0_128 = arith.constant 0 : index
    %c2_129 = arith.constant 2 : index
    %c2_130 = arith.constant 2 : index
    %c0_131 = arith.constant 0 : index
    %121 = vector.load %arg2[%c0_128, %c2_129, %c2_130, %c0_131] : memref<1x12x18x4xf32, #tpu.memory_space<vmem>>, vector<1x10x16x4xf32>
    %122 = vector.shape_cast %121 : vector<1x10x16x4xf32> to vector<10x16x4xf32>
    %c8_132 = arith.constant 8 : index
    %c0_133 = arith.constant 0 : index
    %c0_134 = arith.constant 0 : index
    %c0_135 = arith.constant 0 : index
    %123 = vector.load %arg4[%c8_132, %c0_133, %c0_134, %c0_135] : memref<9x1x1x4xf32, #tpu.memory_space<vmem>>, vector<1x1x1x4xf32>
    %124 = vector.shape_cast %123 : vector<1x1x1x4xf32> to vector<1x1x4xf32>
    %125 = vector.broadcast %124 : vector<1x1x4xf32> to vector<10x16x4xf32>
    %126 = arith.mulf %122, %125 : vector<10x16x4xf32>
    %127 = arith.addf %113, %126 : vector<10x16x4xf32>
    %128 = vector.shape_cast %120 : vector<10x16x4xf32> to vector<160x4xf32>
    %c0_136 = arith.constant 0 : index
    %c0_137 = arith.constant 0 : index
    %129 = vector.load %arg5[%c0_136, %c0_137] : memref<4x4xf32, #tpu.memory_space<vmem>>, vector<4x4xf32>
    %cst_138 = arith.constant dense<0.000000e+00> : vector<160x4xf32>
    %130 = tpu.matmul %128, %129, %cst_138 {dimension_numbers = #tpu.dot_dimension_numbers<[1], [0], [0], [1], [0, 0, 1, 1], [], []>} : vector<160x4xf32>, vector<4x4xf32>, vector<160x4xf32> -> vector<160x4xf32>
    %131 = vector.shape_cast %127 : vector<10x16x4xf32> to vector<160x4xf32>
    %c0_139 = arith.constant 0 : index
    %c0_140 = arith.constant 0 : index
    %132 = vector.load %arg6[%c0_139, %c0_140] : memref<4x4xf32, #tpu.memory_space<vmem>>, vector<4x4xf32>
    %cst_141 = arith.constant dense<0.000000e+00> : vector<160x4xf32>
    %133 = tpu.matmul %131, %132, %cst_141 {dimension_numbers = #tpu.dot_dimension_numbers<[1], [0], [0], [1], [0, 0, 1, 1], [], []>} : vector<160x4xf32>, vector<4x4xf32>, vector<160x4xf32> -> vector<160x4xf32>
    %134 = arith.addf %130, %133 : vector<160x4xf32>
    %c0_142 = arith.constant 0 : index
    %c0_143 = arith.constant 0 : index
    %135 = vector.load %arg7[%c0_142, %c0_143] : memref<1x4xf32, #tpu.memory_space<vmem>>, vector<1x4xf32>
    %136 = vector.broadcast %135 : vector<1x4xf32> to vector<160x4xf32>
    %137 = arith.mulf %134, %136 : vector<160x4xf32>
    %c0_144 = arith.constant 0 : index
    %c0_145 = arith.constant 0 : index
    %138 = vector.load %arg8[%c0_144, %c0_145] : memref<1x4xf32, #tpu.memory_space<vmem>>, vector<1x4xf32>
    %139 = vector.broadcast %138 : vector<1x4xf32> to vector<160x4xf32>
    %140 = arith.addf %137, %139 : vector<160x4xf32>
    %cst_146 = arith.constant 0.000000e+00 : f32
    %141 = vector.broadcast %cst_146 : f32 to vector<160x4xf32>
    %142 = arith.maximumf %140, %141 : vector<160x4xf32>
    %143 = vector.shape_cast %142 : vector<160x4xf32> to vector<10x16x4xf32>
    %c2_i32 = arith.constant 2 : i32
    %c0_i32 = arith.constant 0 : i32
    %144 = arith.cmpi eq, %c2_i32, %c0_i32 : i32
    %c1_i32 = arith.constant 1 : i32
    %145 = arith.select %144, %c1_i32, %c2_i32 : i32
    %146 = arith.remsi %arg0, %145 : i32
    %c0_i32_147 = arith.constant 0 : i32
    %147 = arith.cmpi ne, %146, %c0_i32_147 : i32
    %c0_i32_148 = arith.constant 0 : i32
    %148 = arith.cmpi slt, %146, %c0_i32_148 : i32
    %c0_i32_149 = arith.constant 0 : i32
    %149 = arith.cmpi slt, %145, %c0_i32_149 : i32
    %150 = arith.xori %148, %149 : i1
    %151 = arith.andi %150, %147 : i1
    %152 = arith.addi %146, %145 : i32
    %153 = arith.select %151, %152, %146 : i32
    %c8_i32 = arith.constant 8 : i32
    %154 = arith.muli %153, %c8_i32 : i32
    %c1_i32_150 = arith.constant 1 : i32
    %155 = arith.subi %154, %c1_i32_150 : i32
    %156 = tpu.iota {dimensions = array<i32: 0>} : vector<10x16x4xi32>
    %157 = vector.broadcast %155 : i32 to vector<10x16x4xi32>
    %158 = arith.addi %157, %156 : vector<10x16x4xi32>
    %c0_i32_151 = arith.constant 0 : i32
    %159 = vector.broadcast %c0_i32_151 : i32 to vector<10x16x4xi32>
    %160 = arith.cmpi sge, %158, %159 : vector<10x16x4xi32>
    %c16_i32 = arith.constant 16 : i32
    %161 = vector.broadcast %c16_i32 : i32 to vector<10x16x4xi32>
    %162 = arith.cmpi slt, %158, %161 : vector<10x16x4xi32>
    %163 = arith.andi %160, %162 : vector<10x16x4xi1>
    %cst_152 = arith.constant 0.000000e+00 : f32
    %164 = vector.broadcast %cst_152 : f32 to vector<10x16x4xf32>
    %165 = arith.select %163, %143, %164 : vector<10x16x4xi1>, vector<10x16x4xf32>
    %cst_153 = arith.constant 0.000000e+00 : f32
    %166 = vector.broadcast %cst_153 : f32 to vector<10x18x4xf32>
    %c0_154 = arith.constant 0 : index
    %c0_155 = arith.constant 0 : index
    %c0_156 = arith.constant 0 : index
    %167 = vector.load %arg14[%c0_154, %c0_155, %c0_156] : memref<10x18x4xf32, #tpu.memory_space<vmem>>, vector<10x18x4xf32>
    tpu.vector_store %arg14[%c0_154, %c0_155, %c0_156], %166 {strides = array<i32>} : memref<10x18x4xf32, #tpu.memory_space<vmem>>, vector<10x18x4xf32>,
    %c0_157 = arith.constant 0 : index
    %c1_158 = arith.constant 1 : index
    %c0_159 = arith.constant 0 : index
    %168 = vector.load %arg14[%c0_157, %c1_158, %c0_159] : memref<10x18x4xf32, #tpu.memory_space<vmem>>, vector<10x16x4xf32>
    tpu.vector_store %arg14[%c0_157, %c1_158, %c0_159], %165 {strides = array<i32>} : memref<10x18x4xf32, #tpu.memory_space<vmem>>, vector<10x16x4xf32>,
    %cst_160 = arith.constant 0.000000e+00 : f32
    %169 = vector.broadcast %cst_160 : f32 to vector<8x16x4xf32>
    %c0_161 = arith.constant 0 : index
    %c0_162 = arith.constant 0 : index
    %c0_163 = arith.constant 0 : index
    %170 = vector.load %arg14[%c0_161, %c0_162, %c0_163] : memref<10x18x4xf32, #tpu.memory_space<vmem>>, vector<8x16x4xf32>
    %c0_164 = arith.constant 0 : index
    %c0_165 = arith.constant 0 : index
    %c0_166 = arith.constant 0 : index
    %c0_167 = arith.constant 0 : index
    %171 = vector.load %arg9[%c0_164, %c0_165, %c0_166, %c0_167] : memref<9x1x1x4xf32, #tpu.memory_space<vmem>>, vector<1x1x1x4xf32>
    %172 = vector.shape_cast %171 : vector<1x1x1x4xf32> to vector<1x1x4xf32>
    %173 = vector.broadcast %172 : vector<1x1x4xf32> to vector<8x16x4xf32>
    %174 = arith.mulf %170, %173 : vector<8x16x4xf32>
    %175 = arith.addf %169, %174 : vector<8x16x4xf32>
    %c0_168 = arith.constant 0 : index
    %c1_169 = arith.constant 1 : index
    %c0_170 = arith.constant 0 : index
    %176 = vector.load %arg14[%c0_168, %c1_169, %c0_170] : memref<10x18x4xf32, #tpu.memory_space<vmem>>, vector<8x16x4xf32>
    %c1_171 = arith.constant 1 : index
    %c0_172 = arith.constant 0 : index
    %c0_173 = arith.constant 0 : index
    %c0_174 = arith.constant 0 : index
    %177 = vector.load %arg9[%c1_171, %c0_172, %c0_173, %c0_174] : memref<9x1x1x4xf32, #tpu.memory_space<vmem>>, vector<1x1x1x4xf32>
    %178 = vector.shape_cast %177 : vector<1x1x1x4xf32> to vector<1x1x4xf32>
    %179 = vector.broadcast %178 : vector<1x1x4xf32> to vector<8x16x4xf32>
    %180 = arith.mulf %176, %179 : vector<8x16x4xf32>
    %181 = arith.addf %175, %180 : vector<8x16x4xf32>
    %c0_175 = arith.constant 0 : index
    %c2_176 = arith.constant 2 : index
    %c0_177 = arith.constant 0 : index
    %182 = vector.load %arg14[%c0_175, %c2_176, %c0_177] : memref<10x18x4xf32, #tpu.memory_space<vmem>>, vector<8x16x4xf32>
    %c2_178 = arith.constant 2 : index
    %c0_179 = arith.constant 0 : index
    %c0_180 = arith.constant 0 : index
    %c0_181 = arith.constant 0 : index
    %183 = vector.load %arg9[%c2_178, %c0_179, %c0_180, %c0_181] : memref<9x1x1x4xf32, #tpu.memory_space<vmem>>, vector<1x1x1x4xf32>
    %184 = vector.shape_cast %183 : vector<1x1x1x4xf32> to vector<1x1x4xf32>
    %185 = vector.broadcast %184 : vector<1x1x4xf32> to vector<8x16x4xf32>
    %186 = arith.mulf %182, %185 : vector<8x16x4xf32>
    %187 = arith.addf %181, %186 : vector<8x16x4xf32>
    %c1_182 = arith.constant 1 : index
    %c0_183 = arith.constant 0 : index
    %c0_184 = arith.constant 0 : index
    %188 = vector.load %arg14[%c1_182, %c0_183, %c0_184] : memref<10x18x4xf32, #tpu.memory_space<vmem>>, vector<8x16x4xf32>
    %c3_185 = arith.constant 3 : index
    %c0_186 = arith.constant 0 : index
    %c0_187 = arith.constant 0 : index
    %c0_188 = arith.constant 0 : index
    %189 = vector.load %arg9[%c3_185, %c0_186, %c0_187, %c0_188] : memref<9x1x1x4xf32, #tpu.memory_space<vmem>>, vector<1x1x1x4xf32>
    %190 = vector.shape_cast %189 : vector<1x1x1x4xf32> to vector<1x1x4xf32>
    %191 = vector.broadcast %190 : vector<1x1x4xf32> to vector<8x16x4xf32>
    %192 = arith.mulf %188, %191 : vector<8x16x4xf32>
    %193 = arith.addf %187, %192 : vector<8x16x4xf32>
    %c1_189 = arith.constant 1 : index
    %c1_190 = arith.constant 1 : index
    %c0_191 = arith.constant 0 : index
    %194 = vector.load %arg14[%c1_189, %c1_190, %c0_191] : memref<10x18x4xf32, #tpu.memory_space<vmem>>, vector<8x16x4xf32>
    %c4_192 = arith.constant 4 : index
    %c0_193 = arith.constant 0 : index
    %c0_194 = arith.constant 0 : index
    %c0_195 = arith.constant 0 : index
    %195 = vector.load %arg9[%c4_192, %c0_193, %c0_194, %c0_195] : memref<9x1x1x4xf32, #tpu.memory_space<vmem>>, vector<1x1x1x4xf32>
    %196 = vector.shape_cast %195 : vector<1x1x1x4xf32> to vector<1x1x4xf32>
    %197 = vector.broadcast %196 : vector<1x1x4xf32> to vector<8x16x4xf32>
    %198 = arith.mulf %194, %197 : vector<8x16x4xf32>
    %199 = arith.addf %193, %198 : vector<8x16x4xf32>
    %c1_196 = arith.constant 1 : index
    %c2_197 = arith.constant 2 : index
    %c0_198 = arith.constant 0 : index
    %200 = vector.load %arg14[%c1_196, %c2_197, %c0_198] : memref<10x18x4xf32, #tpu.memory_space<vmem>>, vector<8x16x4xf32>
    %c5_199 = arith.constant 5 : index
    %c0_200 = arith.constant 0 : index
    %c0_201 = arith.constant 0 : index
    %c0_202 = arith.constant 0 : index
    %201 = vector.load %arg9[%c5_199, %c0_200, %c0_201, %c0_202] : memref<9x1x1x4xf32, #tpu.memory_space<vmem>>, vector<1x1x1x4xf32>
    %202 = vector.shape_cast %201 : vector<1x1x1x4xf32> to vector<1x1x4xf32>
    %203 = vector.broadcast %202 : vector<1x1x4xf32> to vector<8x16x4xf32>
    %204 = arith.mulf %200, %203 : vector<8x16x4xf32>
    %205 = arith.addf %199, %204 : vector<8x16x4xf32>
    %c2_203 = arith.constant 2 : index
    %c0_204 = arith.constant 0 : index
    %c0_205 = arith.constant 0 : index
    %206 = vector.load %arg14[%c2_203, %c0_204, %c0_205] : memref<10x18x4xf32, #tpu.memory_space<vmem>>, vector<8x16x4xf32>
    %c6_206 = arith.constant 6 : index
    %c0_207 = arith.constant 0 : index
    %c0_208 = arith.constant 0 : index
    %c0_209 = arith.constant 0 : index
    %207 = vector.load %arg9[%c6_206, %c0_207, %c0_208, %c0_209] : memref<9x1x1x4xf32, #tpu.memory_space<vmem>>, vector<1x1x1x4xf32>
    %208 = vector.shape_cast %207 : vector<1x1x1x4xf32> to vector<1x1x4xf32>
    %209 = vector.broadcast %208 : vector<1x1x4xf32> to vector<8x16x4xf32>
    %210 = arith.mulf %206, %209 : vector<8x16x4xf32>
    %211 = arith.addf %205, %210 : vector<8x16x4xf32>
    %c2_210 = arith.constant 2 : index
    %c1_211 = arith.constant 1 : index
    %c0_212 = arith.constant 0 : index
    %212 = vector.load %arg14[%c2_210, %c1_211, %c0_212] : memref<10x18x4xf32, #tpu.memory_space<vmem>>, vector<8x16x4xf32>
    %c7_213 = arith.constant 7 : index
    %c0_214 = arith.constant 0 : index
    %c0_215 = arith.constant 0 : index
    %c0_216 = arith.constant 0 : index
    %213 = vector.load %arg9[%c7_213, %c0_214, %c0_215, %c0_216] : memref<9x1x1x4xf32, #tpu.memory_space<vmem>>, vector<1x1x1x4xf32>
    %214 = vector.shape_cast %213 : vector<1x1x1x4xf32> to vector<1x1x4xf32>
    %215 = vector.broadcast %214 : vector<1x1x4xf32> to vector<8x16x4xf32>
    %216 = arith.mulf %212, %215 : vector<8x16x4xf32>
    %217 = arith.addf %211, %216 : vector<8x16x4xf32>
    %c2_217 = arith.constant 2 : index
    %c2_218 = arith.constant 2 : index
    %c0_219 = arith.constant 0 : index
    %218 = vector.load %arg14[%c2_217, %c2_218, %c0_219] : memref<10x18x4xf32, #tpu.memory_space<vmem>>, vector<8x16x4xf32>
    %c8_220 = arith.constant 8 : index
    %c0_221 = arith.constant 0 : index
    %c0_222 = arith.constant 0 : index
    %c0_223 = arith.constant 0 : index
    %219 = vector.load %arg9[%c8_220, %c0_221, %c0_222, %c0_223] : memref<9x1x1x4xf32, #tpu.memory_space<vmem>>, vector<1x1x1x4xf32>
    %220 = vector.shape_cast %219 : vector<1x1x1x4xf32> to vector<1x1x4xf32>
    %221 = vector.broadcast %220 : vector<1x1x4xf32> to vector<8x16x4xf32>
    %222 = arith.mulf %218, %221 : vector<8x16x4xf32>
    %223 = arith.addf %217, %222 : vector<8x16x4xf32>
    %224 = vector.shape_cast %223 : vector<8x16x4xf32> to vector<128x4xf32>
    %c0_224 = arith.constant 0 : index
    %c0_225 = arith.constant 0 : index
    %225 = vector.load %arg10[%c0_224, %c0_225] : memref<4x4xf32, #tpu.memory_space<vmem>>, vector<4x4xf32>
    %cst_226 = arith.constant dense<0.000000e+00> : vector<128x4xf32>
    %226 = tpu.matmul %224, %225, %cst_226 {dimension_numbers = #tpu.dot_dimension_numbers<[1], [0], [0], [1], [0, 0, 1, 1], [], []>} : vector<128x4xf32>, vector<4x4xf32>, vector<128x4xf32> -> vector<128x4xf32>
    %c0_227 = arith.constant 0 : index
    %c0_228 = arith.constant 0 : index
    %227 = vector.load %arg11[%c0_227, %c0_228] : memref<1x4xf32, #tpu.memory_space<vmem>>, vector<1x4xf32>
    %228 = vector.broadcast %227 : vector<1x4xf32> to vector<128x4xf32>
    %229 = arith.mulf %226, %228 : vector<128x4xf32>
    %c0_229 = arith.constant 0 : index
    %c0_230 = arith.constant 0 : index
    %230 = vector.load %arg12[%c0_229, %c0_230] : memref<1x4xf32, #tpu.memory_space<vmem>>, vector<1x4xf32>
    %231 = vector.broadcast %230 : vector<1x4xf32> to vector<128x4xf32>
    %232 = arith.addf %229, %231 : vector<128x4xf32>
    %cst_231 = arith.constant 0.000000e+00 : f32
    %233 = vector.broadcast %cst_231 : f32 to vector<128x4xf32>
    %234 = arith.maximumf %232, %233 : vector<128x4xf32>
    %235 = vector.shape_cast %234 : vector<128x4xf32> to vector<1x8x16x4xf32>
    %c0_232 = arith.constant 0 : index
    %c0_233 = arith.constant 0 : index
    %c0_234 = arith.constant 0 : index
    %c0_235 = arith.constant 0 : index
    %236 = vector.load %arg13[%c0_232, %c0_233, %c0_234, %c0_235] : memref<1x8x16x4xf32, #tpu.memory_space<vmem>>, vector<1x8x16x4xf32>
    tpu.vector_store %arg13[%c0_232, %c0_233, %c0_234, %c0_235], %235 {strides = array<i32>} : memref<1x8x16x4xf32, #tpu.memory_space<vmem>>, vector<1x8x16x4xf32>,
    return
  }
  func.func @transform_0(%arg0: i32) -> (i32, i32, i32, i32) {
    %c0_i32 = arith.constant 0 : i32
    %c0_i32_0 = arith.constant 0 : i32
    %c0_i32_1 = arith.constant 0 : i32
    %c0_i32_2 = arith.constant 0 : i32
    return %arg0, %c0_i32, %c0_i32_0, %c0_i32_1 : i32, i32, i32, i32
  }
  func.func @transform_1(%arg0: i32) -> (i32, i32, i32, i32) {
    %c0_i32 = arith.constant 0 : i32
    %c0_i32_0 = arith.constant 0 : i32
    %c0_i32_1 = arith.constant 0 : i32
    %c0_i32_2 = arith.constant 0 : i32
    return %arg0, %c0_i32, %c0_i32_0, %c0_i32_1 : i32, i32, i32, i32
  }
  func.func @transform_2(%arg0: i32) -> (i32, i32, i32, i32) {
    %c0_i32 = arith.constant 0 : i32
    %c0_i32_0 = arith.constant 0 : i32
    %c0_i32_1 = arith.constant 0 : i32
    %c0_i32_2 = arith.constant 0 : i32
    %c0_i32_3 = arith.constant 0 : i32
    return %c0_i32, %c0_i32_0, %c0_i32_1, %c0_i32_2 : i32, i32, i32, i32
  }
  func.func @transform_3(%arg0: i32) -> (i32, i32, i32, i32) {
    %c0_i32 = arith.constant 0 : i32
    %c0_i32_0 = arith.constant 0 : i32
    %c0_i32_1 = arith.constant 0 : i32
    %c0_i32_2 = arith.constant 0 : i32
    %c0_i32_3 = arith.constant 0 : i32
    return %c0_i32, %c0_i32_0, %c0_i32_1, %c0_i32_2 : i32, i32, i32, i32
  }
  func.func @transform_4(%arg0: i32) -> (i32, i32) {
    %c0_i32 = arith.constant 0 : i32
    %c0_i32_0 = arith.constant 0 : i32
    %c0_i32_1 = arith.constant 0 : i32
    return %c0_i32, %c0_i32_0 : i32, i32
  }
  func.func @transform_5(%arg0: i32) -> (i32, i32) {
    %c0_i32 = arith.constant 0 : i32
    %c0_i32_0 = arith.constant 0 : i32
    %c0_i32_1 = arith.constant 0 : i32
    return %c0_i32, %c0_i32_0 : i32, i32
  }
  func.func @transform_6(%arg0: i32) -> (i32, i32) {
    %c0_i32 = arith.constant 0 : i32
    %c0_i32_0 = arith.constant 0 : i32
    %c0_i32_1 = arith.constant 0 : i32
    return %c0_i32, %c0_i32_0 : i32, i32
  }
  func.func @transform_7(%arg0: i32) -> (i32, i32) {
    %c0_i32 = arith.constant 0 : i32
    %c0_i32_0 = arith.constant 0 : i32
    %c0_i32_1 = arith.constant 0 : i32
    return %c0_i32, %c0_i32_0 : i32, i32
  }
  func.func @transform_8(%arg0: i32) -> (i32, i32, i32, i32) {
    %c0_i32 = arith.constant 0 : i32
    %c0_i32_0 = arith.constant 0 : i32
    %c0_i32_1 = arith.constant 0 : i32
    %c0_i32_2 = arith.constant 0 : i32
    %c0_i32_3 = arith.constant 0 : i32
    return %c0_i32, %c0_i32_0, %c0_i32_1, %c0_i32_2 : i32, i32, i32, i32
  }
  func.func @transform_9(%arg0: i32) -> (i32, i32) {
    %c0_i32 = arith.constant 0 : i32
    %c0_i32_0 = arith.constant 0 : i32
    %c0_i32_1 = arith.constant 0 : i32
    return %c0_i32, %c0_i32_0 : i32, i32
  }
  func.func @transform_10(%arg0: i32) -> (i32, i32) {
    %c0_i32 = arith.constant 0 : i32
    %c0_i32_0 = arith.constant 0 : i32
    %c0_i32_1 = arith.constant 0 : i32
    return %c0_i32, %c0_i32_0 : i32, i32
  }
  func.func @transform_11(%arg0: i32) -> (i32, i32) {
    %c0_i32 = arith.constant 0 : i32
    %c0_i32_0 = arith.constant 0 : i32
    %c0_i32_1 = arith.constant 0 : i32
    return %c0_i32, %c0_i32_0 : i32, i32
  }
  func.func @transform_12(%arg0: i32) -> (i32, i32, i32, i32) {
    %c0_i32 = arith.constant 0 : i32
    %c0_i32_0 = arith.constant 0 : i32
    %c0_i32_1 = arith.constant 0 : i32
    %c0_i32_2 = arith.constant 0 : i32
    return %arg0, %c0_i32, %c0_i32_0, %c0_i32_1 : i32, i32, i32, i32
  }
}

</mosaic_0001>

<bundles_post_ra>
// kernel: upsample_block_forward.2
= control target key start
LH: loop header
LB: loop body
LE: loop exit
PB: predicated region body
PF: predicated region fallthrough
CT: control target
= control target key end

     0   :  { %s1160_s12 = smov 0   ;;  %s1439_s0 = inlined_call_operand.vmem [shape: f32[2,10,10,8], index: 0, kind: input, shape index: {}]   ;;  %s1440_s1 = inlined_call_operand.vmem [shape: f32[9,8,16], index: 1, kind: input, shape index: {}]   ;;  %s1441_s2 = inlined_call_operand.vmem [shape: f32[1,16], index: 2, kind: input, shape index: {}]   ;;  %s1442_s3 = inlined_call_operand.vmem [shape: f32[2,64,16], index: 3, kind: output, shape index: {}]  }
   0x1 LB: > { %s980_s13 = sadd.s32 4294967295, %s1138_s12   ;;  %p984_p0 = scmp.ge.s32.totalorder %s1138_s12, 1  ;;  %s1138_s12 = sphi %s1160_s12, %s13_s12  }
   0x2   : > { %p137_p1 = scmp.lt.s32.totalorder %s1138_s12, 3 }
   0x4   : > { %p138_p2 = pnand %p984_p0, %p137_p1 }
   0x5   : > { %p161_p3 = scmp.lt.s32.totalorder (!%p138_p2), %s980_s13, 1 }
   0x6   : > { %141 = sbr.rel (%p138_p2) target bundleno = 294 (0x126), region = 32 }
   0xb   : > { %v988_v0 = vld [vmem:[%s1440_s1 + $0x8] sm:$0xff]  ;;  %v1005_v1 = vld [vmem:[%s1440_s1 + $0x10] sm:$0xff]  ;;  %v1022_v2 = vld [vmem:[%s1440_s1 + $0x18] sm:$0xff]  ;;  %s1444_s13 = smov (!%p161_p3, %s980_s13), 1  ;;  %vm190_vm0 = vcmask 64512   ;;  %vm916_vm1 = vcmask 130048  }
   0xc   : > { %1119 = vmatpush.msra.mxu1 %v988_v0  ;;  %1120 = vmatpush.msra.mxu2 %v988_v0  ;;  %v179_v3 = vld [vmem:[%s1440_s1] sm:$0xff]  ;;  %s1122_s24 = smul.u32 160, %s1444_s13  ;;  %v1073_v5 = vld [vmem:[%s1440_s1 + $0x30] sm:$0xff]  ;;  %v1090_v6 = vld [vmem:[%s1440_s1 + $0x38] sm:$0xff]  ;;  %s1118_s9 = sshll.u32 %s1444_s13, 6 }
   0xd   : > { %1121 = vmatpush.msra.mxu3 %v988_v0  ;;  %v1039_v4 = vld [vmem:[%s1440_s1 + $0x20] sm:$0xff]  ;;  %230 = vmatpush.msra.mxu0 %v988_v0  ;;  %v1056_v11 = vld [vmem:[%s1440_s1 + $0x28] sm:$0xff]  ;;  %s1389_s16 = scalar_lea.vmem %s1442_s3, %s1118_s9 }
   0xe   : > { %370 = vmatpush.msrb.mxu2 %v1005_v1  ;;  %295 = vmatpush.msrb.mxu1 %v179_v3  ;;  %s1189_s27 = scalar_lea.vmem %s1439_s0, %s1122_s24  ;;  %v1107_v12 = vld [vmem:[%s1440_s1 + $0x40] sm:$0xff] }
   0xf   : > { %454 = vmatpush.msrb.mxu3 %v1022_v2  ;;  %537 = vmatpush.msrb.mxu0 %v1039_v4  ;;  %v1198_v7 = vld [vmem:[%s1189_s27 + $0x21] sm:$0xff]  ;;  %v1221_v13 = vld [vmem:[%s1189_s27 + $0x31] sm:$0xff] }
  0x10   : > { %v1201_v8 = vld [vmem:[%s1189_s27 + $0x41] sm:$0xff]  ;;  %991 = vmatmul.msk.f32.vlgmr.msra.gmra.mxu1 %vm190_vm0, %v1198_v7  ;;  %v1224_v14 = vld [vmem:[%s1189_s27 + $0x51] sm:$0xff] }
  0x11   : > { %v1204_v9 = vld [vmem:[%s1189_s27 + $0x61] sm:$0xff]  ;;  %993 = vmatmul.msk.f32.vlgmr.msra.gmra.mxu2 %vm190_vm0, %v1201_v8  ;;  %620 = vmatpush.msra.mxu1 %v1056_v11  ;;  %v1227_v15 = vld [vmem:[%s1189_s27 + $0x71] sm:$0xff] }
  0x12   : > { %v180_v10 = vld [vmem:[%s1189_s27 + $0x1] sm:$0xff]  ;;  %995 = vmatmul.msk.f32.vlgmr.msra.gmra.mxu3 %vm190_vm0, %v1204_v9  ;;  %704 = vmatpush.msra.mxu2 %v1073_v5  ;;  %v181_v16 = vld [vmem:[%s1189_s27 + $0x11] sm:$0xff] }
  0x13   : > { %989 = vmatmul.msk.f32.vlgmr.msra.gmra.mxu0 %vm190_vm0, %v180_v10  ;;  %787 = vmatpush.msra.mxu3 %v1090_v6  ;;  %v171_v17 = vld [vmem:[%s1189_s27] sm:$0xff]  ;;  %v1014_v19 = vld [vmem:[%s1189_s27 + $0x10] sm:$0xff] }
  0x14   : > { %870 = vmatpush.msra.mxu0 %v1107_v12  ;;  %v321_v18 = vld [vmem:[%s1189_s27 + $0x2] sm:$0xff]  ;;  %v322_v20 = vld [vmem:[%s1189_s27 + $0x12] sm:$0xff] }
  0x15   : > { %v1015_v21 = vld [vmem:[%s1189_s27 + $0x20] sm:$0xff]  ;;  %v1016_v23 = vld [vmem:[%s1189_s27 + $0x30] sm:$0xff] }
  0x16   : > { %v323_v22 = vld [vmem:[%s1189_s27 + $0x22] sm:$0xff]  ;;  %v324_v24 = vld [vmem:[%s1189_s27 + $0x32] sm:$0xff] }
  0x17   : > { %v1017_v25 = vld [vmem:[%s1189_s27 + $0x40] sm:$0xff]  ;;  %v1018_v27 = vld [vmem:[%s1189_s27 + $0x50] sm:$0xff] }
  0x18   : > { %992 = vmatmul.msk.f32.gmra.mxu1 %vm190_vm0, %v1221_v13  ;;  %v325_v26 = vld [vmem:[%s1189_s27 + $0x42] sm:$0xff]  ;;  %v326_v28 = vld [vmem:[%s1189_s27 + $0x52] sm:$0xff] }
  0x19   : > { %994 = vmatmul.msk.f32.gmra.mxu2 %vm190_vm0, %v1224_v14  ;;  %v1019_v29 = vld [vmem:[%s1189_s27 + $0x60] sm:$0xff]  ;;  %v1020_v31 = vld [vmem:[%s1189_s27 + $0x70] sm:$0xff] }
  0x1a   : > { %996 = vmatmul.msk.f32.gmra.mxu3 %vm190_vm0, %v1227_v15  ;;  %v327_v30 = vld [vmem:[%s1189_s27 + $0x62] sm:$0xff]  ;;  %v328_v32 = vld [vmem:[%s1189_s27 + $0x72] sm:$0xff] }
  0x1b   : > { %990 = vmatmul.msk.f32.gmra.mxu0 %vm190_vm0, %v181_v16  ;;  %v1021_v33 = vld [vmem:[%s1189_s27 + $0x80] sm:$0xff]  ;;  %v1072_v41 = vld [vmem:[%s1189_s27 + $0x90] sm:$0xff] }
  0x1c   : > { %v1038_v34 = vld [vmem:[%s1189_s27 + $0x81] sm:$0xff]  ;;  %v1089_v42 = vld [vmem:[%s1189_s27 + $0x91] sm:$0xff] }
  0x1d   : > { %v1055_v37 = vld [vmem:[%s1189_s27 + $0x82] sm:$0xff]  ;;  %v1106_v44 = vld [vmem:[%s1189_s27 + $0x92] sm:$0xff] }
  0x20   : > { %997 = vmatmul.msk.f32.vlgmr.msrb.gmra.mxu1 %vm190_vm0, %v171_v17 }
  0x21   : > { %1006 = vmatmul.msk.f32.vlgmr.msrb.gmra.mxu2 %vm190_vm0, %v321_v18 }
  0x22   : > { %1023 = vmatmul.msk.f32.vlgmr.msrb.gmra.mxu3 %vm190_vm0, %v1014_v19 }
  0x23   : > { %1040 = vmatmul.msk.f32.vlgmr.msrb.gmra.mxu0 %vm190_vm0, %v181_v16 }
  0x28   : > { %998 = vmatmul.msk.f32.gmra.mxu1 %vm190_vm0, %v1014_v19 }
  0x29   : > { %1007 = vmatmul.msk.f32.gmra.mxu2 %vm190_vm0, %v322_v20 }
  0x2a   : > { %1024 = vmatmul.msk.f32.gmra.mxu3 %vm190_vm0, %v1015_v21 }
  0x2b   : > { %1041 = vmatmul.msk.f32.gmra.mxu0 %vm190_vm0, %v1198_v7 }
  0x30   : > { %999 = vmatmul.msk.f32.gmra.mxu1 %vm190_vm0, %v1015_v21 }
  0x31   : > { %1008 = vmatmul.msk.f32.gmra.mxu2 %vm190_vm0, %v323_v22 }
  0x32   : > { %1025 = vmatmul.msk.f32.gmra.mxu3 %vm190_vm0, %v1016_v23 }
  0x33   : > { %1042 = vmatmul.msk.f32.gmra.mxu0 %vm190_vm0, %v1221_v13 }
  0x38   : > { %1000 = vmatmul.msk.f32.gmra.mxu1 %vm190_vm0, %v1016_v23 }
  0x39   : > { %1009 = vmatmul.msk.f32.gmra.mxu2 %vm190_vm0, %v324_v24 }
  0x3a   : > { %1026 = vmatmul.msk.f32.gmra.mxu3 %vm190_vm0, %v1017_v25 }
  0x3b   : > { %1043 = vmatmul.msk.f32.gmra.mxu0 %vm190_vm0, %v1201_v8 }
  0x40   : > { %1001 = vmatmul.msk.f32.gmra.mxu1 %vm190_vm0, %v1017_v25 }
  0x41   : > { %1010 = vmatmul.msk.f32.gmra.mxu2 %vm190_vm0, %v325_v26 }
  0x42   : > { %1027 = vmatmul.msk.f32.gmra.mxu3 %vm190_vm0, %v1018_v27 }
  0x43   : > { %1044 = vmatmul.msk.f32.gmra.mxu0 %vm190_vm0, %v1224_v14 }
  0x48   : > { %1002 = vmatmul.msk.f32.gmra.mxu1 %vm190_vm0, %v1018_v27 }
  0x49   : > { %1011 = vmatmul.msk.f32.gmra.mxu2 %vm190_vm0, %v326_v28 }
  0x4a   : > { %1028 = vmatmul.msk.f32.gmra.mxu3 %vm190_vm0, %v1019_v29 }
  0x4b   : > { %1045 = vmatmul.msk.f32.gmra.mxu0 %vm190_vm0, %v1204_v9 }
  0x50   : > { %1003 = vmatmul.msk.f32.gmra.mxu1 %vm190_vm0, %v1019_v29 }
  0x51   : > { %1012 = vmatmul.msk.f32.gmra.mxu2 %vm190_vm0, %v327_v30 }
  0x52   : > { %1029 = vmatmul.msk.f32.gmra.mxu3 %vm190_vm0, %v1020_v31 }
  0x53   : > { %1046 = vmatmul.msk.f32.gmra.mxu0 %vm190_vm0, %v1227_v15 }
  0x58   : > { %1004 = vmatmul.msk.f32.gmra.mxu1 %vm190_vm0, %v1020_v31 }
  0x59   : > { %1013 = vmatmul.msk.f32.gmra.mxu2 %vm190_vm0, %v328_v32 }
  0x5a   : > { %1030 = vmatmul.msk.f32.gmra.mxu3 %vm190_vm0, %v1021_v33 }
  0x5b   : > { %1047 = vmatmul.msk.f32.gmra.mxu0 %vm190_vm0, %v1038_v34 }
  0x60   : > { %1057 = vmatmul.msk.f32.vlgmr.msra.gmra.mxu1 %vm190_vm0, %v322_v20 }
  0x61   : > { %1074 = vmatmul.msk.f32.vlgmr.msra.gmra.mxu2 %vm190_vm0, %v1015_v21 }
  0x62   : > { %1091 = vmatmul.msk.f32.vlgmr.msra.gmra.mxu3 %vm190_vm0, %v1198_v7 }
  0x63   : > { %1108 = vmatmul.msk.f32.vlgmr.msra.gmra.mxu0 %vm190_vm0, %v323_v22 }
  0x68   : > { %1058 = vmatmul.msk.f32.gmra.mxu1 %vm190_vm0, %v323_v22 }
  0x69   : > { %1075 = vmatmul.msk.f32.gmra.mxu2 %vm190_vm0, %v1016_v23 }
  0x6a   : > { %1092 = vmatmul.msk.f32.gmra.mxu3 %vm190_vm0, %v1221_v13 }
  0x6b   : > { %1109 = vmatmul.msk.f32.gmra.mxu0 %vm190_vm0, %v324_v24 }
  0x70   : > { %1059 = vmatmul.msk.f32.gmra.mxu1 %vm190_vm0, %v324_v24 }
  0x71   : > { %1076 = vmatmul.msk.f32.gmra.mxu2 %vm190_vm0, %v1017_v25 }
  0x72   : > { %1093 = vmatmul.msk.f32.gmra.mxu3 %vm190_vm0, %v1201_v8 }
  0x73   : > { %1110 = vmatmul.msk.f32.gmra.mxu0 %vm190_vm0, %v325_v26 }
  0x78   : > { %1060 = vmatmul.msk.f32.gmra.mxu1 %vm190_vm0, %v325_v26 }
  0x79   : > { %1077 = vmatmul.msk.f32.gmra.mxu2 %vm190_vm0, %v1018_v27 }
  0x7a   : > { %1094 = vmatmul.msk.f32.gmra.mxu3 %vm190_vm0, %v1224_v14 }
  0x7b   : > { %1111 = vmatmul.msk.f32.gmra.mxu0 %vm190_vm0, %v326_v28 }
  0x80   : > { %1061 = vmatmul.msk.f32.gmra.mxu1 %vm190_vm0, %v326_v28 }
  0x81   : > { %1078 = vmatmul.msk.f32.gmra.mxu2 %vm190_vm0, %v1019_v29 }
  0x82   : > { %1095 = vmatmul.msk.f32.gmra.mxu3 %vm190_vm0, %v1204_v9 }
  0x83   : > { %1112 = vmatmul.msk.f32.gmra.mxu0 %vm190_vm0, %v327_v30 }
  0x88   : > { %1062 = vmatmul.msk.f32.gmra.mxu1 %vm190_vm0, %v327_v30 }
  0x89   : > { %1079 = vmatmul.msk.f32.gmra.mxu2 %vm190_vm0, %v1020_v31  ;;  %v1384_v31 = vld [vmem:[%s1441_s2] ss:$0 sm:$0xff] }
  0x8a   : > { %1096 = vmatmul.msk.f32.gmra.mxu3 %vm190_vm0, %v1227_v15 }
  0x8b   : > { %1113 = vmatmul.msk.f32.gmra.mxu0 %vm190_vm0, %v328_v32 }
  0x8d   : > { %v1323_v35 = vpop.f32.mrf.mxu1 }
  0x90   : > { %v232_v36 = vpop.f32.mrf.mxu0  ;;  %1063 = vmatmul.msk.f32.gmra.mxu1 %vm190_vm0, %v328_v32 }
  0x91   : > { %1080 = vmatmul.msk.f32.gmra.mxu2 %vm190_vm0, %v1021_v33 }
  0x92   : > { %1097 = vmatmul.msk.f32.gmra.mxu3 %vm190_vm0, %v1038_v34 }
  0x93   : > { %1114 = vmatmul.msk.f32.gmra.mxu0 %vm190_vm0, %v1055_v37 }
  0x94   : > { %v1330_v38 = vpop.f32.mrf.mxu2 }
  0x95   : > { %v1332_v39 = vpop.f32.mrf.mxu3  ;;  %v1334_v40 = vpop.f32.mrf.mxu1 }
  0x98   : > { %v235_v43 = vpop.f32.mrf.mxu0  ;;  %1064 = vmatmul.msk.f32.gmra.mxu1 %vm190_vm0, %v1055_v37 }
  0x99   : > { %1081 = vmatmul.msk.f32.gmra.mxu2 %vm190_vm0, %v1072_v41 }
  0x9a   : > { %1098 = vmatmul.msk.f32.gmra.mxu3 %vm190_vm0, %v1089_v42 }
  0x9b   : > { %1115 = vmatmul.msk.f32.gmra.mxu0 %vm190_vm0, %v1106_v44 }
  0x9c   : > { %v1343_v45 = vpop.f32.mrf.mxu2 }
  0x9d   : > { %v1345_v46 = vpop.f32.mrf.mxu3  ;;  %v297_v47 = vpop.f32.mrf.mxu1 }
  0x9e   : > { %v298_v12 = vadd.f32 %v297_v47, %v232_v36 }
  0xa0   : > { %v539_v48 = vpop.f32.mrf.mxu0 }
  0xa4   : > { %v372_v49 = vpop.f32.mrf.mxu2 }
  0xa5   : > { %v456_v50 = vpop.f32.mrf.mxu3  ;;  %v300_v51 = vpop.f32.mrf.mxu1  ;;  %v396_v14 = vadd.f32 %v372_v49, %v298_v12 }
  0xa6   : > { %v301_v19 = vadd.f32 %v300_v51, %v235_v43 }
  0xa7   : > { %v480_v16 = vadd.f32 %v456_v50, %v396_v14 }
  0xa8   : > { %v542_v52 = vpop.f32.mrf.mxu0 }
  0xa9   : > { %v563_v21 = vadd.f32 %v539_v48, %v480_v16 }
  0xac   : > { %v375_v53 = vpop.f32.mrf.mxu2 }
  0xad   : > { %v459_v54 = vpop.f32.mrf.mxu3  ;;  %v303_v55 = vpop.f32.mrf.mxu1  ;;  %v397_v22 = vadd.f32 %v375_v53, %v301_v19 }
  0xae   : > { %v304_v29 = vadd.f32 %v303_v55, %v1323_v35 }
  0xaf   : > { %v481_v25 = vadd.f32 %v459_v54, %v397_v22 }
  0xb0   : > { %v545_v56 = vpop.f32.mrf.mxu0 }
  0xb1   : > { %v564_v33 = vadd.f32 %v542_v52, %v481_v25 }
  0xb4   : > { %v378_v57 = vpop.f32.mrf.mxu2 }
  0xb5   : > { %v462_v58 = vpop.f32.mrf.mxu3  ;;  %v306_v59 = vpop.f32.mrf.mxu1  ;;  %v398_v34 = vadd.f32 %v378_v57, %v304_v29 }
  0xb6   : > { %v307_v48 = vadd.f32 %v306_v59, %v1334_v40 }
  0xb7   : > { %v482_v42 = vadd.f32 %v462_v58, %v398_v34 }
  0xb8   : > { %v1347_v60 = vpop.f32.mrf.mxu0 }
  0xb9   : > { %v565_v51 = vadd.f32 %v545_v56, %v482_v42 }
  0xbc   : > { %v381_v61 = vpop.f32.mrf.mxu2 }
  0xbd   : > { %v465_v62 = vpop.f32.mrf.mxu3  ;;  %v309_v63 = vpop.f32.mrf.mxu1  ;;  %v399_v52 = vadd.f32 %v381_v61, %v307_v48 }
  0xbf   : > { %v483_v12 = vadd.f32 %v465_v62, %v399_v52 }
  0xc0   : > { %v1349_v0 = vpop.f32.mrf.mxu0 }
  0xc1   : > { %v566_v59 = vadd.f32 %v1347_v60, %v483_v12 }
  0xc4   : > { %v1351_v1 = vpop.f32.mrf.mxu2 }
  0xc5   : > { %v1353_v2 = vpop.f32.mrf.mxu3  ;;  %v1355_v3 = vpop.f32.mrf.mxu1 }
  0xc8   : > { %v1357_v4 = vpop.f32.mrf.mxu0 }
  0xcc   : > { %v1359_v5 = vpop.f32.mrf.mxu2 }
  0xcd   : > { %v1361_v6 = vpop.f32.mrf.mxu3  ;;  %v1363_v7 = vpop.f32.mrf.mxu1 }
  0xd0   : > { %v1365_v8 = vpop.f32.mrf.mxu0 }
  0xd4   : > { %v1367_v9 = vpop.f32.mrf.mxu2 }
  0xd5   : > { %v1369_v10 = vpop.f32.mrf.mxu3  ;;  %v1371_v11 = vpop.f32.mrf.mxu1 }
  0xd8   : > { %v1373_v13 = vpop.f32.mrf.mxu0 }
  0xdc   : > { %v1375_v15 = vpop.f32.mrf.mxu2 }
  0xdd   : > { %v1377_v17 = vpop.f32.mrf.mxu3  ;;  %v622_v18 = vpop.f32.mrf.mxu1 }
  0xde   : > { %v646_v23 = vadd.f32 %v622_v18, %v563_v21  ;;  %v310_v18 = vadd.f32 %v309_v63, %v1330_v38  ;;  %v313_v38 = vadd.f32 %v1355_v3, %v1343_v45  ;;  %v316_v45 = vadd.f32 %v1363_v7, %v1332_v39 }
  0xdf   : > { %v319_v39 = vadd.f32 %v1371_v11, %v1345_v46 }
  0xe0   : > { %v872_v20 = vpop.f32.mrf.mxu0  ;;  %v400_v56 = vadd.f32 %v1351_v1, %v310_v18 }
  0xe2   : > { %v484_v62 = vadd.f32 %v1353_v2, %v400_v56 }
  0xe4   : > { %v706_v24 = vpop.f32.mrf.mxu2  ;;  %v567_v1 = vadd.f32 %v1349_v0, %v484_v62 }
  0xe5   : > { %v730_v26 = vadd.f32 %v706_v24, %v646_v23  ;;  %v789_v27 = vpop.f32.mrf.mxu3  ;;  %v625_v28 = vpop.f32.mrf.mxu1 }
  0xe6   : > { %v647_v37 = vadd.f32 %v625_v28, %v564_v33 }
  0xe7   : > { %v813_v30 = vadd.f32 %v789_v27, %v730_v26  ;;  %v401_v26 = vadd.f32 %v1359_v5, %v313_v38  ;;  %v402_v5 = vadd.f32 %v1367_v9, %v316_v45  ;;  %v403_v9 = vadd.f32 %v1375_v15, %v319_v39 }
  0xe8   : > { %v875_v32 = vpop.f32.mrf.mxu0 }
  0xe9   : > { %v896_v36 = vadd.f32 %v872_v20, %v813_v30  ;;  %v485_v2 = vadd.f32 %v1361_v6, %v401_v26  ;;  %v486_v6 = vadd.f32 %v1369_v10, %v402_v5  ;;  %v487_v52 = vadd.f32 %v1377_v17, %v403_v9 }
  0xeb   : > { %v908_v35 = vadd.f32 %v1384_v31, %v896_v36  ;;  %v568_v0 = vadd.f32 %v1357_v4, %v485_v2  ;;  %v569_v7 = vadd.f32 %v1365_v8, %v486_v6  ;;  %v570_v8 = vadd.f32 %v1373_v13, %v487_v52 }
  0xec   : > { %v709_v41 = vpop.f32.mrf.mxu2 }
  0xed   : > { %917 = vst.msk [vmem:[%s1389_s16] sm:$0xff] %vm916_vm1, %v908_v35  ;;  %v731_v43 = vadd.f32 %v709_v41, %v647_v37  ;;  %v792_v44 = vpop.f32.mrf.mxu3  ;;  %v628_v47 = vpop.f32.mrf.mxu1 }
  0xee   : > { %v648_v54 = vadd.f32 %v628_v47, %v565_v51 }
  0xef   : > { %v814_v49 = vadd.f32 %v792_v44, %v731_v43 }
  0xf0   : > { %v878_v50 = vpop.f32.mrf.mxu0 }
  0xf1   : > { %v897_v53 = vadd.f32 %v875_v32, %v814_v49 }
  0xf3   : > { %v909_v55 = vadd.f32 %v1384_v31, %v897_v53 }
  0xf4   : > { %v712_v57 = vpop.f32.mrf.mxu2 }
  0xf5   : > { %918 = vst.msk [vmem:[%s1389_s16 + $0x8] sm:$0xff] %vm916_vm1, %v909_v55  ;;  %v732_v58 = vadd.f32 %v712_v57, %v648_v54  ;;  %v795_v14 = vpop.f32.mrf.mxu3  ;;  %v631_v16 = vpop.f32.mrf.mxu1 }
  0xf6   : > { %v649_v20 = vadd.f32 %v631_v16, %v566_v59 }
  0xf7   : > { %v815_v19 = vadd.f32 %v795_v14, %v732_v58 }
  0xf8   : > { %v881_v40 = vpop.f32.mrf.mxu0 }
  0xf9   : > { %v898_v61 = vadd.f32 %v878_v50, %v815_v19 }
  0xfb   : > { %v910_v21 = vadd.f32 %v1384_v31, %v898_v61 }
  0xfc   : > { %v715_v22 = vpop.f32.mrf.mxu2 }
  0xfd   : > { %919 = vst.msk [vmem:[%s1389_s16 + $0x10] sm:$0xff] %vm916_vm1, %v910_v21  ;;  %v733_v23 = vadd.f32 %v715_v22, %v649_v20  ;;  %v798_v24 = vpop.f32.mrf.mxu3  ;;  %v634_v25 = vpop.f32.mrf.mxu1 }
  0xfe   : > { %v650_v28 = vadd.f32 %v634_v25, %v567_v1 }
  0xff   : > { %v816_v63 = vadd.f32 %v798_v24, %v733_v23 }
 0x100   : > { %v884_v60 = vpop.f32.mrf.mxu0 }
 0x101   : > { %v899_v27 = vadd.f32 %v881_v40, %v816_v63 }
 0x103   : > { %v911_v29 = vadd.f32 %v1384_v31, %v899_v27 }
 0x104   : > { %v718_v30 = vpop.f32.mrf.mxu2 }
 0x105   : > { %920 = vst.msk [vmem:[%s1389_s16 + $0x18] sm:$0xff] %vm916_vm1, %v911_v29  ;;  %v734_v32 = vadd.f32 %v718_v30, %v650_v28  ;;  %v801_v33 = vpop.f32.mrf.mxu3  ;;  %v637_v34 = vpop.f32.mrf.mxu1 }
 0x106   : > { %v651_v35 = vadd.f32 %v637_v34, %v568_v0 }
 0x107   : > { %v817_v3 = vadd.f32 %v801_v33, %v734_v32 }
 0x108   : > { %v887_v37 = vpop.f32.mrf.mxu0 }
 0x109   : > { %v900_v36 = vadd.f32 %v884_v60, %v817_v3 }
 0x10b   : > { %v912_v41 = vadd.f32 %v1384_v31, %v900_v36 }
 0x10c   : > { %v721_v42 = vpop.f32.mrf.mxu2 }
 0x10d   : > { %921 = vst.msk [vmem:[%s1389_s16 + $0x20] sm:$0xff] %vm916_vm1, %v912_v41  ;;  %v735_v43 = vadd.f32 %v721_v42, %v651_v35  ;;  %v804_v44 = vpop.f32.mrf.mxu3  ;;  %v640_v47 = vpop.f32.mrf.mxu1 }
 0x10e   : > { %v652_v49 = vadd.f32 %v640_v47, %v569_v7 }
 0x10f   : > { %v818_v4 = vadd.f32 %v804_v44, %v735_v43 }
 0x110   : > { %v890_v10 = vpop.f32.mrf.mxu0 }
 0x111   : > { %v901_v48 = vadd.f32 %v887_v37, %v818_v4 }
 0x113   : > { %v913_v50 = vadd.f32 %v1384_v31, %v901_v48 }
 0x114   : > { %v724_v51 = vpop.f32.mrf.mxu2 }
 0x115   : > { %922 = vst.msk [vmem:[%s1389_s16 + $0x28] sm:$0xff] %vm916_vm1, %v913_v50  ;;  %v736_v53 = vadd.f32 %v724_v51, %v652_v49  ;;  %v807_v54 = vpop.f32.mrf.mxu3  ;;  %v643_v11 = vpop.f32.mrf.mxu1 }
 0x116   : > { %v653_v15 = vadd.f32 %v643_v11, %v570_v8 }
 0x117   : > { %v819_v46 = vadd.f32 %v807_v54, %v736_v53 }
 0x118   : > { %v893_v16 = vpop.f32.mrf.mxu0 }
 0x119   : > { %v902_v55 = vadd.f32 %v890_v10, %v819_v46 }
 0x11b   : > { %v914_v57 = vadd.f32 %v1384_v31, %v902_v55 }
 0x11c   : > { %v727_v12 = vpop.f32.mrf.mxu2 }
 0x11d   : > { %923 = vst.msk [vmem:[%s1389_s16 + $0x30] sm:$0xff] %vm916_vm1, %v914_v57  ;;  %v737_v58 = vadd.f32 %v727_v12, %v653_v15  ;;  %v810_v14 = vpop.f32.mrf.mxu3 }
 0x11f   : > { %v820_v17 = vadd.f32 %v810_v14, %v737_v58 }
 0x121   : > { %v903_v18 = vadd.f32 %v893_v16, %v820_v17 }
 0x123   : > { %v915_v19 = vadd.f32 %v1384_v31, %v903_v18 }
 0x125   : > { %924 = vst.msk [vmem:[%s1389_s16 + $0x38] sm:$0xff] %vm916_vm1, %v915_v19 }
 0x126 PF: > { %s13_s12 = sadd.s32 1, %s1138_s12  }
 0x127   : > { %p10_p4 = scmp.ge.s32.totalorder %s13_s12, 4  }
 0x129   :  { %12 = sbr.rel (!%p10_p4) target bundleno = 1 (0x1), region = 72 }

// kernel: upsample_block_forward.3
= control target key start
LH: loop header
LB: loop body
LE: loop exit
PB: predicated region body
PF: predicated region fallthrough
CT: control target
= control target key end

     0   :  { %s3293_s21 = smov 0   ;;  %s5349_s0 = inlined_call_operand.vmem [shape: f32[4,12,18,4], index: 0, kind: input, shape index: {}]   ;;  %s5350_s1 = inlined_call_operand.vmem [shape: f32[4,12,18,4], index: 1, kind: input, shape index: {}]   ;;  %s5351_s2 = inlined_call_operand.vmem [shape: f32[9,1,1,4], index: 2, kind: input, shape index: {}]   ;;  %s5352_s3 = inlined_call_operand.vmem [shape: f32[9,1,1,4], index: 3, kind: input, shape index: {}]   ;;  %s5353_s4 = inlined_call_operand.vmem [shape: f32[4,4], index: 4, kind: input, shape index: {}]   ;;  %s5354_s5 = inlined_call_operand.vmem [shape: f32[4,4], index: 5, kind: input, shape index: {}]   ;;  %s5355_s6 = inlined_call_operand.vmem [shape: f32[1,4], index: 6, kind: input, shape index: {}]   ;;  %s5356_s7 = inlined_call_operand.vmem [shape: f32[1,4], index: 7, kind: input, shape index: {}]   ;;  %s5357_s8 = inlined_call_operand.vmem [shape: f32[9,1,1,4], index: 8, kind: input, shape index: {}]   ;;  %s5358_s9 = inlined_call_operand.vmem [shape: f32[4,4], index: 9, kind: input, shape index: {}]   ;;  %s5359_s10 = inlined_call_operand.vmem [shape: f32[1,4], index: 10, kind: input, shape index: {}]   ;;  %s5360_s11 = inlined_call_operand.vmem [shape: f32[1,4], index: 11, kind: input, shape index: {}]   ;;  %s5361_s12 = inlined_call_operand.vmem [shape: f32[4,8,16,4], index: 12, kind: output, shape index: {}]  }
   0x1 LB: > { %s3299_s22 = sadd.s32 4294967295, %s3225_s21   ;;  %p2821_p0 = scmp.ge.s32.totalorder %s3225_s21, 1  ;;  %s3225_s21 = sphi %s3293_s21, %s22_s21  }
   0x2   : > { %p372_p1 = scmp.lt.s32.totalorder %s3225_s21, 5 }
   0x4   : > { %p373_p2 = pnand %p2821_p0, %p372_p1 }
   0x6   : > { %376 = sbr.rel (%p373_p2) target bundleno = 526 (0x20e), region = 68 }
   0xb   : > { %v1607_v0 = vld [vmem:[%s5354_s5] sm:$0xf]  ;;  %vm1669_vm0 = vcmask 1043456   ;;  %p419_p3 = scmp.lt.s32.totalorder %s3299_s22, 3  ;;  %v3341_v6 = vld [vmem:[%s5352_s3 + $0x4] ss:$0 sm:$0xff] }
   0xc   : > { %v1606_v1 = vld [vmem:[%s5353_s4] sm:$0xf]  ;;  %3082 = vmatpush.msk.msra.mxu0 %vm1669_vm0, %v1607_v0  ;;  %3157 = vmatpush.msk.msra.mxu3 %vm1669_vm0, %v1607_v0  ;;  %5449 = vst [vmem:[#allocation3_spill] sm:$0xff] %v3341_v6  ;;  %v3351_v7 = vld [vmem:[%s5352_s3 + $0x5] ss:$0 sm:$0xff]  ;;  %vm1608_vm1 = vcmask 31744  }
   0xd   : > { %3103 = vmatpush.msk.msra.mxu1 %vm1669_vm0, %v1606_v1  ;;  %s3314_s27 = scalar_select %p419_p3, %s3299_s22, 3  ;;  %v3319_v2 = vld [vmem:[%s5352_s3] ss:$0 sm:$0xff]  ;;  %v3325_v3 = vld [vmem:[%s5352_s3 + $0x1] ss:$0 sm:$0xff]  ;;  %5450 = vst [vmem:[#allocation4_spill] sm:$0xff] %v3351_v7 }
   0xe   : > { %3158 = vmatpush.msk.msrb.mxu3 %vm1669_vm0, %v1606_v1  ;;  %v3330_v4 = vld [vmem:[%s5352_s3 + $0x2] ss:$0 sm:$0xff]  ;;  %v3336_v5 = vld [vmem:[%s5352_s3 + $0x3] ss:$0 sm:$0xff]  ;;  %v3356_v8 = vld [vmem:[%s5352_s3 + $0x6] ss:$0 sm:$0xff] }
   0xf   : > { %s3160_s16 = smul.u32 288, %s3314_s27  ;;  %v3364_v12 = vld [vmem:[%s5352_s3 + $0x7] ss:$0 sm:$0xff]  ;;  %v3386_v25 = vld [vmem:[%s5352_s3 + $0x8] ss:$0 sm:$0xff]  ;;  %s1959_s24 = ssub.s32 0, %s3299_s22 }
  0x10   : > { %v3428_v51 = vld [vmem:[%s5351_s2] ss:$0 sm:$0xff]  ;;  %v3437_v55 = vld [vmem:[%s5351_s2 + $0x1] ss:$0 sm:$0xff]  ;;  %v3445_v62 = vld [vmem:[%s5351_s2 + $0x2] ss:$0 sm:$0xff]  ;;  %s4487_s26 = smin.u32 %s3299_s22, %s1959_s24 }
  0x11   : > { %s3346_s25 = scalar_lea.vmem %s5350_s1, %s3160_s16  ;;  %s3392_s20 = scalar_lea.vmem %s5349_s0, %s3160_s16  ;;  %vm2034_vm5 = vcmask 25600  }
  0x12   : > { %v498_v9 = vld [vmem:[%s3346_s25] sm:$0xff]  ;;  %v2851_v16 = vld [vmem:[%s3346_s25 + $0x18] sm:$0xff]  ;;  %v3373_v19 = vld [vmem:[%s3346_s25 + $0x30] sm:$0xff]  ;;  %s1961_s28 = sand.u32 1, %s4487_s26   ;;  %p1958_p4 = scmp.lt.s32.totalorder %s3299_s22, 0 }
  0x13   : > { %v627_v10 = vld [vmem:[%s3346_s25 + $0x1] sm:$0xff]  ;;  %v522_v13 = vmul.f32 %v3319_v2, %v498_v9  ;;  %v2893_v17 = vld [vmem:[%s3346_s25 + $0x19] sm:$0xff]  ;;  %5451 = vst [vmem:[#allocation5_spill] sm:$0xff] %v3373_v19  ;;  %v3376_v20 = vld [vmem:[%s3346_s25 + $0x31] sm:$0xff]  ;;  %v914_v23 = vmul.f32 %v3336_v5, %v2851_v16  ;;  %v524_v32 = vmul.f32 %v3319_v2, %v2851_v16  ;;  %v1306_v35 = vmul.f32 %v3356_v8, %v3373_v19  ;;  %s1962_s29 = ssub.s32 0, %s1961_s28 }
  0x14   : > { %v757_v11 = vld [vmem:[%s3346_s25 + $0x2] sm:$0xff]  ;;  %v652_v14 = vmul.f32 %v3325_v3, %v627_v10  ;;  %v2935_v18 = vld [vmem:[%s3346_s25 + $0x1a] sm:$0xff]  ;;  %5452 = vst [vmem:[#allocation6_spill] sm:$0xff] %v3376_v20  ;;  %v3379_v21 = vld [vmem:[%s3346_s25 + $0x32] sm:$0xff]  ;;  %v1044_v24 = vmul.f32 %v3341_v6, %v2893_v17  ;;  %v654_v33 = vmul.f32 %v3325_v3, %v2893_v17  ;;  %v1436_v41 = vmul.f32 %v3364_v12, %v3376_v20  ;;  %s5604_s29 = smov (!%p1958_p4, %s1962_s29), %s1961_s28 }
  0x15   : > { %v782_v15 = vmul.f32 %v3330_v4, %v757_v11  ;;  %5453 = vst [vmem:[#allocation7_spill] sm:$0xff] %v3379_v21  ;;  %v512_v26 = vld [vmem:[%s3346_s25 + $0xa8] sm:$0xff]  ;;  %v1174_v27 = vmul.f32 %v3351_v7, %v2935_v18  ;;  %v2865_v31 = vld [vmem:[%s3346_s25 + $0xc0] sm:$0xff]  ;;  %v3408_v40 = vld [vmem:[%s3346_s25 + $0xd8] sm:$0xff]  ;;  %v3414_v42 = vmul.f32 %v3386_v25, %v3379_v21  ;;  %v784_v44 = vmul.f32 %v3330_v4, %v2935_v18  ;;  %p3126_p5 = scmp.lt.s32.totalorder %s5604_s29, 0  ;;  %s1968_s22 = sadd.s32 2, %s5604_s29 }
  0x16   : > { %v672_v22 = vadd.f32 %v652_v14, %v522_v13  ;;  %v536_v28 = vmul.f32 %v3319_v2, %v512_v26  ;;  %v641_v29 = vld [vmem:[%s3346_s25 + $0xa9] sm:$0xff]  ;;  %v2907_v38 = vld [vmem:[%s3346_s25 + $0xc1] sm:$0xff]  ;;  %5454 = vst [vmem:[#allocation8_spill] sm:$0xff] %v3408_v40  ;;  %v916_v45 = vmul.f32 %v3336_v5, %v3373_v19  ;;  %v928_v48 = vmul.f32 %v3336_v5, %v2865_v31  ;;  %v3423_v50 = vld [vmem:[%s3346_s25 + $0xd9] sm:$0xff] }
  0x17   : > { %v771_v30 = vld [vmem:[%s3346_s25 + $0xaa] sm:$0xff]  ;;  %v666_v36 = vmul.f32 %v3325_v3, %v641_v29  ;;  %v2949_v39 = vld [vmem:[%s3346_s25 + $0xc2] sm:$0xff]  ;;  %v1058_v49 = vmul.f32 %v3341_v6, %v2907_v38  ;;  %5455 = vst [vmem:[#allocation9_spill] sm:$0xff] %v3423_v50  ;;  %v1320_v54 = vmul.f32 %v3356_v8, %v3408_v40  ;;  %v674_v57 = vadd.f32 %v654_v33, %v524_v32  ;;  %v3448_v63 = vld [vmem:[%s3392_s20 + $0x18] sm:$0xff]  ;;  %s5606_s22 = smov (!%p3126_p5, %s1968_s22), %s5604_s29  ;;  %s3156_s29 = sshll.u32 %s3314_s27, 7 }
  0x18   : > { %v802_v34 = vadd.f32 %v782_v15, %v672_v22  ;;  %v796_v37 = vmul.f32 %v3330_v4, %v771_v30  ;;  %v434_v43 = vld [vmem:[%s3392_s20] sm:$0xff]  ;;  %v1188_v53 = vmul.f32 %v3351_v7, %v2949_v39  ;;  %v538_v58 = vmul.f32 %v3319_v2, %v2865_v31  ;;  %s5282_s30 = scalar_lea.vmem %s5361_s12, %s3156_s29 }
  0x19   : > { %v686_v47 = vadd.f32 %v666_v36, %v536_v28  ;;  %v562_v52 = vld [vmem:[%s3392_s20 + $0x1] sm:$0xff]  ;;  %v458_v61 = vmul.f32 %v3428_v51, %v434_v43  ;;  %v668_v0 = vmul.f32 %v3325_v3, %v2907_v38  ;;  %v804_v11 = vadd.f32 %v784_v44, %v674_v57  ;;  %v3465_v18 = vld [vmem:[%s3392_s20 + $0x19] sm:$0xff] }
  0x1a   : > { %v934_v46 = vadd.f32 %v914_v23, %v802_v34  ;;  %v692_v56 = vld [vmem:[%s3392_s20 + $0x2] sm:$0xff]  ;;  %v3452_v1 = vld [vmem:[%s3346_s25 + $0xda] sm:$0xff]  ;;  %v587_v9 = vmul.f32 %v3437_v55, %v562_v52  ;;  %v1046_v13 = vmul.f32 %v3341_v6, %v3376_v20  ;;  %v798_v14 = vmul.f32 %v3330_v4, %v2949_v39  ;;  %v3487_v34 = vld [vmem:[%s3392_s20 + $0x30] sm:$0xff] }
  0x1b   : > { %v816_v60 = vadd.f32 %v796_v37, %v686_v47  ;;  %5456 = vst [vmem:[#allocation10_spill] sm:$0xff] %v3452_v1  ;;  %v3458_v10 = vld [vmem:[%s5351_s2 + $0x3] ss:$0 sm:$0xff]  ;;  %v717_v17 = vmul.f32 %v3445_v62, %v692_v56  ;;  %v3470_v22 = vld [vmem:[%s5351_s2 + $0x4] ss:$0 sm:$0xff]  ;;  %v688_v23 = vadd.f32 %v668_v0, %v538_v58  ;;  %v936_v30 = vadd.f32 %v916_v45, %v804_v11  ;;  %v3499_v39 = vld [vmem:[%s3392_s20 + $0x31] sm:$0xff] }
  0x1c   : > { %v1064_v59 = vadd.f32 %v1044_v24, %v934_v46  ;;  %v1450_v24 = vmul.f32 %v3364_v12, %v3423_v50  ;;  %v607_v26 = vadd.f32 %v587_v9, %v458_v61  ;;  %v848_v28 = vmul.f32 %v3458_v10, %v3448_v63  ;;  %v3482_v29 = vld [vmem:[%s5351_s2 + $0x5] ss:$0 sm:$0xff]  ;;  %v3492_v36 = vld [vmem:[%s5351_s2 + $0x6] ss:$0 sm:$0xff]  ;;  %v3504_v43 = vld [vmem:[%s5351_s2 + $0x7] ss:$0 sm:$0xff] }
  0x1d   : > { %v948_v16 = vadd.f32 %v928_v48, %v816_v60  ;;  %v1580_v33 = vmul.f32 %v3386_v25, %v3452_v1  ;;  %v1176_v37 = vmul.f32 %v3351_v7, %v3379_v21  ;;  %v818_v44 = vadd.f32 %v798_v14, %v688_v23  ;;  %v3511_v48 = vld [vmem:[%s5351_s2 + $0x8] ss:$0 sm:$0xff]  ;;  %v3524_v60 = vld [vmem:[%s3346_s25 + $0x20] sm:$0xff] }
  0x1e   : > { %v1194_v15 = vadd.f32 %v1174_v27, %v1064_v59  ;;  %v3477_v27 = vld [vmem:[%s3392_s20 + $0x1a] sm:$0xff]  ;;  %v737_v38 = vadd.f32 %v717_v17, %v607_v26  ;;  %v930_v45 = vmul.f32 %v3336_v5, %v3408_v40  ;;  %v1066_v52 = vadd.f32 %v1046_v13, %v936_v30  ;;  %v758_v59 = vld [vmem:[%s3346_s25 + $0xa] sm:$0xff]  ;;  %v3534_v13 = vld [vmem:[%s3392_s20 + $0x32] sm:$0xff] }
  0x1f   : > { %v1078_v32 = vadd.f32 %v1058_v49, %v948_v16  ;;  %v499_v49 = vld [vmem:[%s3346_s25 + $0x8] sm:$0xff]  ;;  %v3516_v56 = vmul.f32 %v3341_v6, %v3423_v50  ;;  %v1109_v58 = vmul.f32 %v3482_v29, %v3477_v27  ;;  %v3528_v61 = vmul.f32 %v3351_v7, %v3452_v1  ;;  %v513_v26 = vld [vmem:[%s3346_s25 + $0xb0] sm:$0xff]  ;;  %v3599_v1 = vld [vmem:[%s3392_s20 + $0x20] sm:$0xff] }
  0x20   : > { %v1326_v31 = vadd.f32 %v1306_v35, %v1194_v15  ;;  %v979_v35 = vmul.f32 %v3470_v22, %v3465_v18  ;;  %v868_v57 = vadd.f32 %v848_v28, %v737_v38  ;;  %v1240_v11 = vmul.f32 %v3492_v36, %v3487_v34  ;;  %v3538_v15 = vld [vmem:[%s3346_s25 + $0x21] sm:$0xff]  ;;  %v3556_v38 = vld [vmem:[%s3346_s25 + $0x39] sm:$0xff] }
  0x21   : > { %v1208_v47 = vadd.f32 %v1188_v53, %v1078_v32  ;;  %v628_v53 = vld [vmem:[%s3346_s25 + $0x9] sm:$0xff]  ;;  %v1371_v17 = vmul.f32 %v3504_v43, %v3499_v39  ;;  %v783_v23 = vmul.f32 %v3330_v4, %v758_v59  ;;  %v3550_v28 = vadd.f32 %v930_v45, %v818_v44  ;;  %v3567_v45 = vld [vmem:[%s3346_s25 + $0x3a] sm:$0xff] }
  0x22   : > { %v1456_v46 = vadd.f32 %v1436_v41, %v1326_v31  ;;  %v523_v41 = vmul.f32 %v3319_v2, %v499_v49  ;;  %v653_v14 = vmul.f32 %v3325_v3, %v628_v53  ;;  %v999_v16 = vadd.f32 %v979_v35, %v868_v57  ;;  %v642_v35 = vld [vmem:[%s3346_s25 + $0xb1] sm:$0xff]  ;;  %5457 = vst [vmem:[#allocation11_spill] sm:$0xff] %v3567_v45  ;;  %v3618_v19 = vld [vmem:[%s3392_s20 + $0x22] sm:$0xff] }
  0x23   : > { %v1340_v9 = vadd.f32 %v1320_v54, %v1208_v47  ;;  %v3547_v54 = vld [vmem:[%s3346_s25 + $0x38] sm:$0xff]  ;;  %v915_v32 = vmul.f32 %v3336_v5, %v3524_v60  ;;  %v3560_v47 = vadd.f32 %v1176_v37, %v1066_v52  ;;  %v1501_v44 = vmul.f32 %v3511_v48, %v3534_v13  ;;  %5462 = vst [vmem:[#allocation16_spill] sm:$0xff] %v3618_v19 }
  0x24   : > { %v1586_v0 = vadd.f32 %v3414_v42, %v1456_v46  ;;  %v3544_v42 = vld [vmem:[%s3346_s25 + $0x22] sm:$0xff]  ;;  %v673_v31 = vadd.f32 %v653_v14, %v523_v41  ;;  %v772_v46 = vld [vmem:[%s3346_s25 + $0xb2] sm:$0xff]  ;;  %v1129_v49 = vadd.f32 %v1109_v58, %v999_v16  ;;  %v537_v57 = vmul.f32 %v3319_v2, %v513_v26 }
  0x25   : > { %v1470_v30 = vadd.f32 %v1450_v24, %v1340_v9  ;;  %v1045_v24 = vmul.f32 %v3341_v6, %v3538_v15  ;;  %v3571_v41 = vld [vmem:[%s3346_s25 + $0xc8] sm:$0xff]  ;;  %v667_v37 = vmul.f32 %v3325_v3, %v642_v35  ;;  %v797_v52 = vmul.f32 %v3330_v4, %v772_v46 }
  0x26   : > { %3083 = vmatmul.msk.f32.vlgmr.msra.gmra.mxu0 %vm1608_vm1, %v1586_v0  ;;  %v803_v59 = vadd.f32 %v783_v23, %v673_v31  ;;  %v3576_v58 = vld [vmem:[%s3346_s25 + $0xc9] sm:$0xff]  ;;  %v1260_v9 = vadd.f32 %v1240_v11, %v1129_v49  ;;  %v1175_v14 = vmul.f32 %v3351_v7, %v3544_v42  ;;  %v1307_v16 = vmul.f32 %v3356_v8, %v3547_v54  ;;  %v3596_v49 = vld [vmem:[%s3346_s25 + $0xe0] sm:$0xff] }
  0x27   : > { %v1600_v53 = vadd.f32 %v1580_v33, %v1470_v30  ;;  %v435_v0 = vld [vmem:[%s3392_s20 + $0x8] sm:$0xff]  ;;  %v1437_v33 = vmul.f32 %v3364_v12, %v3556_v38  ;;  %v1567_v11 = vmul.f32 %v3386_v25, %v3567_v45  ;;  %v687_v35 = vadd.f32 %v667_v37, %v537_v57  ;;  %5458 = vst [vmem:[#allocation12_spill] sm:$0xff] %v3596_v49 }
  0x28   : > { %v3586_v23 = vld [vmem:[%s3346_s25 + $0xca] sm:$0xff]  ;;  %v935_v31 = vadd.f32 %v915_v32, %v803_v59  ;;  %v929_v46 = vmul.f32 %v3336_v5, %v3571_v41  ;;  %v1391_v50 = vadd.f32 %v1371_v17, %v1260_v9  ;;  %v1059_v40 = vmul.f32 %v3341_v6, %v3576_v58  ;;  %v3604_v32 = vld [vmem:[%s3346_s25 + $0xe1] sm:$0xff] }
  0x29   : > { %v563_v26 = vld [vmem:[%s3392_s20 + $0x9] sm:$0xff]  ;;  %3097 = vmatmul.msk.f32.vlgmr.msra.gmra.mxu3 %vm1608_vm1, %v1600_v53  ;;  %5459 = vst [vmem:[#allocation13_spill] sm:$0xff] %v3604_v32  ;;  %v459_v59 = vmul.f32 %v3428_v51, %v435_v0  ;;  %v817_v21 = vadd.f32 %v797_v52, %v687_v35  ;;  %v1189_v20 = vmul.f32 %v3351_v7, %v3586_v23  ;;  %v3615_v9 = vld [vmem:[%s3392_s20 + $0x21] sm:$0xff] }
  0x2a   : > { %v693_v30 = vld [vmem:[%s3392_s20 + $0xa] sm:$0xff]  ;;  %v3607_v53 = vld [vmem:[%s3346_s25 + $0xe2] sm:$0xff]  ;;  %v588_v57 = vmul.f32 %v3437_v55, %v563_v26  ;;  %v1065_v37 = vadd.f32 %v1045_v24, %v935_v31  ;;  %5461 = vst [vmem:[#allocation15_spill] sm:$0xff] %v3615_v9  ;;  %v1521_v6 = vadd.f32 %v1501_v44, %v1391_v50  ;;  %v1321_v0 = vmul.f32 %v3356_v8, %v3596_v49  ;;  %v3628_v26 = vld [vmem:[%s3392_s20 + $0x38] sm:$0xff] }
  0x2b   : > { %5460 = vst [vmem:[#allocation14_spill] sm:$0xff] %v3607_v53  ;;  %v718_v17 = vmul.f32 %v3445_v62, %v693_v30  ;;  %v3621_v45 = vld [vmem:[%s3346_s25 + $0x48] sm:$0xff]  ;;  %v849_v52 = vmul.f32 %v3458_v10, %v3599_v1  ;;  %v949_v30 = vadd.f32 %v929_v46, %v817_v21  ;;  %v1451_v35 = vmul.f32 %v3364_v12, %v3604_v32  ;;  %v3638_v44 = vld [vmem:[%s3346_s25 + $0xf0] sm:$0xff] }
  0x2c   : > { %5463 = vst [vmem:[#allocation17_spill] sm:$0xff] %v3621_v45  ;;  %v608_v24 = vadd.f32 %v588_v57, %v459_v59  ;;  %v1195_v31 = vadd.f32 %v1175_v14, %v1065_v37  ;;  %v1581_v7 = vmul.f32 %v3386_v25, %v3607_v53  ;;  %v3635_v50 = vld [vmem:[%s3346_s25 + $0x49] sm:$0xff]  ;;  %3104 = vmatmul.msk.f32.vlgmr.msra.gmra.mxu1 %vm1608_vm1, %v1521_v6  ;;  %v3648_v46 = vld [vmem:[%s3346_s25 + $0xf1] sm:$0xff] }
  0x2d   : > { %5464 = vst [vmem:[#allocation18_spill] sm:$0xff] %v3628_v26  ;;  %v980_v57 = vmul.f32 %v3470_v22, %v3615_v9  ;;  %v1110_v21 = vmul.f32 %v3482_v29, %v3618_v19  ;;  %v1308_v14 = vmul.f32 %v3356_v8, %v3621_v45  ;;  %v1079_v53 = vadd.f32 %v1059_v40, %v949_v30  ;;  %v3666_v30 = vld [vmem:[%s3346_s25 + $0x4a] sm:$0xff] }
  0x2e   : > { %5465 = vst [vmem:[#allocation19_spill] sm:$0xff] %v3635_v50  ;;  %v738_v59 = vadd.f32 %v718_v17, %v608_v24  ;;  %v1327_v37 = vadd.f32 %v1307_v16, %v1195_v31  ;;  %v1241_v6 = vmul.f32 %v3492_v36, %v3628_v26  ;;  %v3653_v17 = vld [vmem:[%s3392_s20 + $0x39] sm:$0xff]  ;;  %v1080_v24 = vadd.f32 %v3516_v56, %v3550_v28 }
  0x2f   : > { %5466 = vst [vmem:[#allocation20_spill] sm:$0xff] %v3648_v46  ;;  %v1328_v32 = vadd.f32 %v1308_v14, %v3560_v47  ;;  %v1438_v19 = vmul.f32 %v3364_v12, %v3635_v50  ;;  %v1322_v45 = vmul.f32 %v3356_v8, %v3638_v44  ;;  %v1209_v40 = vadd.f32 %v1189_v20, %v1079_v53  ;;  %v3663_v31 = vld [vmem:[%s3392_s20 + $0x3a] sm:$0xff] }
  0x30   : > { %5467 = vst [vmem:[#allocation21_spill] sm:$0xff] %v3653_v17  ;;  %v869_v9 = vadd.f32 %v849_v52, %v738_v59  ;;  %v1457_v16 = vadd.f32 %v1437_v33, %v1327_v37  ;;  %v1210_v26 = vadd.f32 %v3528_v61, %v1080_v24  ;;  %v1452_v56 = vmul.f32 %v3364_v12, %v3648_v46  ;;  %v3674_v52 = vld [vmem:[%s3346_s25 + $0xf2] sm:$0xff]  ;;  %v3687_v46 = vld [vmem:[%s3392_s20 + $0x48] sm:$0xff] }
  0x31   : > { %5468 = vst [vmem:[#allocation22_spill] sm:$0xff] %v3663_v31  ;;  %v1372_v47 = vmul.f32 %v3504_v43, %v3653_v17  ;;  %v460_v33 = vmul.f32 %v3428_v51, %v3448_v63  ;;  %v589_v20 = vmul.f32 %v3437_v55, %v3465_v18  ;;  %v1341_v59 = vadd.f32 %v1321_v0, %v1209_v40 }
  0x32   : > { %v1000_v28 = vadd.f32 %v980_v57, %v869_v9  ;;  %v1587_v53 = vadd.f32 %v1567_v11, %v1457_v16  ;;  %v1342_v14 = vadd.f32 %v1322_v45, %v1210_v26  ;;  %v719_v61 = vmul.f32 %v3445_v62, %v3477_v27  ;;  %v3693_v27 = vld [vmem:[%s3392_s20 + $0x49] sm:$0xff] }
  0x33   : > { %v1568_v9 = vmul.f32 %v3386_v25, %v3666_v30  ;;  %v609_v57 = vadd.f32 %v589_v20, %v460_v33  ;;  %v850_v24 = vmul.f32 %v3458_v10, %v3487_v34  ;;  %v1471_v63 = vadd.f32 %v1451_v35, %v1341_v59 }
  0x34   : > { %v1130_v37 = vadd.f32 %v1110_v21, %v1000_v28  ;;  %3084 = vmatmul.msk.f32.gmra.mxu0 %vm1608_vm1, %v1587_v53  ;;  %v1458_v18 = vadd.f32 %v1438_v19, %v1328_v32  ;;  %v1472_v11 = vadd.f32 %v1452_v56, %v1342_v14  ;;  %v1582_v45 = vmul.f32 %v3386_v25, %v3674_v52 }
  0x35   : > { %v1502_v26 = vmul.f32 %v3511_v48, %v3663_v31  ;;  %v739_v21 = vadd.f32 %v719_v61, %v609_v57  ;;  %v981_v16 = vmul.f32 %v3470_v22, %v3499_v39  ;;  %v1601_v40 = vadd.f32 %v1581_v7, %v1471_v63 }
  0x36   : > { %v1261_v0 = vadd.f32 %v1241_v6, %v1130_v37  ;;  %v1111_v28 = vmul.f32 %v3482_v29, %v3534_v13  ;;  %v525_v19 = vmul.f32 %v3319_v2, %v3524_v60  ;;  %v3704_v6 = vld [vmem:[%s3392_s20 + $0x4a] sm:$0xff]  ;;  %v655_v56 = vmul.f32 %v3325_v3, %v3538_v15 }
  0x37   : > { %v870_v35 = vadd.f32 %v850_v24, %v739_v21  ;;  %v785_v33 = vmul.f32 %v3330_v4, %v3544_v42  ;;  %3098 = vmatmul.msk.f32.gmra.mxu3 %vm1608_vm1, %v1601_v40  ;;  %v1588_v7 = vadd.f32 %v1568_v9, %v1458_v18  ;;  %v1602_v20 = vadd.f32 %v1582_v45, %v1472_v11  ;;  %v3718_v15 = vld [vmem:[%s3346_s25 + $0x50] sm:$0xff]  ;;  %v5473_v21 = vld [vmem:[#allocation4_spill] sm:$0xff] }
  0x38   : > { %v1392_v32 = vadd.f32 %v1372_v47, %v1261_v0  ;;  %v1242_v53 = vmul.f32 %v3492_v36, %v3687_v46  ;;  %v1373_v60 = vmul.f32 %v3504_v43, %v3693_v27  ;;  %v675_v14 = vadd.f32 %v655_v56, %v525_v19  ;;  %v3721_v37 = vld [vmem:[%s3346_s25 + $0x51] sm:$0xff]  ;;  %v3752_v56 = vld [vmem:[%s3346_s25 + $0xf9] sm:$0xff] }
  0x39   : > { %v1001_v59 = vadd.f32 %v981_v16, %v870_v35  ;;  %v917_v61 = vmul.f32 %v3336_v5, %v3547_v54  ;;  %5469 = vst [vmem:[#allocation23_spill] sm:$0xff] %v3721_v37  ;;  %v1503_v42 = vmul.f32 %v3511_v48, %v3704_v6  ;;  %v3726_v9 = vld [vmem:[%s3346_s25 + $0x52] sm:$0xff]  ;;  %v539_v57 = vmul.f32 %v3319_v2, %v3571_v41 }
  0x3a   : > { %v1522_v47 = vadd.f32 %v1502_v26, %v1392_v32  ;;  %5470 = vst [vmem:[#allocation24_spill] sm:$0xff] %v3726_v9  ;;  %v669_v24 = vmul.f32 %v3325_v3, %v3576_v58  ;;  %v799_v63 = vmul.f32 %v3330_v4, %v3586_v23  ;;  %v805_v11 = vadd.f32 %v785_v33, %v675_v14  ;;  %v5471_v45 = vld [vmem:[#allocation3_spill] sm:$0xff] }
  0x3b   : > { %v1131_v18 = vadd.f32 %v1111_v28, %v1001_v59  ;;  %v1047_v0 = vmul.f32 %v5471_v45, %v3556_v38  ;;  %v5472_v26 = vld [vmem:[#allocation11_spill] sm:$0xff]  ;;  %v1309_v41 = vmul.f32 %v3356_v8, %v3718_v15  ;;  %v1439_v58 = vmul.f32 %v3364_v12, %v3721_v37  ;;  %v3747_v28 = vld [vmem:[%s3346_s25 + $0xf8] sm:$0xff] }
  0x3c   : > { %3105 = vmatmul.msk.f32.gmra.mxu1 %vm1608_vm1, %v1522_v47  ;;  %v1177_v16 = vmul.f32 %v5473_v21, %v5472_v26  ;;  %3085 = vmatmul.msk.f32.gmra.mxu0 %vm1608_vm1, %v1588_v7  ;;  %v689_v40 = vadd.f32 %v669_v24, %v539_v57  ;;  %v931_v23 = vmul.f32 %v3336_v5, %v3596_v49  ;;  %v5476_v47 = vld [vmem:[#allocation13_spill] sm:$0xff]  ;;  %v5477_v14 = vld [vmem:[#allocation15_spill] sm:$0xff]  ;;  %v5478_v24 = vld [vmem:[#allocation16_spill] sm:$0xff] }
  0x3d   : > { %5474 = vst [vmem:[#allocation3_spill] sm:$0xff] %v3747_v28  ;;  %v1262_v19 = vadd.f32 %v1242_v53, %v1131_v18  ;;  %v937_v32 = vadd.f32 %v917_v61, %v805_v11  ;;  %v1569_v35 = vmul.f32 %v3386_v25, %v3726_v9  ;;  %v461_v33 = vmul.f32 %v3428_v51, %v3599_v1  ;;  %v5479_v11 = vld [vmem:[#allocation14_spill] sm:$0xff] }
  0x3e   : > { %5475 = vst [vmem:[#allocation11_spill] sm:$0xff] %v3752_v56  ;;  %v819_v7 = vadd.f32 %v799_v63, %v689_v40  ;;  %v1061_v59 = vmul.f32 %v5471_v45, %v5476_v47  ;;  %v590_v57 = vmul.f32 %v3437_v55, %v5477_v14  ;;  %v720_v53 = vmul.f32 %v3445_v62, %v5478_v24  ;;  %v3770_v40 = vld [vmem:[%s3346_s25 + $0xfa] sm:$0xff]  ;;  %v5480_v47 = vld [vmem:[#allocation18_spill] sm:$0xff] }
  0x3f   : > { %v1393_v61 = vadd.f32 %v1373_v60, %v1262_v19  ;;  %v1067_v18 = vadd.f32 %v1047_v0, %v937_v32  ;;  %v1191_v9 = vmul.f32 %v5473_v21, %v5479_v11  ;;  %v1323_v49 = vmul.f32 %v3356_v8, %v3747_v28  ;;  %3099 = vmatmul.msk.f32.gmra.mxu3 %vm1608_vm1, %v1602_v20  ;;  %v3775_v0 = vld [vmem:[%s3392_s20 + $0x50] sm:$0xff]  ;;  %v5482_v28 = vld [vmem:[#allocation5_spill] sm:$0xff] }
  0x40   : > { %v951_v1 = vadd.f32 %v931_v23, %v819_v7  ;;  %v1453_v63 = vmul.f32 %v3364_v12, %v3752_v56  ;;  %v610_v14 = vadd.f32 %v590_v57, %v461_v33  ;;  %v851_v60 = vmul.f32 %v3458_v10, %v5480_v47  ;;  %5481 = vst [vmem:[#allocation4_spill] sm:$0xff] %v3775_v0  ;;  %v3782_v11 = vld [vmem:[%s3392_s20 + $0x51] sm:$0xff]  ;;  %v5483_v56 = vld [vmem:[#allocation6_spill] sm:$0xff] }
  0x41   : > { %v1523_v19 = vadd.f32 %v1503_v42, %v1393_v61  ;;  %v1197_v32 = vadd.f32 %v1177_v16, %v1067_v18  ;;  %v982_v24 = vmul.f32 %v3470_v22, %v3653_v17  ;;  %v526_v20 = vmul.f32 %v3319_v2, %v5482_v28  ;;  %v5484_v57 = vld [vmem:[#allocation7_spill] sm:$0xff]  ;;  %v5485_v18 = vld [vmem:[#allocation17_spill] sm:$0xff] }
  0x42   : > { %v1081_v23 = vadd.f32 %v1061_v59, %v951_v1  ;;  %v740_v7 = vadd.f32 %v720_v53, %v610_v14  ;;  %v656_v33 = vmul.f32 %v3325_v3, %v5483_v56  ;;  %v786_v47 = vmul.f32 %v3330_v4, %v5484_v57 }
  0x43   : > { %v1329_v42 = vadd.f32 %v1309_v41, %v1197_v32  ;;  %v1583_v16 = vmul.f32 %v3386_v25, %v3770_v40  ;;  %v1112_v28 = vmul.f32 %v3482_v29, %v3663_v31  ;;  %v1243_v59 = vmul.f32 %v3492_v36, %v3775_v0  ;;  %v5486_v32 = vld [vmem:[#allocation8_spill] sm:$0xff] }
  0x44   : > { %3106 = vmatmul.msk.f32.gmra.mxu1 %vm1608_vm1, %v1523_v19  ;;  %v1211_v53 = vadd.f32 %v1191_v9, %v1081_v23  ;;  %v871_v56 = vadd.f32 %v851_v60, %v740_v7  ;;  %v676_v61 = vadd.f32 %v656_v33, %v526_v20  ;;  %v918_v1 = vmul.f32 %v3336_v5, %v5485_v18  ;;  %v3804_v0 = vld [vmem:[%s3392_s20 + $0x52] sm:$0xff]  ;;  %v3807_v60 = vld [vmem:[%s3346_s25 + $0x60] sm:$0xff] }
  0x45   : > { %v1459_v14 = vadd.f32 %v1439_v58, %v1329_v42  ;;  %v1374_v41 = vmul.f32 %v3504_v43, %v3782_v11  ;;  %v1048_v19 = vmul.f32 %v5471_v45, %v3635_v50  ;;  %v540_v57 = vmul.f32 %v3319_v2, %v5486_v32  ;;  %v3810_v20 = vld [vmem:[%s3346_s25 + $0x61] sm:$0xff] }
  0x46   : > { %v1343_v31 = vadd.f32 %v1323_v49, %v1211_v53  ;;  %v1002_v17 = vadd.f32 %v982_v24, %v871_v56  ;;  %v806_v9 = vadd.f32 %v786_v47, %v676_v61  ;;  %v5487_v58 = vld [vmem:[#allocation9_spill] sm:$0xff]  ;;  %v1178_v33 = vmul.f32 %v5473_v21, %v3666_v30  ;;  %v5488_v42 = vld [vmem:[#allocation10_spill] sm:$0xff] }
  0x47   : > { %v670_v23 = vmul.f32 %v3325_v3, %v5487_v58  ;;  %v1589_v7 = vadd.f32 %v1569_v35, %v1459_v14  ;;  %v800_v50 = vmul.f32 %v3330_v4, %v5488_v42  ;;  %v932_v49 = vmul.f32 %v3336_v5, %v3638_v44  ;;  %v3821_v56 = vld [vmem:[%s3346_s25 + $0x62] sm:$0xff]  ;;  %v5489_v58 = vld [vmem:[#allocation20_spill] sm:$0xff] }
  0x48   : > { %v1473_v47 = vadd.f32 %v1453_v63, %v1343_v31  ;;  %v1132_v24 = vadd.f32 %v1112_v28, %v1002_v17  ;;  %v938_v53 = vadd.f32 %v918_v1, %v806_v9  ;;  %v1504_v35 = vmul.f32 %v3511_v48, %v3804_v0  ;;  %v2995_v1 = vld [vmem:[%s3346_s25 + $0x108] sm:$0xff] }
  0x49   : > { %v690_v61 = vadd.f32 %v670_v23, %v540_v57  ;;  %3086 = vmatmul.msk.f32.gmra.mxu0 %vm1608_vm1, %v1589_v7  ;;  %v1310_v14 = vmul.f32 %v3356_v8, %v3807_v60  ;;  %v1440_v32 = vmul.f32 %v3364_v12, %v3810_v20  ;;  %v1062_v44 = vmul.f32 %v5471_v45, %v5489_v58  ;;  %v3037_v57 = vld [vmem:[%s3346_s25 + $0x109] sm:$0xff] }
  0x4a   : > { %v1603_v31 = vadd.f32 %v1583_v16, %v1473_v47  ;;  %v1263_v17 = vadd.f32 %v1243_v59, %v1132_v24  ;;  %v1068_v63 = vadd.f32 %v1048_v19, %v938_v53  ;;  %v1570_v9 = vmul.f32 %v3386_v25, %v3821_v56  ;;  %v3079_v24 = vld [vmem:[%s3346_s25 + $0x10a] sm:$0xff] }
  0x4b   : > { %v820_v28 = vadd.f32 %v800_v50, %v690_v61  ;;  %v462_v23 = vmul.f32 %v3428_v51, %v3487_v34  ;;  %v591_v7 = vmul.f32 %v3437_v55, %v3499_v39  ;;  %v721_v42 = vmul.f32 %v3445_v62, %v3534_v13 }
  0x4c   : > { %3100 = vmatmul.msk.f32.gmra.mxu3 %vm1608_vm1, %v1603_v31  ;;  %v1394_v16 = vadd.f32 %v1374_v41, %v1263_v17  ;;  %v1198_v50 = vadd.f32 %v1178_v33, %v1068_v63  ;;  %v1192_v19 = vmul.f32 %v5473_v21, %v3674_v52  ;;  %v1324_v47 = vmul.f32 %v3356_v8, %v2995_v1  ;;  %v3853_v33 = vld [vmem:[%s3392_s20 + $0x60] sm:$0xff] }
  0x4d   : > { %v952_v59 = vadd.f32 %v932_v49, %v820_v28  ;;  %v1454_v34 = vmul.f32 %v3364_v12, %v3037_v57  ;;  %v611_v53 = vadd.f32 %v591_v7, %v462_v23  ;;  %v852_v39 = vmul.f32 %v3458_v10, %v3687_v46  ;;  %v3856_v52 = vld [vmem:[%s3392_s20 + $0x61] sm:$0xff] }
  0x4e   : > { %v1524_v61 = vadd.f32 %v1504_v35, %v1394_v16  ;;  %v1330_v13 = vadd.f32 %v1310_v14, %v1198_v50  ;;  %v983_v41 = vmul.f32 %v3470_v22, %v3693_v27  ;;  %v527_v31 = vmul.f32 %v3319_v2, %v3547_v54  ;;  %v3871_v57 = vld [vmem:[%s3392_s20 + $0x62] sm:$0xff] }
  0x4f   : > { %v1082_v58 = vadd.f32 %v1062_v44, %v952_v59  ;;  %v741_v49 = vadd.f32 %v721_v42, %v611_v53  ;;  %v657_v17 = vmul.f32 %v3325_v3, %v3556_v38  ;;  %v787_v35 = vmul.f32 %v3330_v4, %v5472_v26  ;;  %v3880_v59 = vld [vmem:[%s3346_s25 + $0x68] sm:$0xff] }
  0x50   : > { %3107 = vmatmul.msk.f32.gmra.mxu1 %vm1608_vm1, %v1524_v61  ;;  %v1460_v14 = vadd.f32 %v1440_v32, %v1330_v13  ;;  %v1584_v63 = vmul.f32 %v3386_v25, %v3079_v24  ;;  %v1113_v28 = vmul.f32 %v3482_v29, %v3704_v6  ;;  %v1244_v54 = vmul.f32 %v3492_v36, %v3853_v33  ;;  %v5492_v24 = vld [vmem:[#allocation12_spill] sm:$0xff] }
  0x51   : > { %v1212_v44 = vadd.f32 %v1192_v19, %v1082_v58  ;;  %v872_v1 = vadd.f32 %v852_v39, %v741_v49  ;;  %v677_v38 = vadd.f32 %v657_v17, %v527_v31  ;;  %v919_v26 = vmul.f32 %v3336_v5, %v3718_v15  ;;  %5490 = vst [vmem:[#allocation15_spill] sm:$0xff] %v3880_v59  ;;  %v3883_v19 = vld [vmem:[%s3346_s25 + $0x69] sm:$0xff]  ;;  %v5493_v39 = vld [vmem:[#allocation13_spill] sm:$0xff]  ;;  %v5494_v13 = vld [vmem:[#allocation24_spill] sm:$0xff] }
  0x52   : > { %v1590_v23 = vadd.f32 %v1570_v9, %v1460_v14  ;;  %v1375_v32 = vmul.f32 %v3504_v43, %v3856_v52  ;;  %v1049_v42 = vmul.f32 %v5471_v45, %v3721_v37  ;;  %5491 = vst [vmem:[#allocation16_spill] sm:$0xff] %v3883_v19  ;;  %v541_v53 = vmul.f32 %v3319_v2, %v5492_v24 }
  0x53   : > { %v1344_v7 = vadd.f32 %v1324_v47, %v1212_v44  ;;  %v1003_v16 = vadd.f32 %v983_v41, %v872_v1  ;;  %v807_v50 = vadd.f32 %v787_v35, %v677_v38  ;;  %v671_v9 = vmul.f32 %v3325_v3, %v5493_v39  ;;  %v5495_v41 = vld [vmem:[#allocation14_spill] sm:$0xff]  ;;  %v5497_v44 = vld [vmem:[#allocation3_spill] sm:$0xff] }
  0x54   : > { %3087 = vmatmul.msk.f32.gmra.mxu0 %vm1608_vm1, %v1590_v23  ;;  %v1505_v61 = vmul.f32 %v3511_v48, %v3871_v57  ;;  %v1179_v58 = vmul.f32 %v5473_v21, %v5494_v13  ;;  %v801_v49 = vmul.f32 %v3330_v4, %v5495_v41  ;;  %v3897_v35 = vld [vmem:[%s3346_s25 + $0x6a] sm:$0xff]  ;;  %v933_v1 = vmul.f32 %v3336_v5, %v5497_v44  ;;  %v5500_v44 = vld [vmem:[#allocation21_spill] sm:$0xff] }
  0x55   : > { %v1474_v47 = vadd.f32 %v1454_v34, %v1344_v7  ;;  %v1133_v31 = vadd.f32 %v1113_v28, %v1003_v16  ;;  %v939_v17 = vadd.f32 %v919_v26, %v807_v50  ;;  %5496 = vst [vmem:[#allocation5_spill] sm:$0xff] %v3897_v35  ;;  %v691_v14 = vadd.f32 %v671_v9, %v541_v53  ;;  %v5498_v7 = vld [vmem:[#allocation11_spill] sm:$0xff]  ;;  %v5499_v53 = vld [vmem:[#allocation18_spill] sm:$0xff] }
  0x56   : > { %v1311_v38 = vmul.f32 %v3356_v8, %v3880_v59  ;;  %v1441_v23 = vmul.f32 %v3364_v12, %v3883_v19  ;;  %v1063_v24 = vmul.f32 %v5471_v45, %v5498_v7  ;;  %v2996_v39 = vld [vmem:[%s3346_s25 + $0x110] sm:$0xff]  ;;  %v463_v9 = vmul.f32 %v3428_v51, %v5499_v53  ;;  %v5502_v19 = vld [vmem:[#allocation4_spill] sm:$0xff] }
  0x57   : > { %v1604_v34 = vadd.f32 %v1584_v63, %v1474_v47  ;;  %v1264_v41 = vadd.f32 %v1244_v54, %v1133_v31  ;;  %v1069_v28 = vadd.f32 %v1049_v42, %v939_v17  ;;  %v821_v26 = vadd.f32 %v801_v49, %v691_v14  ;;  %v3038_v16 = vld [vmem:[%s3346_s25 + $0x111] sm:$0xff]  ;;  %v5501_v42 = vld [vmem:[#allocation22_spill] sm:$0xff] }
  0x58   : > { %v3080_v50 = vld [vmem:[%s3346_s25 + $0x112] sm:$0xff]  ;;  %v1571_v63 = vmul.f32 %v3386_v25, %v3897_v35  ;;  %v1193_v47 = vmul.f32 %v5473_v21, %v3770_v40  ;;  %v592_v54 = vmul.f32 %v3437_v55, %v5500_v44  ;;  %v722_v49 = vmul.f32 %v3445_v62, %v5501_v42  ;;  %v3927_v40 = vld [vmem:[%s3392_s20 + $0x68] sm:$0xff] }
  0x59   : > { %3101 = vmatmul.msk.f32.gmra.mxu3 %vm1608_vm1, %v1604_v34  ;;  %v1395_v31 = vadd.f32 %v1375_v32, %v1264_v41  ;;  %v1199_v17 = vadd.f32 %v1179_v58, %v1069_v28  ;;  %v953_v14 = vadd.f32 %v933_v1, %v821_v26  ;;  %v1325_v7 = vmul.f32 %v3356_v8, %v2996_v39  ;;  %v3930_v42 = vld [vmem:[%s3392_s20 + $0x69] sm:$0xff] }
  0x5a   : > { %v1455_v34 = vmul.f32 %v3364_v12, %v3038_v16  ;;  %v1585_v53 = vmul.f32 %v3386_v25, %v3080_v50  ;;  %v612_v35 = vadd.f32 %v592_v54, %v463_v9  ;;  %v853_v59 = vmul.f32 %v3458_v10, %v5502_v19  ;;  %v5503_v39 = vld [vmem:[#allocation19_spill] sm:$0xff]  ;;  %v3967_v54 = vld [vmem:[%s3392_s20 + $0xa8] sm:$0xff] }
  0x5b   : > { %v1525_v13 = vadd.f32 %v1505_v61, %v1395_v31  ;;  %v1331_v44 = vadd.f32 %v1311_v38, %v1199_v17  ;;  %v1083_v37 = vadd.f32 %v1063_v24, %v953_v14  ;;  %v528_v32 = vmul.f32 %v3319_v2, %v5485_v18  ;;  %5504 = vst [vmem:[#allocation6_spill] sm:$0xff] %v3967_v54  ;;  %v3977_v17 = vld [vmem:[%s3392_s20 + $0xa9] sm:$0xff]  ;;  %v3980_v14 = vld [vmem:[%s3346_s25 + $0x7a] sm:$0xff] }
  0x5c   : > { %v742_v58 = vadd.f32 %v722_v49, %v612_v35  ;;  %v984_v1 = vmul.f32 %v3470_v22, %v3782_v11  ;;  %v658_v41 = vmul.f32 %v3325_v3, %v5503_v39  ;;  %v788_v28 = vmul.f32 %v3330_v4, %v3666_v30  ;;  %v3948_v3 = vld [vmem:[%s3392_s20 + $0x6a] sm:$0xff]  ;;  %v3953_v30 = vld [vmem:[%s3346_s25 + $0x78] sm:$0xff]  ;;  %5505 = vst [vmem:[#allocation7_spill] sm:$0xff] %v3977_v17 }
  0x5d   : > { %3108 = vmatmul.msk.f32.gmra.mxu1 %vm1608_vm1, %v1525_v13  ;;  %v1461_v61 = vadd.f32 %v1441_v23, %v1331_v44  ;;  %v1213_v38 = vadd.f32 %v1193_v47, %v1083_v37  ;;  %v1114_v24 = vmul.f32 %v3482_v29, %v3804_v0  ;;  %v1245_v18 = vmul.f32 %v3492_v36, %v3927_v40  ;;  %v3960_v47 = vld [vmem:[%s3346_s25 + $0x79] sm:$0xff]  ;;  %v3985_v44 = vld [vmem:[%s3392_s20 + $0xaa] sm:$0xff] }
  0x5e   : > { %v873_v35 = vadd.f32 %v853_v59, %v742_v58  ;;  %v1376_v26 = vmul.f32 %v3504_v43, %v3930_v42  ;;  %v678_v16 = vadd.f32 %v658_v41, %v528_v32  ;;  %v920_v4 = vmul.f32 %v3336_v5, %v3807_v60  ;;  %5506 = vst [vmem:[#allocation17_spill] sm:$0xff] %v3985_v44  ;;  %v3988_v32 = vld [vmem:[%s3392_s20 + $0xc0] sm:$0xff] }
  0x5f   : > { %v1591_v37 = vadd.f32 %v1571_v63, %v1461_v61  ;;  %v1345_v13 = vadd.f32 %v1325_v7, %v1213_v38  ;;  %v1050_v23 = vmul.f32 %v5471_v45, %v3810_v20  ;;  %v464_v59 = vmul.f32 %v3428_v51, %v3687_v46  ;;  %5507 = vst [vmem:[#allocation8_spill] sm:$0xff] %v3988_v32  ;;  %v3997_v61 = vld [vmem:[%s3392_s20 + $0x78] sm:$0xff] }
  0x60   : > { %v1004_v50 = vadd.f32 %v984_v1, %v873_v35  ;;  %v808_v9 = vadd.f32 %v788_v28, %v678_v16  ;;  %v593_v5 = vmul.f32 %v3437_v55, %v3693_v27  ;;  %v723_v63 = vmul.f32 %v3445_v62, %v3704_v6  ;;  %5508 = vst [vmem:[#allocation9_spill] sm:$0xff] %v3997_v61  ;;  %v4000_v38 = vld [vmem:[%s3392_s20 + $0x79] sm:$0xff] }
  0x61   : > { %3088 = vmatmul.msk.f32.gmra.mxu0 %vm1608_vm1, %v1591_v37  ;;  %v1475_v45 = vadd.f32 %v1455_v34, %v1345_v13  ;;  %v1506_v46 = vmul.f32 %v3511_v48, %v3948_v3  ;;  %v1180_v49 = vmul.f32 %v5473_v21, %v3821_v56  ;;  %v1312_v31 = vmul.f32 %v3356_v8, %v3953_v30 }
  0x62   : > { %v1134_v27 = vadd.f32 %v1114_v24, %v1004_v50  ;;  %v940_v6 = vadd.f32 %v920_v4, %v808_v9  ;;  %v613_v7 = vadd.f32 %v593_v5, %v464_v59  ;;  %v854_v34 = vmul.f32 %v3458_v10, %v3853_v33  ;;  %5509 = vst [vmem:[#allocation10_spill] sm:$0xff] %v4000_v38  ;;  %v4020_v50 = vld [vmem:[%s3392_s20 + $0xc2] sm:$0xff] }
  0x63   : > { %v1605_v21 = vadd.f32 %v1585_v53, %v1475_v45  ;;  %v1442_v8 = vmul.f32 %v3364_v12, %v3960_v47  ;;  %v985_v58 = vmul.f32 %v3470_v22, %v3856_v52  ;;  %v472_v1 = vmul.f32 %v3428_v51, %v3967_v54  ;;  %v4005_v12 = vld [vmem:[%s3392_s20 + $0xc1] sm:$0xff]  ;;  %5512 = vst [vmem:[#allocation13_spill] sm:$0xff] %v4020_v50 }
  0x64   : > { %v1265_v39 = vadd.f32 %v1245_v18, %v1134_v27  ;;  %v1070_v41 = vadd.f32 %v1050_v23, %v940_v6  ;;  %v743_v28 = vadd.f32 %v723_v63, %v613_v7  ;;  %v601_v53 = vmul.f32 %v3437_v55, %v3977_v17  ;;  %5510 = vst [vmem:[#allocation20_spill] sm:$0xff] %v4005_v12  ;;  %v4017_v23 = vld [vmem:[%s3392_s20 + $0x7a] sm:$0xff] }
  0x65   : > { %3102 = vmatmul.msk.f32.gmra.mxu3 %vm1608_vm1, %v1605_v21  ;;  %v1572_v24 = vmul.f32 %v3386_v25, %v3980_v14  ;;  %v1115_v18 = vmul.f32 %v3482_v29, %v3871_v57  ;;  %v731_v35 = vmul.f32 %v3445_v62, %v3985_v44  ;;  %v862_v16 = vmul.f32 %v3458_v10, %v3988_v32  ;;  %v4029_v63 = vld [vmem:[%s3392_s20 + $0xd8] sm:$0xff] }
  0x66   : > { %v1396_v4 = vadd.f32 %v1376_v26, %v1265_v39  ;;  %v1200_v37 = vadd.f32 %v1180_v49, %v1070_v41  ;;  %v874_v13 = vadd.f32 %v854_v34, %v743_v28  ;;  %5511 = vst [vmem:[#allocation12_spill] sm:$0xff] %v4017_v23  ;;  %v621_v59 = vadd.f32 %v601_v53, %v472_v1  ;;  %v4034_v7 = vld [vmem:[%s3392_s20 + $0xd9] sm:$0xff]  ;;  %v4046_v39 = vld [vmem:[%s5352_s3 + $0x1] ss:$0 sm:$0xff] }
  0x67   : > { %v1246_v25 = vmul.f32 %v3492_v36, %v3997_v61  ;;  %v1377_v9 = vmul.f32 %v3504_v43, %v4000_v38  ;;  %v993_v5 = vmul.f32 %v3470_v22, %v4005_v12  ;;  %5513 = vst [vmem:[#allocation14_spill] sm:$0xff] %v4029_v63  ;;  %v529_v26 = vmul.f32 %v3319_v2, %v3718_v15  ;;  %v4037_v34 = vld [vmem:[%s3392_s20 + $0xda] sm:$0xff]  ;;  %v5516_v2 = vld [vmem:[#allocation23_spill] sm:$0xff] }
  0x68   : > { %v1526_v45 = vadd.f32 %v1506_v46, %v1396_v4  ;;  %v1332_v49 = vadd.f32 %v1312_v31, %v1200_v37  ;;  %v1005_v27 = vadd.f32 %v985_v58, %v874_v13  ;;  %v751_v6 = vadd.f32 %v731_v35, %v621_v59  ;;  %5514 = vst [vmem:[#allocation3_spill] sm:$0xff] %v4034_v7  ;;  %v4053_v46 = vld [vmem:[%s5352_s3 + $0x2] ss:$0 sm:$0xff]  ;;  %v5517_v31 = vld [vmem:[#allocation24_spill] sm:$0xff]  ;;  %v4067_v59 = vld [vmem:[%s5352_s3 + $0x3] ss:$0 sm:$0xff] }
  0x69   : > { %5515 = vst [vmem:[#allocation11_spill] sm:$0xff] %v4037_v34  ;;  %v1507_v21 = vmul.f32 %v3511_v48, %v4017_v23  ;;  %v1123_v1 = vmul.f32 %v3482_v29, %v4020_v50  ;;  %v659_v15 = vmul.f32 %v4046_v39, %v5516_v2  ;;  %v789_v58 = vmul.f32 %v4053_v46, %v5517_v31  ;;  %v5521_v31 = vld [vmem:[#allocation16_spill] sm:$0xff] }
  0x6a   : > { %3109 = vmatmul.msk.f32.gmra.mxu1 %vm1608_vm1, %v1526_v45  ;;  %v1462_v41 = vadd.f32 %v1442_v8, %v1332_v49  ;;  %v1135_v28 = vadd.f32 %v1115_v18, %v1005_v27  ;;  %v882_v53 = vadd.f32 %v862_v16, %v751_v6  ;;  %v1254_v35 = vmul.f32 %v3492_v36, %v4029_v63  ;;  %v5518_v45 = vld [vmem:[#allocation15_spill] sm:$0xff]  ;;  %v4072_v18 = vld [vmem:[%s3346_s25 + $0x80] sm:$0xff] }
  0x6b   : > { %v1385_v4 = vmul.f32 %v3504_v43, %v4034_v7  ;;  %v1515_v37 = vmul.f32 %v3511_v48, %v4037_v34  ;;  %v679_v13 = vadd.f32 %v659_v15, %v529_v26  ;;  %v921_v8 = vmul.f32 %v4067_v59, %v5518_v45  ;;  %5519 = vst [vmem:[#allocation18_spill] sm:$0xff] %v4072_v18  ;;  %v4075_v6 = vld [vmem:[%s3346_s25 + $0x81] sm:$0xff] }
  0x6c   : > { %v1592_v16 = vadd.f32 %v1572_v24, %v1462_v41  ;;  %v1266_v49 = vadd.f32 %v1246_v25, %v1135_v28  ;;  %v1013_v27 = vadd.f32 %v993_v5, %v882_v53  ;;  %5520 = vst [vmem:[#allocation21_spill] sm:$0xff] %v4075_v6  ;;  %v465_v26 = vmul.f32 %v3428_v51, %v5502_v19  ;;  %v4082_v15 = vld [vmem:[%s5352_s3 + $0x4] ss:$0 sm:$0xff]  ;;  %v4091_v5 = vld [vmem:[%s3392_s20 + $0xb0] sm:$0xff]  ;;  %v4097_v41 = vld [vmem:[%s5352_s3 + $0x5] ss:$0 sm:$0xff] }
  0x6d   : > { %v809_v2 = vadd.f32 %v789_v58, %v679_v13  ;;  %v1051_v44 = vmul.f32 %v4082_v15, %v5521_v31  ;;  %v594_v24 = vmul.f32 %v3437_v55, %v3782_v11  ;;  %v724_v25 = vmul.f32 %v3445_v62, %v3804_v0  ;;  %5522 = vst [vmem:[#allocation22_spill] sm:$0xff] %v4091_v5  ;;  %v5523_v28 = vld [vmem:[#allocation5_spill] sm:$0xff]  ;;  %v4109_v13 = vld [vmem:[%s3392_s20 + $0xb1] sm:$0xff]  ;;  %v4134_v31 = vld [vmem:[%s3392_s20 + $0xc8] sm:$0xff] }
  0x6e   : > { %3089 = vmatmul.msk.f32.gmra.mxu0 %vm1608_vm1, %v1592_v16  ;;  %v1397_v19 = vadd.f32 %v1377_v9, %v1266_v49  ;;  %v1143_v58 = vadd.f32 %v1123_v1, %v1013_v27  ;;  %v1181_v53 = vmul.f32 %v4097_v41, %v5523_v28  ;;  %v4104_v11 = vld [vmem:[%s5352_s3 + $0x6] ss:$0 sm:$0xff]  ;;  %5524 = vst [vmem:[#allocation4_spill] sm:$0xff] %v4109_v13  ;;  %v4112_v9 = vld [vmem:[%s3392_s20 + $0xb2] sm:$0xff]  ;;  %v4117_v16 = vld [vmem:[%s5352_s3 + $0x7] ss:$0 sm:$0xff] }
  0x6f   : > { %v1313_v0 = vmul.f32 %v4104_v11, %v4072_v18  ;;  %5525 = vst [vmem:[#allocation19_spill] sm:$0xff] %v4112_v9  ;;  %v941_v1 = vadd.f32 %v921_v8, %v809_v2  ;;  %v1443_v49 = vmul.f32 %v4117_v16, %v4075_v6  ;;  %v4122_v27 = vld [vmem:[%s3346_s25 + $0x82] sm:$0xff]  ;;  %v614_v17 = vadd.f32 %v594_v24, %v465_v26 }
  0x70   : > { %v855_v54 = vmul.f32 %v3458_v10, %v3927_v40  ;;  %v4127_v18 = vld [vmem:[%s3392_s20 + $0x80] sm:$0xff]  ;;  %v1527_v34 = vadd.f32 %v1507_v21, %v1397_v19  ;;  %v1274_v28 = vadd.f32 %v1254_v35, %v1143_v58  ;;  %v986_v8 = vmul.f32 %v3470_v22, %v3930_v42  ;;  %5527 = vst [vmem:[#allocation24_spill] sm:$0xff] %v4134_v31  ;;  %v4144_v35 = vld [vmem:[%s3392_s20 + $0xc9] sm:$0xff] }
  0x71   : > { %5526 = vst [vmem:[#allocation23_spill] sm:$0xff] %v4127_v18  ;;  %v473_v2 = vmul.f32 %v3428_v51, %v4091_v5  ;;  %v1071_v6 = vadd.f32 %v1051_v44, %v941_v1  ;;  %v744_v45 = vadd.f32 %v724_v25, %v614_v17  ;;  %v4137_v26 = vld [vmem:[%s3392_s20 + $0x81] sm:$0xff]  ;;  %v602_v24 = vmul.f32 %v3437_v55, %v4109_v13 }
  0x72   : > { %5528 = vst [vmem:[#allocation25_spill] sm:$0xff] %v4137_v26  ;;  %v732_v21 = vmul.f32 %v3445_v62, %v4112_v9  ;;  %3110 = vmatmul.msk.f32.gmra.mxu1 %vm1608_vm1, %v1527_v34  ;;  %v1405_v19 = vadd.f32 %v1385_v4, %v1274_v28  ;;  %v4150_v51 = vld [vmem:[%s5352_s3 + $0x8] ss:$0 sm:$0xff]  ;;  %v1116_v44 = vmul.f32 %v3482_v29, %v3948_v3  ;;  %v4164_v28 = vld [vmem:[%s3392_s20 + $0xca] sm:$0xff]  ;;  %v4226_v5 = vld [vmem:[%s5351_s2 + $0x1] ss:$0 sm:$0xff] }
  0x73   : > { %5529 = vst [vmem:[#allocation26_spill] sm:$0xff] %v4144_v35  ;;  %v1573_v17 = vmul.f32 %v4150_v51, %v4122_v27  ;;  %v1247_v55 = vmul.f32 %v3492_v36, %v4127_v18  ;;  %v1201_v62 = vadd.f32 %v1181_v53, %v1071_v6  ;;  %v875_v25 = vadd.f32 %v855_v54, %v744_v45  ;;  %v4159_v34 = vld [vmem:[%s3392_s20 + $0x82] sm:$0xff]  ;;  %v4173_v6 = vld [vmem:[%s5352_s3] ss:$0 sm:$0xff] }
  0x74   : > { %v622_v4 = vadd.f32 %v602_v24, %v473_v2  ;;  %v863_v58 = vmul.f32 %v3458_v10, %v4134_v31  ;;  %5530 = vst [vmem:[#allocation27_spill] sm:$0xff] %v4164_v28  ;;  %v1535_v1 = vadd.f32 %v1515_v37, %v1405_v19  ;;  %v1378_v9 = vmul.f32 %v3504_v43, %v4137_v26  ;;  %v4178_v2 = vld [vmem:[%s3392_s20 + $0xe0] sm:$0xff] }
  0x75   : > { %v994_v13 = vmul.f32 %v3470_v22, %v4144_v35  ;;  %v530_v54 = vmul.f32 %v4173_v6, %v3807_v60  ;;  %v1333_v45 = vadd.f32 %v1313_v0, %v1201_v62  ;;  %v1006_v10 = vadd.f32 %v986_v8, %v875_v25  ;;  %v4181_v37 = vld [vmem:[%s3392_s20 + $0xe1] sm:$0xff] }
  0x76   : > { %v752_v53 = vadd.f32 %v732_v21, %v622_v4  ;;  %v660_v22 = vmul.f32 %v4046_v39, %v3810_v20  ;;  %3118 = vmatmul.msk.f32.vlgmr.msrb.gmra.mxu3 %vm1608_vm1, %v1535_v1  ;;  %v1508_v24 = vmul.f32 %v3511_v48, %v4159_v34  ;;  %v1124_v19 = vmul.f32 %v3482_v29, %v4164_v28  ;;  %v4195_v20 = vld [vmem:[%s3392_s20 + $0xe2] sm:$0xff]  ;;  %v4204_v1 = vld [vmem:[%s3346_s25 + $0x90] sm:$0xff] }
  0x77   : > { %v790_v60 = vmul.f32 %v4053_v46, %v3821_v56  ;;  %v922_v0 = vmul.f32 %v4067_v59, %v3953_v30  ;;  %v1463_v8 = vadd.f32 %v1443_v49, %v1333_v45  ;;  %v1136_v21 = vadd.f32 %v1116_v44, %v1006_v10  ;;  %5531 = vst [vmem:[#allocation28_spill] sm:$0xff] %v4204_v1  ;;  %v4209_v49 = vld [vmem:[%s5351_s2] ss:$0 sm:$0xff]  ;;  %v4214_v10 = vld [vmem:[%s3346_s25 + $0x91] sm:$0xff] }
  0x78   : > { %v883_v62 = vadd.f32 %v863_v58, %v752_v53  ;;  %v680_v25 = vadd.f32 %v660_v22, %v530_v54  ;;  %v1255_v4 = vmul.f32 %v3492_v36, %v4178_v2  ;;  %v1386_v29 = vmul.f32 %v3504_v43, %v4181_v37  ;;  %5532 = vst [vmem:[#allocation29_spill] sm:$0xff] %v4214_v10  ;;  %v4217_v43 = vld [vmem:[%s3346_s25 + $0x92] sm:$0xff] }
  0x79   : > { %v1052_v56 = vmul.f32 %v4082_v15, %v3960_v47  ;;  %v466_v44 = vmul.f32 %v4209_v49, %v3853_v33  ;;  %v1593_v58 = vadd.f32 %v1573_v17, %v1463_v8  ;;  %v1267_v54 = vadd.f32 %v1247_v55, %v1136_v21  ;;  %5533 = vst [vmem:[#allocation30_spill] sm:$0xff] %v4217_v43 }
  0x7a   : > { %v1014_v45 = vadd.f32 %v994_v13, %v883_v62  ;;  %v810_v36 = vadd.f32 %v790_v60, %v680_v25  ;;  %v1516_v53 = vmul.f32 %v3511_v48, %v4195_v20  ;;  %v1182_v22 = vmul.f32 %v4097_v41, %v3980_v14  ;;  %v4233_v13 = vld [vmem:[%s5351_s2 + $0x2] ss:$0 sm:$0xff]  ;;  %v4247_v25 = vld [vmem:[%s5351_s2 + $0x3] ss:$0 sm:$0xff] }
  0x7b   : > { %v595_v33 = vmul.f32 %v4226_v5, %v3856_v52  ;;  %v725_v48 = vmul.f32 %v4233_v13, %v3871_v57  ;;  %3090 = vmatmul.msk.f32.gmra.mxu0 %vm1608_vm1, %v1593_v58  ;;  %v1398_v17 = vadd.f32 %v1378_v9, %v1267_v54  ;;  %v1314_v8 = vmul.f32 %v4104_v11, %v4204_v1  ;;  %v4252_v9 = vld [vmem:[%s3392_s20 + $0x90] sm:$0xff] }
  0x7c   : > { %v1144_v55 = vadd.f32 %v1124_v19, %v1014_v45  ;;  %v942_v60 = vadd.f32 %v922_v0, %v810_v36  ;;  %v1444_v52 = vmul.f32 %v4117_v16, %v4214_v10  ;;  %v1574_v21 = vmul.f32 %v4150_v51, %v4217_v43  ;;  %5534 = vst [vmem:[#allocation31_spill] sm:$0xff] %v4252_v9  ;;  %v4255_v54 = vld [vmem:[%s3392_s20 + $0x91] sm:$0xff]  ;;  %v4262_v36 = vld [vmem:[%s5351_s2 + $0x4] ss:$0 sm:$0xff] }
  0x7d   : > { %v615_v62 = vadd.f32 %v595_v33, %v466_v44  ;;  %v856_v57 = vmul.f32 %v4247_v25, %v3997_v61  ;;  %v1528_v19 = vadd.f32 %v1508_v24, %v1398_v17  ;;  %5535 = vst [vmem:[#allocation32_spill] sm:$0xff] %v4255_v54  ;;  %v474_v45 = vmul.f32 %v4209_v49, %v3988_v32  ;;  %v5539_v61 = vld [vmem:[#allocation16_spill] sm:$0xff] }
  0x7e   : > { %v1275_v0 = vadd.f32 %v1255_v4, %v1144_v55  ;;  %v1072_v58 = vadd.f32 %v1052_v56, %v942_v60  ;;  %v987_v33 = vmul.f32 %v4262_v36, %v4000_v38  ;;  %v603_v24 = vmul.f32 %v4226_v5, %v4005_v12  ;;  %v4281_v60 = vld [vmem:[%s5351_s2 + $0x6] ss:$0 sm:$0xff]  ;;  %v4298_v12 = vld [vmem:[%s3392_s20 + $0xf0] sm:$0xff] }
  0x7f   : > { %v745_v44 = vadd.f32 %v725_v48, %v615_v62  ;;  %v733_v4 = vmul.f32 %v4233_v13, %v4020_v50  ;;  %3111 = vmatmul.msk.f32.gmra.mxu1 %vm1608_vm1, %v1528_v19  ;;  %v4274_v48 = vld [vmem:[%s5351_s2 + $0x5] ss:$0 sm:$0xff]  ;;  %v1248_v62 = vmul.f32 %v4281_v60, %v4252_v9  ;;  %v864_v50 = vmul.f32 %v4247_v25, %v4029_v63 }
  0x80   : > { %v1406_v56 = vadd.f32 %v1386_v29, %v1275_v0  ;;  %v1202_v17 = vadd.f32 %v1182_v22, %v1072_v58  ;;  %v1117_v55 = vmul.f32 %v4274_v48, %v4017_v23  ;;  %v4288_v29 = vld [vmem:[%s5351_s2 + $0x7] ss:$0 sm:$0xff]  ;;  %v4293_v0 = vld [vmem:[%s3392_s20 + $0x92] sm:$0xff]  ;;  %v623_v58 = vadd.f32 %v603_v24, %v474_v45  ;;  %5537 = vst [vmem:[#allocation34_spill] sm:$0xff] %v4298_v12 }
  0x81   : > { %v876_v19 = vadd.f32 %v856_v57, %v745_v44  ;;  %v1379_v22 = vmul.f32 %v4288_v29, %v4255_v54  ;;  %5536 = vst [vmem:[#allocation33_spill] sm:$0xff] %v4293_v0  ;;  %v995_v57 = vmul.f32 %v4262_v36, %v4034_v7  ;;  %v5538_v44 = vld [vmem:[#allocation15_spill] sm:$0xff]  ;;  %v661_v45 = vmul.f32 %v4046_v39, %v5539_v61  ;;  %v5540_v24 = vld [vmem:[#allocation5_spill] sm:$0xff] }
  0x82   : > { %v1536_v32 = vadd.f32 %v1516_v53, %v1406_v56  ;;  %v1334_v43 = vadd.f32 %v1314_v8, %v1202_v17  ;;  %v531_v9 = vmul.f32 %v4173_v6, %v5538_v44  ;;  %v753_v38 = vadd.f32 %v733_v4, %v623_v58  ;;  %v4305_v54 = vld [vmem:[%s3392_s20 + $0xf1] sm:$0xff]  ;;  %v4315_v8 = vld [vmem:[%s5351_s2 + $0x8] ss:$0 sm:$0xff] }
  0x83   : > { %v1007_v23 = vadd.f32 %v987_v33, %v876_v19  ;;  %v791_v63 = vmul.f32 %v4053_v46, %v5540_v24  ;;  %v1509_v33 = vmul.f32 %v4315_v8, %v4293_v0  ;;  %v5541_v4 = vld [vmem:[#allocation11_spill] sm:$0xff]  ;;  %v1256_v61 = vmul.f32 %v4281_v60, %v4298_v12  ;;  %v5543_v0 = vld [vmem:[#allocation21_spill] sm:$0xff] }
  0x84   : > { %3119 = vmatmul.msk.f32.gmra.mxu3 %vm1608_vm1, %v1536_v32  ;;  %v1464_v53 = vadd.f32 %v1444_v52, %v1334_v43  ;;  %v1125_v56 = vmul.f32 %v4274_v48, %v5541_v4  ;;  %v884_v19 = vadd.f32 %v864_v50, %v753_v38  ;;  %v4324_v32 = vld [vmem:[%s3392_s20 + $0xf2] sm:$0xff]  ;;  %v681_v43 = vadd.f32 %v661_v45, %v531_v9  ;;  %v5542_v52 = vld [vmem:[#allocation18_spill] sm:$0xff] }
  0x85   : > { %v1137_v17 = vadd.f32 %v1117_v55, %v1007_v23  ;;  %v923_v58 = vmul.f32 %v4067_v59, %v5542_v52  ;;  %v1387_v24 = vmul.f32 %v4288_v29, %v4305_v54  ;;  %v1053_v7 = vmul.f32 %v4082_v15, %v5543_v0  ;;  %v4335_v50 = vld [vmem:[%s3346_s25 + $0x98] sm:$0xff] }
  0x86   : > { %v1594_v44 = vadd.f32 %v1574_v21, %v1464_v53  ;;  %v467_v4 = vmul.f32 %v4209_v49, %v3927_v40  ;;  %v1015_v23 = vadd.f32 %v995_v57, %v884_v19  ;;  %v811_v38 = vadd.f32 %v791_v63, %v681_v43  ;;  %v4338_v9 = vld [vmem:[%s3346_s25 + $0x99] sm:$0xff] }
  0x87   : > { %v1268_v12 = vadd.f32 %v1248_v62, %v1137_v17  ;;  %v596_v21 = vmul.f32 %v4226_v5, %v3930_v42  ;;  %v1517_v55 = vmul.f32 %v4315_v8, %v4324_v32  ;;  %v1183_v45 = vmul.f32 %v4097_v41, %v4122_v27  ;;  %v4352_v42 = vld [vmem:[%s3346_s25 + $0x9a] sm:$0xff] }
  0x88   : > { %3091 = vmatmul.msk.f32.gmra.mxu0 %vm1608_vm1, %v1594_v44  ;;  %v726_v40 = vmul.f32 %v4233_v13, %v3948_v3  ;;  %v857_v63 = vmul.f32 %v4247_v25, %v4127_v18  ;;  %v1145_v57 = vadd.f32 %v1125_v56, %v1015_v23  ;;  %v943_v53 = vadd.f32 %v923_v58, %v811_v38  ;;  %v4361_v44 = vld [vmem:[%s3392_s20 + $0x98] sm:$0xff] }
  0x89   : > { %v1399_v62 = vadd.f32 %v1379_v22, %v1268_v12  ;;  %v616_v17 = vadd.f32 %v596_v21, %v467_v4  ;;  %v1315_v19 = vmul.f32 %v4104_v11, %v4335_v50  ;;  %v1445_v43 = vmul.f32 %v4117_v16, %v4338_v9  ;;  %v4366_v4 = vld [vmem:[%s3392_s20 + $0x99] sm:$0xff] }
  0x8a   : > { %v988_v3 = vmul.f32 %v4262_v36, %v4137_v26  ;;  %v475_v18 = vmul.f32 %v4209_v49, %v4134_v31  ;;  %v1276_v22 = vadd.f32 %v1256_v61, %v1145_v57  ;;  %v1073_v56 = vadd.f32 %v1053_v7, %v943_v53  ;;  %v4369_v23 = vld [vmem:[%s3392_s20 + $0x9a] sm:$0xff] }
  0x8b   : > { %v1529_v12 = vadd.f32 %v1509_v33, %v1399_v62  ;;  %v746_v58 = vadd.f32 %v726_v40, %v616_v17  ;;  %v1575_v38 = vmul.f32 %v4150_v51, %v4352_v42  ;;  %v1118_v21 = vmul.f32 %v4274_v48, %v4159_v34  ;;  %v4389_v31 = vld [vmem:[%s3392_s20 + $0xf8] sm:$0xff] }
  0x8c   : > { %v604_v26 = vmul.f32 %v4226_v5, %v4144_v35  ;;  %v734_v33 = vmul.f32 %v4233_v13, %v4164_v28  ;;  %v1407_v7 = vadd.f32 %v1387_v24, %v1276_v22  ;;  %v1203_v61 = vadd.f32 %v1183_v45, %v1073_v56 }
  0x8d   : > { %3112 = vmatmul.msk.f32.gmra.mxu1 %vm1608_vm1, %v1529_v12  ;;  %v877_v40 = vadd.f32 %v857_v63, %v746_v58  ;;  %v1249_v62 = vmul.f32 %v4281_v60, %v4361_v44  ;;  %v1380_v57 = vmul.f32 %v4288_v29, %v4366_v4  ;;  %v1510_v53 = vmul.f32 %v4315_v8, %v4369_v23  ;;  %v4392_v63 = vld [vmem:[%s3392_s20 + $0xf9] sm:$0xff] }
  0x8e   : > { %v624_v17 = vadd.f32 %v604_v26, %v475_v18  ;;  %v865_v35 = vmul.f32 %v4247_v25, %v4178_v2  ;;  %v1537_v28 = vadd.f32 %v1517_v55, %v1407_v7  ;;  %v1335_v24 = vadd.f32 %v1315_v19, %v1203_v61  ;;  %5544 = vst [vmem:[#allocation15_spill] sm:$0xff] %v4392_v63  ;;  %v4410_v7 = vld [vmem:[%s3392_s20 + $0xfa] sm:$0xff] }
  0x8f   : > { %v1008_v45 = vadd.f32 %v988_v3, %v877_v40  ;;  %v532_v12 = vmul.f32 %v4173_v6, %v3953_v30  ;;  %v996_v56 = vmul.f32 %v4262_v36, %v4181_v37  ;;  %v662_v18 = vmul.f32 %v4046_v39, %v3960_v47  ;;  %5545 = vst [vmem:[#allocation16_spill] sm:$0xff] %v4410_v7  ;;  %v5547_v40 = vld [vmem:[#allocation9_spill] sm:$0xff] }
  0x90   : > { %v754_v22 = vadd.f32 %v734_v33, %v624_v17  ;;  %v792_v26 = vmul.f32 %v4053_v46, %v3980_v14  ;;  %3120 = vmatmul.msk.f32.gmra.mxu3 %vm1608_vm1, %v1537_v28  ;;  %v1465_v55 = vadd.f32 %v1445_v43, %v1335_v24  ;;  %v1126_v3 = vmul.f32 %v4274_v48, %v4195_v20  ;;  %v4415_v28 = vld [vmem:[%s3346_s25 + $0xa8] sm:$0xff] }
  0x91   : > { %v1138_v19 = vadd.f32 %v1118_v21, %v1008_v45  ;;  %v1257_v30 = vmul.f32 %v4281_v60, %v4389_v31  ;;  %v1388_v33 = vmul.f32 %v4288_v29, %v4392_v63  ;;  %v682_v47 = vadd.f32 %v662_v18, %v532_v12  ;;  %5546 = vst [vmem:[#allocation5_spill] sm:$0xff] %v4415_v28  ;;  %v4422_v45 = vld [vmem:[%s3346_s25 + $0xa9] sm:$0xff]  ;;  %v5550_v18 = vld [vmem:[#allocation12_spill] sm:$0xff] }
  0x92   : > { %v885_v58 = vadd.f32 %v865_v35, %v754_v22  ;;  %v924_v14 = vmul.f32 %v4067_v59, %v4204_v1  ;;  %v1595_v43 = vadd.f32 %v1575_v38, %v1465_v55  ;;  %v1054_v61 = vmul.f32 %v4082_v15, %v4214_v10  ;;  %5548 = vst [vmem:[#allocation18_spill] sm:$0xff] %v4422_v45  ;;  %v5549_v22 = vld [vmem:[#allocation10_spill] sm:$0xff] }
  0x93   : > { %v1269_v21 = vadd.f32 %v1249_v62, %v1138_v19  ;;  %v468_v35 = vmul.f32 %v4209_v49, %v5547_v40  ;;  %v812_v24 = vadd.f32 %v792_v26, %v682_v47  ;;  %v597_v12 = vmul.f32 %v4226_v5, %v5549_v22  ;;  %v5551_v55 = vld [vmem:[#allocation30_spill] sm:$0xff]  ;;  %v5553_v22 = vld [vmem:[#allocation31_spill] sm:$0xff] }
  0x94   : > { %v1016_v17 = vadd.f32 %v996_v56, %v885_v58  ;;  %v727_v1 = vmul.f32 %v4233_v13, %v5550_v18  ;;  %3092 = vmatmul.msk.f32.gmra.mxu0 %vm1608_vm1, %v1595_v43  ;;  %v1518_v62 = vmul.f32 %v4315_v8, %v4410_v7  ;;  %v1184_v19 = vmul.f32 %v4097_v41, %v5551_v55  ;;  %v4436_v47 = vld [vmem:[%s3346_s25 + $0xaa] sm:$0xff]  ;;  %v5554_v43 = vld [vmem:[#allocation32_spill] sm:$0xff] }
  0x95   : > { %v1400_v38 = vadd.f32 %v1380_v57, %v1269_v21  ;;  %v1316_v56 = vmul.f32 %v4104_v11, %v4415_v28  ;;  %v944_v58 = vadd.f32 %v924_v14, %v812_v24  ;;  %5552 = vst [vmem:[#allocation21_spill] sm:$0xff] %v4436_v47  ;;  %v617_v40 = vadd.f32 %v597_v12, %v468_v35  ;;  %v5555_v7 = vld [vmem:[#allocation14_spill] sm:$0xff]  ;;  %v5557_v24 = vld [vmem:[#allocation33_spill] sm:$0xff] }
  0x96   : > { %v1146_v26 = vadd.f32 %v1126_v3, %v1016_v17  ;;  %v858_v18 = vmul.f32 %v4247_v25, %v5553_v22  ;;  %v1446_v57 = vmul.f32 %v4117_v16, %v4422_v45  ;;  %v989_v21 = vmul.f32 %v4262_v36, %v5554_v43  ;;  %v5556_v17 = vld [vmem:[#allocation3_spill] sm:$0xff]  ;;  %v2974_v22 = vld [vmem:[%s3392_s20 + $0x108] sm:$0xff] }
  0x97   : > { %v1530_v10 = vadd.f32 %v1510_v53, %v1400_v38  ;;  %v476_v55 = vmul.f32 %v4209_v49, %v5555_v7  ;;  %v1074_v3 = vadd.f32 %v1054_v61, %v944_v58  ;;  %v747_v14 = vadd.f32 %v727_v1, %v617_v40  ;;  %v5558_v38 = vld [vmem:[#allocation11_spill] sm:$0xff]  ;;  %v5559_v7 = vld [vmem:[#allocation34_spill] sm:$0xff] }
  0x98   : > { %v1277_v63 = vadd.f32 %v1257_v30, %v1146_v26  ;;  %v605_v35 = vmul.f32 %v4226_v5, %v5556_v17  ;;  %v1576_v53 = vmul.f32 %v4150_v51, %v4436_v47  ;;  %v1119_v12 = vmul.f32 %v4274_v48, %v5557_v24  ;;  %v5561_v17 = vld [vmem:[#allocation7_spill] sm:$0xff] }
  0x99   : > { %3113 = vmatmul.msk.f32.gmra.mxu1 %vm1608_vm1, %v1530_v10  ;;  %v735_v43 = vmul.f32 %v4233_v13, %v5558_v38  ;;  %v866_v30 = vmul.f32 %v4247_v25, %v5559_v7  ;;  %v1204_v61 = vadd.f32 %v1184_v19, %v1074_v3  ;;  %v878_v26 = vadd.f32 %v858_v18, %v747_v14  ;;  %v5560_v10 = vld [vmem:[#allocation6_spill] sm:$0xff]  ;;  %v5562_v19 = vld [vmem:[#allocation17_spill] sm:$0xff] }
  0x9a   : > { %v1408_v1 = vadd.f32 %v1388_v33, %v1277_v63  ;;  %v625_v58 = vadd.f32 %v605_v35, %v476_v55  ;;  %v1250_v40 = vmul.f32 %v4281_v60, %v5560_v10  ;;  %v1381_v47 = vmul.f32 %v4288_v29, %v5561_v17  ;;  %v3016_v33 = vld [vmem:[%s3392_s20 + $0x109] sm:$0xff] }
  0x9b   : > { %v997_v24 = vmul.f32 %v4262_v36, %v4305_v54  ;;  %v533_v38 = vmul.f32 %v4173_v6, %v5542_v52  ;;  %v1336_v7 = vadd.f32 %v1316_v56, %v1204_v61  ;;  %v1009_v28 = vadd.f32 %v989_v21, %v878_v26  ;;  %v3058_v55 = vld [vmem:[%s3392_s20 + $0x10a] sm:$0xff]  ;;  %v5564_v26 = vld [vmem:[#allocation25_spill] sm:$0xff] }
  0x9c   : > { %v1538_v45 = vadd.f32 %v1518_v62, %v1408_v1  ;;  %v755_v63 = vadd.f32 %v735_v43, %v625_v58  ;;  %v1511_v18 = vmul.f32 %v4315_v8, %v5562_v19  ;;  %v1127_v3 = vmul.f32 %v4274_v48, %v4324_v32 }
  0x9d   : > { %v663_v54 = vmul.f32 %v4046_v39, %v5543_v0  ;;  %v793_v52 = vmul.f32 %v4053_v46, %v4122_v27  ;;  %v1466_v62 = vadd.f32 %v1446_v57, %v1336_v7  ;;  %v1139_v56 = vadd.f32 %v1119_v12, %v1009_v28  ;;  %v4484_v0 = vld [vmem:[%s3346_s25 + $0xb0] sm:$0xff] }
  0x9e   : > { %3121 = vmatmul.msk.f32.gmra.mxu3 %vm1608_vm1, %v1538_v45  ;;  %v886_v43 = vadd.f32 %v866_v30, %v755_v63  ;;  %v1258_v21 = vmul.f32 %v4281_v60, %v2974_v22  ;;  %v1389_v14 = vmul.f32 %v4288_v29, %v3016_v33  ;;  %v1519_v35 = vmul.f32 %v4315_v8, %v3058_v55  ;;  %v4490_v57 = vld [vmem:[%s3346_s25 + $0xb1] sm:$0xff] }
  0x9f   : > { %v683_v1 = vadd.f32 %v663_v54, %v533_v38  ;;  %v925_v32 = vmul.f32 %v4067_v59, %v4335_v50  ;;  %v1596_v27 = vadd.f32 %v1576_v53, %v1466_v62  ;;  %v1270_v45 = vadd.f32 %v1250_v40, %v1139_v56  ;;  %v5563_v22 = vld [vmem:[#allocation23_spill] sm:$0xff] }
  0xa0   : > { %v1017_v28 = vadd.f32 %v997_v24, %v886_v43  ;;  %v469_v12 = vmul.f32 %v4209_v49, %v5563_v22  ;;  %v1055_v61 = vmul.f32 %v4082_v15, %v4338_v9  ;;  %v598_v58 = vmul.f32 %v4226_v5, %v5564_v26  ;;  %v4509_v55 = vld [vmem:[%s3346_s25 + $0xb2] sm:$0xff] }
  0xa1   : > { %v813_v30 = vadd.f32 %v793_v52, %v683_v1  ;;  %v728_v38 = vmul.f32 %v4233_v13, %v4159_v34  ;;  %3093 = vmatmul.msk.f32.gmra.mxu0 %vm1608_vm1, %v1596_v27  ;;  %v1401_v53 = vadd.f32 %v1381_v47, %v1270_v45  ;;  %v1185_v40 = vmul.f32 %v4097_v41, %v4352_v42  ;;  %v5565_v27 = vld [vmem:[#allocation22_spill] sm:$0xff] }
  0xa2   : > { %v1147_v24 = vadd.f32 %v1127_v3, %v1017_v28  ;;  %v1317_v7 = vmul.f32 %v4104_v11, %v4484_v0  ;;  %v1447_v33 = vmul.f32 %v4117_v16, %v4490_v57  ;;  %v618_v34 = vadd.f32 %v598_v58, %v469_v12  ;;  %v5568_v58 = vld [vmem:[#allocation28_spill] sm:$0xff] }
  0xa3   : > { %v945_v63 = vadd.f32 %v925_v32, %v813_v30  ;;  %v859_v54 = vmul.f32 %v4247_v25, %v4361_v44  ;;  %v1531_v47 = vadd.f32 %v1511_v18, %v1401_v53  ;;  %v990_v52 = vmul.f32 %v4262_v36, %v4366_v4  ;;  %v5566_v30 = vld [vmem:[#allocation4_spill] sm:$0xff] }
  0xa4   : > { %v1278_v3 = vadd.f32 %v1258_v21, %v1147_v24  ;;  %v477_v62 = vmul.f32 %v4209_v49, %v4178_v2  ;;  %v748_v43 = vadd.f32 %v728_v38, %v618_v34  ;;  %v606_v1 = vmul.f32 %v4226_v5, %v4181_v37 }
  0xa5   : > { %v1075_v56 = vadd.f32 %v1055_v61, %v945_v63  ;;  %v736_v32 = vmul.f32 %v4233_v13, %v4195_v20  ;;  %3114 = vmatmul.msk.f32.gmra.mxu1 %vm1608_vm1, %v1531_v47  ;;  %v1577_v2 = vmul.f32 %v4150_v51, %v4509_v55  ;;  %v1120_v21 = vmul.f32 %v4274_v48, %v4369_v23  ;;  %v5567_v61 = vld [vmem:[#allocation15_spill] sm:$0xff] }
  0xa6   : > { %v1409_v18 = vadd.f32 %v1389_v14, %v1278_v3  ;;  %v1251_v37 = vmul.f32 %v4281_v60, %v5565_v27  ;;  %v879_v28 = vadd.f32 %v859_v54, %v748_v43  ;;  %v626_v22 = vadd.f32 %v606_v1, %v477_v62  ;;  %v2975_v63 = vld [vmem:[%s3392_s20 + $0x110] sm:$0xff]  ;;  %v5571_v3 = vld [vmem:[#allocation16_spill] sm:$0xff] }
  0xa7   : > { %v1205_v45 = vadd.f32 %v1185_v40, %v1075_v56  ;;  %v867_v20 = vmul.f32 %v4247_v25, %v4389_v31  ;;  %v1382_v14 = vmul.f32 %v4288_v29, %v5566_v30  ;;  %v998_v26 = vmul.f32 %v4262_v36, %v5567_v61  ;;  %v3017_v31 = vld [vmem:[%s3392_s20 + $0x111] sm:$0xff]  ;;  %v5572_v56 = vld [vmem:[#allocation30_spill] sm:$0xff] }
  0xa8   : > { %v1539_v12 = vadd.f32 %v1519_v35, %v1409_v18  ;;  %v534_v38 = vmul.f32 %v4173_v6, %v5568_v58  ;;  %v1010_v24 = vadd.f32 %v990_v52, %v879_v28  ;;  %v756_v40 = vadd.f32 %v736_v32, %v626_v22  ;;  %v5569_v35 = vld [vmem:[#allocation29_spill] sm:$0xff]  ;;  %v5570_v54 = vld [vmem:[#allocation19_spill] sm:$0xff]  ;;  %v5574_v61 = vld [vmem:[#allocation18_spill] sm:$0xff] }
  0xa9   : > { %v1337_v53 = vadd.f32 %v1317_v7, %v1205_v45  ;;  %v664_v34 = vmul.f32 %v4046_v39, %v5569_v35  ;;  %v1512_v47 = vmul.f32 %v4315_v8, %v5570_v54  ;;  %v1128_v62 = vmul.f32 %v4274_v48, %v5571_v3  ;;  %v5573_v52 = vld [vmem:[#allocation5_spill] sm:$0xff]  ;;  %v3059_v45 = vld [vmem:[%s3392_s20 + $0x112] sm:$0xff]  ;;  %s3127_s20 = sshll.u32 %s5606_s22, 3 }
  0xaa   : > { %3122 = vmatmul.msk.f32.gmra.mxu3 %vm1608_vm1, %v1539_v12  ;;  %v794_v7 = vmul.f32 %v4053_v46, %v5572_v56  ;;  %v926_v43 = vmul.f32 %v4067_v59, %v5573_v52  ;;  %v1140_v32 = vadd.f32 %v1120_v21, %v1010_v24  ;;  %v887_v18 = vadd.f32 %v867_v20, %v756_v40  ;;  %v2989_v35 = vld [vmem:[%s3346_s25 + $0xc0] sm:$0xff]  ;;  %v5575_v3 = vld [vmem:[#allocation31_spill] sm:$0xff]  ;;  %s3128_s14 = sadd.s32 4294967295, %s3127_s20 }
  0xab   : > { %v1467_v1 = vadd.f32 %v1447_v33, %v1337_v53  ;;  %v684_v28 = vadd.f32 %v664_v34, %v534_v38  ;;  %v1259_v22 = vmul.f32 %v4281_v60, %v2975_v63  ;;  %v1390_v12 = vmul.f32 %v4288_v29, %v3017_v31  ;;  %v3031_v24 = vld [vmem:[%s3346_s25 + $0xc1] sm:$0xff]  ;;  %v5577_v31 = vld [vmem:[#allocation32_spill] sm:$0xff] }
  0xac   : > { %v1056_v58 = vmul.f32 %v4082_v15, %v5574_v61  ;;  %v470_v56 = vmul.f32 %v4209_v49, %v5575_v3  ;;  %v1271_v33 = vadd.f32 %v1251_v37, %v1140_v32  ;;  %v1018_v53 = vadd.f32 %v998_v26, %v887_v18  ;;  %v3073_v20 = vld [vmem:[%s3346_s25 + $0xc2] sm:$0xff] }
  0xad   : > { %v1597_v52 = vadd.f32 %v1577_v2, %v1467_v1  ;;  %v814_v21 = vadd.f32 %v794_v7, %v684_v28  ;;  %v1520_v38 = vmul.f32 %v4315_v8, %v3059_v45  ;;  %v5576_v40 = vld [vmem:[#allocation21_spill] sm:$0xff]  ;;  %v599_v34 = vmul.f32 %v4226_v5, %v5577_v31  ;;  %v1690_v2 = vpop.f32.mrf.mxu0 }
  0xae   : > { %v1186_v63 = vmul.f32 %v4097_v41, %v5576_v40  ;;  %v5578_v61 = vld [vmem:[#allocation33_spill] sm:$0xff]  ;;  %v1402_v37 = vadd.f32 %v1382_v14, %v1271_v33  ;;  %v1148_v26 = vadd.f32 %v1128_v62, %v1018_v53  ;;  %v1318_v1 = vmul.f32 %v4104_v11, %v2989_v35  ;;  %v1830_v40 = vpop.f32.mrf.mxu1  ;;  %v5580_v33 = vld [vmem:[#allocation20_spill] sm:$0xff] }
  0xaf   : > { %v729_v3 = vmul.f32 %v4233_v13, %v5578_v61  ;;  %3094 = vmatmul.msk.f32.gmra.mxu0 %vm1608_vm1, %v1597_v52  ;;  %v946_v7 = vadd.f32 %v926_v43, %v814_v21  ;;  %v1448_v32 = vmul.f32 %v4117_v16, %v3031_v24  ;;  %v1578_v18 = vmul.f32 %v4150_v51, %v3073_v20  ;;  %v5579_v52 = vld [vmem:[#allocation8_spill] sm:$0xff]  ;;  %v3032_v20 = vld [vmem:[%s3346_s25 + $0xc9] sm:$0xff] }
  0xb0   : > { %v619_v45 = vadd.f32 %v599_v34, %v470_v56  ;;  %v860_v28 = vmul.f32 %v4247_v25, %v5560_v10  ;;  %v1532_v31 = vadd.f32 %v1512_v47, %v1402_v37  ;;  %v1279_v61 = vadd.f32 %v1259_v22, %v1148_v26 }
  0xb1   : > { %v1076_v14 = vadd.f32 %v1056_v58, %v946_v7  ;;  %v535_v62 = vmul.f32 %v4173_v6, %v4335_v50  ;;  %v991_v35 = vmul.f32 %v4262_v36, %v5561_v17  ;;  %v665_v56 = vmul.f32 %v4046_v39, %v4338_v9 }
  0xb2   : > { %v749_v43 = vadd.f32 %v729_v3, %v619_v45  ;;  %v795_v10 = vmul.f32 %v4053_v46, %v4352_v42  ;;  %3115 = vmatmul.msk.f32.gmra.mxu1 %vm1608_vm1, %v1532_v31  ;;  %v1410_v47 = vadd.f32 %v1390_v12, %v1279_v61  ;;  %v1121_v58 = vmul.f32 %v4274_v48, %v5562_v19  ;;  %v2990_v46 = vld [vmem:[%s3346_s25 + $0xc8] sm:$0xff] }
  0xb3   : > { %v1206_v22 = vadd.f32 %v1186_v63, %v1076_v14  ;;  %v1252_v6 = vmul.f32 %v4281_v60, %v5579_v52  ;;  %v1383_v17 = vmul.f32 %v4288_v29, %v5580_v33  ;;  %v685_v53 = vadd.f32 %v665_v56, %v535_v62  ;;  %v5582_v62 = vld [vmem:[#allocation24_spill] sm:$0xff] }
  0xb4   : > { %v880_v50 = vadd.f32 %v860_v28, %v749_v43  ;;  %v927_v39 = vmul.f32 %v4067_v59, %v4484_v0  ;;  %v1540_v9 = vadd.f32 %v1520_v38, %v1410_v47  ;;  %v1057_v12 = vmul.f32 %v4082_v15, %v4490_v57  ;;  %v5581_v0 = vld [vmem:[#allocation13_spill] sm:$0xff] }
  0xb5   : > { %v1338_v42 = vadd.f32 %v1318_v1, %v1206_v22  ;;  %v471_v19 = vmul.f32 %v4209_v49, %v4361_v44  ;;  %v815_v24 = vadd.f32 %v795_v10, %v685_v53  ;;  %v600_v63 = vmul.f32 %v4226_v5, %v4366_v4  ;;  %v4625_v44 = vld [vmem:[%s5355_s6] ss:$0 sm:$0xff]  ;;  %v1693_v57 = vpop.f32.mrf.mxu0  ;;  %v3074_v1 = vld [vmem:[%s3346_s25 + $0xca] sm:$0xff] }
  0xb6   : > { %v1011_v21 = vadd.f32 %v991_v35, %v880_v50  ;;  %v730_v34 = vmul.f32 %v4233_v13, %v4369_v23  ;;  %3123 = vmatmul.msk.f32.gmra.mxu3 %vm1608_vm1, %v1540_v9  ;;  %v1513_v38 = vmul.f32 %v4315_v8, %v5581_v0  ;;  %v1187_v15 = vmul.f32 %v4097_v41, %v4509_v55  ;;  %v4635_v55 = vld [vmem:[%s5356_s7] ss:$0 sm:$0xff]  ;;  %v5585_v10 = vld [vmem:[#allocation26_spill] sm:$0xff] }
  0xb7   : > { %v1468_v59 = vadd.f32 %v1448_v32, %v1338_v42  ;;  %v1319_v49 = vmul.f32 %v4104_v11, %v2990_v46  ;;  %v947_v13 = vadd.f32 %v927_v39, %v815_v24  ;;  %v620_v4 = vadd.f32 %v600_v63, %v471_v19 }
  0xb8   : > { %v1141_v5 = vadd.f32 %v1121_v58, %v1011_v21  ;;  %v861_v23 = vmul.f32 %v4247_v25, %v5565_v27  ;;  %v1449_v37 = vmul.f32 %v4117_v16, %v3032_v20  ;;  %v992_v41 = vmul.f32 %v4262_v36, %v5566_v30 }
  0xb9   : > { %v1598_v3 = vadd.f32 %v1578_v18, %v1468_v59  ;;  %v1831_v11 = vadd.f32 %v1830_v40, %v1690_v2  ;;  %v1077_v7 = vadd.f32 %v1057_v12, %v947_v13  ;;  %v750_v32 = vadd.f32 %v730_v34, %v620_v4  ;;  %v1833_v25 = vpop.f32.mrf.mxu1 }
  0xba   : > { %v1272_v26 = vadd.f32 %v1252_v6, %v1141_v5  ;;  %v4638_v45 = vstv %s3128_s14  ;;  %v1122_v2 = vmul.f32 %v4274_v48, %v5570_v54  ;;  %v3227_v18 = vmov 0.0   ;;  %v5586_v6 = vld [vmem:[#allocation27_spill] sm:$0xff] }
  0xbb   : > { %3095 = vmatmul.msk.f32.gmra.mxu0 %vm1608_vm1, %v1598_v3  ;;  %v1894_v16 = vmul.f32 %v4625_v44, %v1831_v11  ;;  %vm1982_vm2 = vcmp.ge.s32.totalorder %v4638_v45, 0  ;;  %vm1992_vm3 = vcmp.lt.s32.totalorder %v4638_v45, 16  ;;  %v1207_v27 = vadd.f32 %v1187_v15, %v1077_v7  ;;  %2032 = vst.msk [vmem:[#allocation2] sm:$0xff] %vm1608_vm1, %v3227_v18 }
  0xbc   : > { %v1403_v36 = vadd.f32 %v1383_v17, %v1272_v26  ;;  %v881_v30 = vadd.f32 %v861_v23, %v750_v32  ;;  %v1579_v28 = vmul.f32 %v4150_v51, %v3074_v1  ;;  %2033 = vst.msk [vmem:[#allocation2 + $0x8] sm:$0xff] %vm1608_vm1, %v3227_v18  ;;  %v1253_v43 = vmul.f32 %v4281_v60, %v5582_v62  ;;  %vm4656_vm4 = vmand %vm1982_vm2, %vm1992_vm3  ;;  %v4662_v51 = vpop.f32.mrf.mxu3  ;;  %v4756_v1 = vld [vmem:[%s5357_s8] ss:$0 sm:$0xff]  ;;  %v4761_v32 = vld [vmem:[%s5357_s8 + $0x1] ss:$0 sm:$0xff] }
  0xbd   : > { %v1918_v40 = vadd.f32 %v4635_v55, %v1894_v16  ;;  %v1339_v61 = vadd.f32 %v1319_v49, %v1207_v27  ;;  %2036 = vst.msk [vmem:[#allocation2 + $0x18] sm:$0xff] %vm1608_vm1, %v3227_v18  ;;  %v1834_v35 = vadd.f32 %v1833_v25, %v1693_v57  ;;  %v1384_v47 = vmul.f32 %v4288_v29, %v5585_v10  ;;  %v1696_v33 = vpop.f32.mrf.mxu0  ;;  %v2561_v62 = vld [vmem:[%s5358_s9] sm:$0xf] }
  0xbe   : > { %v1533_v31 = vadd.f32 %v1513_v38, %v1403_v36  ;;  %v1012_v14 = vadd.f32 %v992_v41, %v881_v30  ;;  %2037 = vst.msk [vmem:[#allocation2 + $0x20] sm:$0xff] %vm1608_vm1, %v3227_v18  ;;  %v1514_v50 = vmul.f32 %v4315_v8, %v5586_v6  ;;  %v1973_v20 = vadd.s32 1, %v4638_v45  ;;  %v4768_v30 = vld [vmem:[%s5357_s8 + $0x2] ss:$0 sm:$0xff]  ;;  %3137 = vmatpush.msk.msra.mxu2 %vm1669_vm0, %v2561_v62 }
  0xbf   : > { %v1938_v54 = vmax.f32 %v1918_v40, 0.0  ;;  %v1469_v56 = vadd.f32 %v1449_v37, %v1339_v61  ;;  %2039 = vst.msk [vmem:[#allocation2 + $0x30] sm:$0xff] %vm1608_vm1, %v3227_v18  ;;  %v1895_v29 = vmul.f32 %v4625_v44, %v1834_v35  ;;  %v1974_v23 = vadd.s32 2, %v4638_v45  ;;  %3159 = vmatpush.msk.msra.mxu3 %vm1669_vm0, %v2561_v62 }
  0xc0   : > { %3116 = vmatmul.msk.f32.gmra.mxu1 %vm1608_vm1, %v1533_v31  ;;  %v1142_v60 = vadd.f32 %v1122_v2, %v1012_v14  ;;  %2040 = vst.msk [vmem:[#allocation2 + $0x38] sm:$0xff] %vm1608_vm1, %v3227_v18  ;;  %vm1983_vm6 = vcmp.ge.s32.totalorder %v1973_v20, 0  ;;  %vm1993_vm7 = vcmp.lt.s32.totalorder %v1973_v20, 16  ;;  %v4778_v14 = vld [vmem:[%s5357_s8 + $0x3] ss:$0 sm:$0xff] }
  0xc1   : > { %v2012_v22 = vsel %vm4656_vm4, %v1938_v54, 0.0  ;;  %v1599_v58 = vadd.f32 %v1579_v28, %v1469_v56  ;;  %2042 = vst.msk [vmem:[#allocation2 + $0x48] sm:$0xff] %vm1608_vm1, %v3227_v18  ;;  %v1836_v53 = vpop.f32.mrf.mxu1  ;;  %v1919_v8 = vadd.f32 %v4635_v55, %v1895_v29  ;;  %vm2003_vm8 = vmand %vm1983_vm6, %vm1993_vm7  ;;  %vm1984_vm9 = vcmp.ge.s32.totalorder %v1974_v23, 0 }
  0xc2   : > { %v1273_v52 = vadd.f32 %v1253_v43, %v1142_v60  ;;  %2063 = vst.msk [vmem:[#allocation2 + $0x1] sm:$0xff] %vm1608_vm1, %v2012_v22  ;;  %v1837_v9 = vadd.f32 %v1836_v53, %v1696_v33  ;;  %vm1994_vm10 = vcmp.lt.s32.totalorder %v1974_v23, 16  ;;  %v4801_v33 = vld [vmem:[%s5357_s8 + $0x5] ss:$0 sm:$0xff] }
  0xc3   : > { %3096 = vmatmul.msk.f32.gmra.mxu0 %vm1608_vm1, %v1599_v58  ;;  %2043 = vst.msk [vmem:[#allocation2 + $0x50] sm:$0xff] %vm1608_vm1, %v3227_v18  ;;  %v1939_v42 = vmax.f32 %v1919_v8, 0.0  ;;  %vm4749_vm11 = vmand %vm1984_vm9, %vm1994_vm10 }
  0xc4   : > { %v1404_v17 = vadd.f32 %v1384_v47, %v1273_v52  ;;  %2045 = vst.msk [vmem:[#allocation2 + $0x60] sm:$0xff] %vm1608_vm1, %v3227_v18  ;;  %v4694_v46 = vpop.f32.mrf.mxu3  ;;  %v1896_v19 = vmul.f32 %v4625_v44, %v1837_v9 }
  0xc5   : > { %2046 = vst.msk [vmem:[#allocation2 + $0x68] sm:$0xff] %vm1608_vm1, %v3227_v18  ;;  %v2013_v24 = vsel %vm4656_vm4, %v1939_v42, 0.0  ;;  %v4807_v42 = vld [vmem:[%s5357_s8 + $0x6] ss:$0 sm:$0xff] }
  0xc6   : > { %v1534_v39 = vadd.f32 %v1514_v50, %v1404_v17  ;;  %2048 = vst.msk [vmem:[#allocation2 + $0x78] sm:$0xff] %vm1608_vm1, %v3227_v18  ;;  %v1699_v12 = vpop.f32.mrf.mxu0  ;;  %v1920_v34 = vadd.f32 %v4635_v55, %v1896_v19  ;;  %v4796_v50 = vld [vmem:[%s5357_s8 + $0x4] ss:$0 sm:$0xff] }
  0xc7   : > { %2049 = vst.msk [vmem:[#allocation2 + $0x80] sm:$0xff] %vm1608_vm1, %v3227_v18 }
  0xc8   : > { %3117 = vmatmul.msk.f32.gmra.mxu1 %vm1608_vm1, %v1534_v39  ;;  %2051 = vst.msk [vmem:[#allocation2 + $0x90] sm:$0xff] %vm1608_vm1, %v3227_v18  ;;  %v1940_v15 = vmax.f32 %v1920_v34, 0.0 }
  0xc9   : > { %2052 = vst.msk [vmem:[#allocation2 + $0x98] sm:$0xff] %vm1608_vm1, %v3227_v18  ;;  %v2083_v25 = vld [vmem:[#allocation2] sm:$0xff] }
  0xca   : > { %2054 = vst.msk [vmem:[#allocation2 + $0xa8] sm:$0xff] %vm1608_vm1, %v3227_v18  ;;  %v2014_v5 = vsel %vm2003_vm8, %v1940_v15, 0.0  ;;  %v2135_v16 = vld [vmem:[#allocation2 + $0x1] sm:$0xff]  ;;  %v2103_v31 = vmul.f32 %v4756_v1, %v2083_v25 }
  0xcb   : > { %2055 = vst.msk [vmem:[#allocation2 + $0xb0] sm:$0xff] %vm1608_vm1, %v3227_v18  ;;  %v2156_v61 = vmul.f32 %v4761_v32, %v2135_v16 }
  0xcc   : > { %2057 = vst.msk [vmem:[#allocation2 + $0xc0] sm:$0xff] %vm1608_vm1, %v3227_v18  ;;  %v4721_v0 = vpop.f32.mrf.mxu3 }
  0xcd   : > { %2058 = vst.msk [vmem:[#allocation2 + $0xc8] sm:$0xff] %vm1608_vm1, %v3227_v18  ;;  %v1839_v21 = vpop.f32.mrf.mxu1  ;;  %v2172_v10 = vadd.f32 %v2156_v61, %v2103_v31 }
  0xce   : > { %2060 = vst.msk [vmem:[#allocation2 + $0xd8] sm:$0xff] %vm1608_vm1, %v3227_v18  ;;  %v1840_v63 = vadd.f32 %v1839_v21, %v1699_v12 }
  0xcf   : > { %2061 = vst.msk [vmem:[#allocation2 + $0xe0] sm:$0xff] %vm1608_vm1, %v3227_v18 }
  0xd0   : > { %2035 = vst.msk [vmem:[#allocation2 + $0x10] sm:$0x3] %vm2034_vm5, %v3227_v18  ;;  %v1897_v59 = vmul.f32 %v4625_v44, %v1840_v63 }
  0xd1   : > { %2064 = vst.msk [vmem:[#allocation2 + $0x9] sm:$0xff] %vm1608_vm1, %v2013_v24  ;;  %v1702_v13 = vpop.f32.mrf.mxu0  ;;  %v1975_v24 = vadd.s32 3, %v4638_v45 }
  0xd2   : > { %2038 = vst.msk [vmem:[#allocation2 + $0x28] sm:$0x3] %vm2034_vm5, %v3227_v18  ;;  %v1921_v38 = vadd.f32 %v4635_v55, %v1897_v59 }
  0xd3   : > { %2041 = vst.msk [vmem:[#allocation2 + $0x40] sm:$0x3] %vm2034_vm5, %v3227_v18  ;;  %vm1985_vm12 = vcmp.ge.s32.totalorder %v1975_v24, 0  ;;  %vm1995_vm13 = vcmp.lt.s32.totalorder %v1975_v24, 16 }
  0xd4   : > { %2044 = vst.msk [vmem:[#allocation2 + $0x58] sm:$0x3] %vm2034_vm5, %v3227_v18  ;;  %v1941_v49 = vmax.f32 %v1921_v38, 0.0  ;;  %v4744_v3 = vpop.f32.mrf.mxu3  ;;  %vm4833_vm14 = vmand %vm1985_vm12, %vm1995_vm13 }
  0xd5   : > { %2047 = vst.msk [vmem:[#allocation2 + $0x70] sm:$0x3] %vm2034_vm5, %v3227_v18 }
  0xd6   : > { %2050 = vst.msk [vmem:[#allocation2 + $0x88] sm:$0x3] %vm2034_vm5, %v3227_v18  ;;  %v2015_v4 = vsel %vm2003_vm8, %v1941_v49, 0.0 }
  0xd7   : > { %2053 = vst.msk [vmem:[#allocation2 + $0xa0] sm:$0x3] %vm2034_vm5, %v3227_v18 }
  0xd8   : > { %2056 = vst.msk [vmem:[#allocation2 + $0xb8] sm:$0x3] %vm2034_vm5, %v3227_v18  ;;  %v2188_v2 = vld [vmem:[#allocation2 + $0x2] sm:$0xff]  ;;  %v2189_v58 = vld [vmem:[#allocation2 + $0xa] sm:$0xff] }
  0xd9   : > { %2059 = vst.msk [vmem:[#allocation2 + $0xd0] sm:$0x3] %vm2034_vm5, %v3227_v18  ;;  %v2136_v28 = vld [vmem:[#allocation2 + $0x9] sm:$0xff]  ;;  %v2209_v54 = vmul.f32 %v4768_v30, %v2188_v2  ;;  %v2210_v12 = vmul.f32 %v4768_v30, %v2189_v58  ;;  %v4840_v2 = vld [vmem:[%s5357_s8 + $0x8] ss:$0 sm:$0xff] }
  0xda   : > { %2062 = vst.msk [vmem:[#allocation2 + $0xe8] sm:$0x3] %vm2034_vm5, %v3227_v18  ;;  %v1842_v57 = vpop.f32.mrf.mxu1  ;;  %v2084_v18 = vld [vmem:[#allocation2 + $0x8] sm:$0xff]  ;;  %v2157_v56 = vmul.f32 %v4761_v32, %v2136_v28 }
  0xdb   : > { %2065 = vst.msk [vmem:[#allocation2 + $0x19] sm:$0xff] %vm1608_vm1, %v2014_v5  ;;  %v1843_v37 = vadd.f32 %v1842_v57, %v1702_v13  ;;  %v2104_v35 = vmul.f32 %v4756_v1, %v2084_v18  ;;  %v2225_v6 = vadd.f32 %v2209_v54, %v2172_v10 }
  0xdc   : > { %2066 = vst.msk [vmem:[#allocation2 + $0x21] sm:$0xff] %vm1608_vm1, %v2015_v4  ;;  %v4771_v40 = vpop.f32.mrf.mxu3 }
  0xdd   : > { %v1898_v41 = vmul.f32 %v4625_v44, %v1843_v37  ;;  %v2173_v29 = vadd.f32 %v2157_v56, %v2104_v35 }
  0xde   : > { %v1705_v27 = vpop.f32.mrf.mxu0 }
  0xdf   : > { %v1922_v11 = vadd.f32 %v4635_v55, %v1898_v41  ;;  %v2226_v15 = vadd.f32 %v2210_v12, %v2173_v29 }
  0xe1   : > { %v1942_v7 = vmax.f32 %v1922_v11, 0.0  ;;  %v4827_v11 = vld [vmem:[%s5357_s8 + $0x7] ss:$0 sm:$0xff] }
  0xe2   : > { %v4783_v43 = vld [vmem:[#allocation2 + $0x18] sm:$0xff] }
  0xe3   : > { %v2016_v36 = vsel %vm4749_vm11, %v1942_v7, 0.0  ;;  %v2263_v47 = vmul.f32 %v4778_v14, %v4783_v43  ;;  %v2243_v52 = vld [vmem:[#allocation2 + $0x20] sm:$0xff] }
  0xe4   : > { %2067 = vst.msk [vmem:[#allocation2 + $0x31] sm:$0xff] %vm1608_vm1, %v2016_v36  ;;  %v2295_v53 = vld [vmem:[#allocation2 + $0x19] sm:$0xff]  ;;  %v2264_v19 = vmul.f32 %v4778_v14, %v2243_v52  ;;  %v2296_v13 = vld [vmem:[#allocation2 + $0x21] sm:$0xff] }
  0xe5   : > { %v2348_v39 = vld [vmem:[#allocation2 + $0x1a] sm:$0xff]  ;;  %v2279_v9 = vadd.f32 %v2263_v47, %v2225_v6  ;;  %v2316_v59 = vmul.f32 %v4796_v50, %v2295_v53  ;;  %v2317_v26 = vmul.f32 %v4796_v50, %v2296_v13  ;;  %v2349_v16 = vld [vmem:[#allocation2 + $0x22] sm:$0xff] }
  0xe6   : > { %v2369_v38 = vmul.f32 %v4801_v33, %v2348_v39  ;;  %v2280_v57 = vadd.f32 %v2264_v19, %v2226_v15  ;;  %v2370_v61 = vmul.f32 %v4801_v33, %v2349_v16  ;;  %v2106_v19 = vmul.f32 %v4756_v1, %v2243_v52 }
  0xe7   : > { %v1845_v48 = vpop.f32.mrf.mxu1  ;;  %v2332_v4 = vadd.f32 %v2316_v59, %v2279_v9 }
  0xe8   : > { %v1846_v60 = vadd.f32 %v1845_v48, %v1705_v27  ;;  %v4814_v63 = vpop.f32.mrf.mxu3  ;;  %v2333_v18 = vadd.f32 %v2317_v26, %v2280_v57  ;;  %v1979_v48 = vadd.s32 7, %v4638_v45 }
  0xe9   : > { %v2385_v41 = vadd.f32 %v2369_v38, %v2332_v4 }
  0xea   : > { %v1899_v22 = vmul.f32 %v4625_v44, %v1846_v60  ;;  %v2386_v47 = vadd.f32 %v2370_v61, %v2333_v18  ;;  %vm1989_vm15 = vcmp.ge.s32.totalorder %v1979_v48, 0  ;;  %vm1999_vm0 = vcmp.lt.s32.totalorder %v1979_v48, 16 }
  0xeb   : > { %v1708_v8 = vpop.f32.mrf.mxu0  ;;  %v4812_v20 = vld [vmem:[#allocation2 + $0x30] sm:$0xff]  ;;  %vm4875_vm2 = vmand %vm1989_vm15, %vm1999_vm0 }
  0xec   : > { %v1923_v17 = vadd.f32 %v4635_v55, %v1899_v22  ;;  %v2423_v23 = vmul.f32 %v4807_v42, %v4812_v20  ;;  %v4831_v25 = vld [vmem:[#allocation2 + $0x31] sm:$0xff]  ;;  %v2265_v15 = vmul.f32 %v4778_v14, %v4812_v20 }
  0xed   : > { %v2476_v31 = vmul.f32 %v4827_v11, %v4831_v25 }
  0xee   : > { %v1943_v21 = vmax.f32 %v1923_v17, 0.0  ;;  %v2439_v27 = vadd.f32 %v2423_v23, %v2385_v41  ;;  %v2105_v17 = vmul.f32 %v4756_v1, %v4783_v43  ;;  %v2212_v41 = vmul.f32 %v4768_v30, %v2349_v16 }
  0xef   : > { %v1848_v34 = vpop.f32.mrf.mxu1 }
  0xf0   : > { %v2017_v49 = vsel %vm4749_vm11, %v1943_v21, 0.0  ;;  %v1849_v5 = vadd.f32 %v1848_v34, %v1708_v8  ;;  %v2492_v60 = vadd.f32 %v2476_v31, %v2439_v27  ;;  %v2158_v8 = vmul.f32 %v4761_v32, %v2295_v53 }
  0xf1   : > { %2068 = vst.msk [vmem:[#allocation2 + $0x39] sm:$0xff] %vm1608_vm1, %v2017_v49  ;;  %v2159_v21 = vmul.f32 %v4761_v32, %v2296_v13  ;;  %v2160_v49 = vmul.f32 %v4761_v32, %v4831_v25 }
  0xf2   : > { %v1900_v37 = vmul.f32 %v4625_v44, %v1849_v5  ;;  %v2174_v52 = vadd.f32 %v2158_v8, %v2105_v17  ;;  %v1976_v17 = vadd.s32 4, %v4638_v45 }
  0xf3   : > { %v2175_v13 = vadd.f32 %v2159_v21, %v2106_v19 }
  0xf4   : > { %v1924_v7 = vadd.f32 %v4635_v55, %v1900_v37  ;;  %vm1986_vm3 = vcmp.ge.s32.totalorder %v1976_v17, 0  ;;  %vm1996_vm4 = vcmp.lt.s32.totalorder %v1976_v17, 16 }
  0xf5   : > { %v2228_v61 = vadd.f32 %v2212_v41, %v2175_v13  ;;  %vm4925_vm5 = vmand %vm1986_vm3, %vm1996_vm4 }
  0xf6   : > { %v1944_v28 = vmax.f32 %v1924_v7, 0.0 }
  0xf8   : > { %v2018_v62 = vsel %vm4833_vm14, %v1944_v28, 0.0  ;;  %v4848_v54 = vld [vmem:[#allocation2 + $0x32] sm:$0xff]  ;;  %v1711_v6 = vpop.f32.mrf.mxu0  ;;  %v4871_v38 = vld [vmem:[#allocation2 + $0x3a] sm:$0xff] }
  0xf9   : > { %v4850_v35 = vld [vmem:[#allocation2 + $0x38] sm:$0xff]  ;;  %2069 = vst.msk [vmem:[#allocation2 + $0x49] sm:$0xff] %vm1608_vm1, %v2018_v62  ;;  %v1872_v56 = vpop.f32.mrf.mxu3  ;;  %v2529_v10 = vmul.f32 %v4840_v2, %v4848_v54  ;;  %v2530_v37 = vmul.f32 %v4840_v2, %v4871_v38  ;;  %v2318_v62 = vmul.f32 %v4796_v50, %v4831_v25  ;;  %v2371_v16 = vmul.f32 %v4801_v33, %v4848_v54 }
  0xfa   : > { %v2424_v22 = vmul.f32 %v4807_v42, %v4850_v35  ;;  %v1873_v58 = vadd.f32 %v1872_v56, %v4662_v51  ;;  %v4858_v29 = vld [vmem:[#allocation2 + $0x39] sm:$0xff]  ;;  %v2211_v51 = vmul.f32 %v4768_v30, %v2348_v39  ;;  %v2266_v26 = vmul.f32 %v4778_v14, %v4850_v35 }
  0xfb   : > { %v2545_v9 = vadd.f32 %v2529_v10, %v2492_v60  ;;  %v2477_v43 = vmul.f32 %v4827_v11, %v4858_v29 }
  0xfc   : > { %v2440_v12 = vadd.f32 %v2424_v22, %v2386_v47  ;;  %v1908_v24 = vmul.f32 %v4625_v44, %v1873_v58  ;;  %v1851_v34 = vpop.f32.mrf.mxu1  ;;  %v2227_v23 = vadd.f32 %v2211_v51, %v2174_v52  ;;  %v2282_v56 = vadd.f32 %v2266_v26, %v2228_v61 }
  0xfd   : > { %v1852_v59 = vadd.f32 %v1851_v34, %v1711_v6  ;;  %3138 = vmatmul.msk.f32.vlgmr.msra.gmra.mxu2 %vm1608_vm1, %v2545_v9  ;;  %v2319_v6 = vmul.f32 %v4796_v50, %v4858_v29 }
  0xfe   : > { %v1932_v53 = vadd.f32 %v4635_v55, %v1908_v24  ;;  %v2493_v5 = vadd.f32 %v2477_v43, %v2440_v12  ;;  %v2281_v27 = vadd.f32 %v2265_v15, %v2227_v23 }
  0xff   : > { %v1901_v39 = vmul.f32 %v4625_v44, %v1852_v59  ;;  %v2335_v19 = vadd.f32 %v2319_v6, %v2282_v56 }
 0x100   : > { %v1952_v4 = vmax.f32 %v1932_v53, 0.0  ;;  %v2546_v28 = vadd.f32 %v2530_v37, %v2493_v5  ;;  %v4889_v31 = vld [vmem:[#allocation2 + $0x48] sm:$0xff]  ;;  %v2334_v10 = vadd.f32 %v2318_v62, %v2281_v27  ;;  %v1980_v27 = vadd.s32 8, %v4638_v45 }
 0x101   : > { %v1925_v57 = vadd.f32 %v4635_v55, %v1901_v39  ;;  %v2425_v47 = vmul.f32 %v4807_v42, %v4889_v31  ;;  %v4906_v12 = vld [vmem:[#allocation2 + $0x49] sm:$0xff] }
 0x102   : > { %v2026_v7 = vsel %vm4875_vm2, %v1952_v4, 0.0  ;;  %v2387_v36 = vadd.f32 %v2371_v16, %v2334_v10  ;;  %v2478_v59 = vmul.f32 %v4827_v11, %v4906_v12  ;;  %v2161_v10 = vmul.f32 %v4761_v32, %v4858_v29 }
 0x103   : > { %2077 = vst.msk [vmem:[#allocation2 + $0xa9] sm:$0xff] %vm1608_vm1, %v2026_v7  ;;  %v1945_v18 = vmax.f32 %v1925_v57, 0.0  ;;  %vm1990_vm6 = vcmp.ge.s32.totalorder %v1980_v27, 0  ;;  %vm2000_vm7 = vcmp.lt.s32.totalorder %v1980_v27, 16 }
 0x104   : > { %v2441_v24 = vadd.f32 %v2425_v47, %v2387_v36  ;;  %vm4959_vm8 = vmand %vm1990_vm6, %vm2000_vm7 }
 0x105   : > { %v2019_v48 = vsel %vm4833_vm14, %v1945_v18, 0.0  ;;  %3139 = vmatmul.msk.f32.gmra.mxu2 %vm1608_vm1, %v2546_v28  ;;  %v1714_v58 = vpop.f32.mrf.mxu0  ;;  %v2107_v18 = vmul.f32 %v4756_v1, %v4812_v20  ;;  %v2213_v20 = vmul.f32 %v4768_v30, %v4848_v54 }
 0x106   : > { %2070 = vst.msk [vmem:[#allocation2 + $0x51] sm:$0xff] %vm1608_vm1, %v2019_v48  ;;  %v2494_v5 = vadd.f32 %v2478_v59, %v2441_v24 }
 0x107   : > { %v1875_v60 = vpop.f32.mrf.mxu3 }
 0x108   : > { %v1876_v22 = vadd.f32 %v1875_v60, %v4694_v46  ;;  %v2372_v46 = vmul.f32 %v4801_v33, %v4871_v38  ;;  %v2108_v60 = vmul.f32 %v4756_v1, %v4850_v35 }
 0x10a   : > { %v1909_v8 = vmul.f32 %v4625_v44, %v1876_v22  ;;  %v1854_v9 = vpop.f32.mrf.mxu1  ;;  %v2388_v52 = vadd.f32 %v2372_v46, %v2335_v19  ;;  %v2176_v22 = vadd.f32 %v2160_v49, %v2107_v18  ;;  %v2177_v29 = vadd.f32 %v2161_v10, %v2108_v60 }
 0x10b   : > { %v1855_v21 = vadd.f32 %v1854_v9, %v1714_v58  ;;  %v2214_v19 = vmul.f32 %v4768_v30, %v4871_v38  ;;  %v1977_v49 = vadd.s32 5, %v4638_v45 }
 0x10c   : > { %v1933_v34 = vadd.f32 %v4635_v55, %v1909_v8  ;;  %v2229_v54 = vadd.f32 %v2213_v20, %v2176_v22 }
 0x10d   : > { %v1902_v51 = vmul.f32 %v4625_v44, %v1855_v21  ;;  %v4914_v53 = vld [vmem:[#allocation2 + $0x4a] sm:$0xff]  ;;  %v4943_v48 = vld [vmem:[#allocation2 + $0x52] sm:$0xff]  ;;  %vm1987_vm9 = vcmp.ge.s32.totalorder %v1977_v49, 0  ;;  %vm1997_vm10 = vcmp.lt.s32.totalorder %v1977_v49, 16 }
 0x10e   : > { %v1953_v43 = vmax.f32 %v1933_v34, 0.0  ;;  %v4916_v15 = vld [vmem:[#allocation2 + $0x50] sm:$0xff]  ;;  %v2531_v13 = vmul.f32 %v4840_v2, %v4914_v53  ;;  %v2532_v17 = vmul.f32 %v4840_v2, %v4943_v48  ;;  %v2373_v38 = vmul.f32 %v4801_v33, %v4914_v53  ;;  %vm5005_vm11 = vmand %vm1987_vm9, %vm1997_vm10 }
 0x10f   : > { %v1926_v39 = vadd.f32 %v4635_v55, %v1902_v51  ;;  %v2426_v4 = vmul.f32 %v4807_v42, %v4916_v15  ;;  %v4929_v37 = vld [vmem:[#allocation2 + $0x51] sm:$0xff]  ;;  %v2268_v46 = vmul.f32 %v4778_v14, %v4916_v15  ;;  %v2320_v51 = vmul.f32 %v4796_v50, %v4906_v12 }
 0x110   : > { %v2027_v23 = vsel %vm4875_vm2, %v1953_v43, 0.0  ;;  %v2547_v26 = vadd.f32 %v2531_v13, %v2494_v5  ;;  %v2479_v61 = vmul.f32 %v4827_v11, %v4929_v37  ;;  %v2321_v27 = vmul.f32 %v4796_v50, %v4929_v37 }
 0x111   : > { %2078 = vst.msk [vmem:[#allocation2 + $0xb1] sm:$0xff] %vm1608_vm1, %v2027_v23  ;;  %v1946_v41 = vmax.f32 %v1926_v39, 0.0  ;;  %v2442_v7 = vadd.f32 %v2426_v4, %v2388_v52  ;;  %v1717_v16 = vpop.f32.mrf.mxu0  ;;  %v2230_v39 = vadd.f32 %v2214_v19, %v2177_v29 }
 0x112   : > { %3140 = vmatmul.msk.f32.gmra.mxu2 %vm1608_vm1, %v2547_v26 }
 0x113   : > { %v2020_v28 = vsel %vm4925_vm5, %v1946_v41, 0.0  ;;  %v1878_v62 = vpop.f32.mrf.mxu3  ;;  %v2495_v25 = vadd.f32 %v2479_v61, %v2442_v7  ;;  %v2284_v23 = vadd.f32 %v2268_v46, %v2230_v39  ;;  %v2109_v39 = vmul.f32 %v4756_v1, %v4889_v31 }
 0x114   : > { %2071 = vst.msk [vmem:[#allocation2 + $0x61] sm:$0xff] %vm1608_vm1, %v2020_v28  ;;  %v1879_v56 = vadd.f32 %v1878_v62, %v4721_v0  ;;  %v2267_v0 = vmul.f32 %v4778_v14, %v4889_v31 }
 0x115   : > { %v2548_v8 = vadd.f32 %v2532_v17, %v2495_v25  ;;  %v2337_v62 = vadd.f32 %v2321_v27, %v2284_v23  ;;  %v2374_v25 = vmul.f32 %v4801_v33, %v4943_v48  ;;  %v2163_v23 = vmul.f32 %v4761_v32, %v4929_v37 }
 0x116   : > { %v1857_v47 = vpop.f32.mrf.mxu1  ;;  %v1910_v58 = vmul.f32 %v4625_v44, %v1879_v56  ;;  %v2283_v34 = vadd.f32 %v2267_v0, %v2229_v54 }
 0x117   : > { %v1858_v6 = vadd.f32 %v1857_v47, %v1717_v16  ;;  %v2390_v22 = vadd.f32 %v2374_v25, %v2337_v62 }
 0x118   : > { %v1934_v36 = vadd.f32 %v4635_v55, %v1910_v58  ;;  %v2336_v13 = vadd.f32 %v2320_v51, %v2283_v34  ;;  %v1981_v34 = vadd.s32 9, %v4638_v45  ;;  %v5051_v62 = vld [vmem:[#allocation2 + $0xb0] sm:$0xff] }
 0x119   : > { %v1903_v35 = vmul.f32 %v4625_v44, %v1858_v6 }
 0x11a   : > { %v1954_v21 = vmax.f32 %v1934_v36, 0.0  ;;  %3141 = vmatmul.msk.f32.gmra.mxu2 %vm1608_vm1, %v2548_v8  ;;  %v2389_v7 = vadd.f32 %v2373_v38, %v2336_v13  ;;  %v2215_v13 = vmul.f32 %v4768_v30, %v4914_v53  ;;  %vm1991_vm12 = vcmp.ge.s32.totalorder %v1981_v34, 0 }
 0x11b   : > { %v1927_v24 = vadd.f32 %v4635_v55, %v1903_v35  ;;  %v4971_v59 = vld [vmem:[#allocation2 + $0x60] sm:$0xff]  ;;  %vm2001_vm13 = vcmp.lt.s32.totalorder %v1981_v34, 16 }
 0x11c   : > { %v2028_v43 = vsel %vm4959_vm8, %v1954_v21, 0.0  ;;  %v2427_v4 = vmul.f32 %v4807_v42, %v4971_v59  ;;  %v4987_v28 = vld [vmem:[#allocation2 + $0x61] sm:$0xff]  ;;  %v2269_v37 = vmul.f32 %v4778_v14, %v4971_v59  ;;  %vm5046_vm14 = vmand %vm1991_vm12, %vm2001_vm13 }
 0x11d   : > { %v1947_v52 = vmax.f32 %v1927_v24, 0.0  ;;  %2079 = vst.msk [vmem:[#allocation2 + $0xc1] sm:$0xff] %vm1608_vm1, %v2028_v43  ;;  %v2480_v56 = vmul.f32 %v4827_v11, %v4987_v28 }
 0x11e   : > { %v1720_v26 = vpop.f32.mrf.mxu0  ;;  %v2443_v61 = vadd.f32 %v2427_v4, %v2389_v7  ;;  %v2110_v4 = vmul.f32 %v4756_v1, %v4916_v15  ;;  %v5037_v7 = vld [vmem:[#allocation2 + $0xa8] sm:$0xff] }
 0x11f   : > { %v2021_v5 = vsel %vm4925_vm5, %v1947_v52, 0.0  ;;  %v2117_v25 = vmul.f32 %v4756_v1, %v5037_v7 }
 0x120   : > { %2072 = vst.msk [vmem:[#allocation2 + $0x69] sm:$0xff] %vm1608_vm1, %v2021_v5  ;;  %v2496_v10 = vadd.f32 %v2480_v56, %v2443_v61  ;;  %v2162_v5 = vmul.f32 %v4761_v32, %v4906_v12  ;;  %v5039_v12 = vld [vmem:[#allocation2 + $0xa9] sm:$0xff]  ;;  %v2179_v61 = vadd.f32 %v2163_v23, %v2110_v4 }
 0x121   : > { %v1881_v41 = vpop.f32.mrf.mxu3 }
 0x122   : > { %v1882_v18 = vadd.f32 %v1881_v41, %v4744_v3  ;;  %v1860_v57 = vpop.f32.mrf.mxu1  ;;  %v2178_v15 = vadd.f32 %v2162_v5, %v2109_v39  ;;  %v5086_v39 = vld [vmem:[#allocation2 + $0xb2] sm:$0xff] }
 0x123   : > { %v1861_v20 = vadd.f32 %v1860_v57, %v1720_v26 }
 0x124   : > { %v1911_v16 = vmul.f32 %v4625_v44, %v1882_v18  ;;  %v5044_v18 = vld [vmem:[#allocation2 + $0xaa] sm:$0xff]  ;;  %v2231_v56 = vadd.f32 %v2215_v13, %v2178_v15  ;;  %v2224_v15 = vmul.f32 %v4768_v30, %v5086_v39 }
 0x125   : > { %v1904_v3 = vmul.f32 %v4625_v44, %v1861_v20 }
 0x126   : > { %v1935_v60 = vadd.f32 %v4635_v55, %v1911_v16  ;;  %v5053_v16 = vld [vmem:[#allocation2 + $0xb1] sm:$0xff] }
 0x127   : > { %v4996_v47 = vld [vmem:[#allocation2 + $0x62] sm:$0xff]  ;;  %v1928_v17 = vadd.f32 %v4635_v55, %v1904_v3  ;;  %v5021_v9 = vld [vmem:[#allocation2 + $0x6a] sm:$0xff] }
 0x128   : > { %v4998_v58 = vld [vmem:[#allocation2 + $0x68] sm:$0xff]  ;;  %v1955_v6 = vmax.f32 %v1935_v60, 0.0  ;;  %v2533_v0 = vmul.f32 %v4840_v2, %v4996_v47  ;;  %v2534_v31 = vmul.f32 %v4840_v2, %v5021_v9  ;;  %v2170_v60 = vmul.f32 %v4761_v32, %v5039_v12 }
 0x129   : > { %v2428_v54 = vmul.f32 %v4807_v42, %v4998_v58  ;;  %v5009_v35 = vld [vmem:[#allocation2 + $0x69] sm:$0xff]  ;;  %v1948_v29 = vmax.f32 %v1928_v17, 0.0  ;;  %v2270_v17 = vmul.f32 %v4778_v14, %v4998_v58  ;;  %v2375_v34 = vmul.f32 %v4801_v33, %v4996_v47 }
 0x12a   : > { %v2029_v8 = vsel %vm4959_vm8, %v1955_v6, 0.0  ;;  %v2549_v19 = vadd.f32 %v2533_v0, %v2496_v10  ;;  %v2481_v46 = vmul.f32 %v4827_v11, %v5009_v35  ;;  %v2223_v10 = vmul.f32 %v4768_v30, %v5044_v18 }
 0x12b   : > { %v2444_v21 = vadd.f32 %v2428_v54, %v2390_v22  ;;  %2080 = vst.msk [vmem:[#allocation2 + $0xc9] sm:$0xff] %vm1608_vm1, %v2029_v8  ;;  %v2022_v24 = vsel %vm5005_vm11, %v1948_v29, 0.0  ;;  %v5063_v22 = vld [vmem:[#allocation2 + $0xc0] sm:$0xff]  ;;  %v2216_v6 = vmul.f32 %v4768_v30, %v4943_v48  ;;  %v2285_v54 = vadd.f32 %v2269_v37, %v2231_v56 }
 0x12c   : > { %3142 = vmatmul.msk.f32.gmra.mxu2 %vm1608_vm1, %v2549_v19  ;;  %2073 = vst.msk [vmem:[#allocation2 + $0x79] sm:$0xff] %vm1608_vm1, %v2022_v24  ;;  %v1723_v52 = vpop.f32.mrf.mxu0  ;;  %v2118_v8 = vmul.f32 %v4756_v1, %v5051_v62  ;;  %v2171_v29 = vmul.f32 %v4761_v32, %v5053_v16  ;;  %v2322_v48 = vmul.f32 %v4796_v50, %v4987_v28 }
 0x12d   : > { %v1884_v51 = vpop.f32.mrf.mxu3  ;;  %v2497_v38 = vadd.f32 %v2481_v46, %v2444_v21  ;;  %v2232_v24 = vadd.f32 %v2216_v6, %v2179_v61  ;;  %v2186_v46 = vadd.f32 %v2170_v60, %v2117_v25  ;;  %v2323_v36 = vmul.f32 %v4796_v50, %v5009_v35 }
 0x12e   : > { %v1885_v43 = vadd.f32 %v1884_v51, %v4771_v40  ;;  %v2277_v51 = vmul.f32 %v4778_v14, %v5063_v22  ;;  %v2338_v13 = vadd.f32 %v2322_v48, %v2285_v54  ;;  %v2164_v56 = vmul.f32 %v4761_v32, %v4987_v28 }
 0x12f   : > { %v1863_v40 = vpop.f32.mrf.mxu1  ;;  %v2550_v27 = vadd.f32 %v2534_v31, %v2497_v38  ;;  %v2286_v38 = vadd.f32 %v2270_v17, %v2232_v24  ;;  %v2239_v23 = vadd.f32 %v2223_v10, %v2186_v46  ;;  %v1978_v31 = vadd.s32 6, %v4638_v45 }
 0x130   : > { %v1912_v41 = vmul.f32 %v4625_v44, %v1885_v43  ;;  %v1864_v26 = vadd.f32 %v1863_v40, %v1723_v52  ;;  %v2111_v45 = vmul.f32 %v4756_v1, %v4971_v59 }
 0x131   : > { %vm1988_vm15 = vcmp.ge.s32.totalorder %v1978_v31, 0  ;;  %vm1998_vm0 = vcmp.lt.s32.totalorder %v1978_v31, 16 }
 0x132   : > { %v1936_v53 = vadd.f32 %v4635_v55, %v1912_v41  ;;  %v1905_v57 = vmul.f32 %v4625_v44, %v1864_v26  ;;  %v2187_v41 = vadd.f32 %v2171_v29, %v2118_v8  ;;  %v5093_v26 = vld [vmem:[#allocation2 + $0xc1] sm:$0xff]  ;;  %vm5139_vm2 = vmand %vm1988_vm15, %vm1998_vm0 }
 0x133   : > { %v5076_v21 = vld [vmem:[#allocation2 + $0x78] sm:$0xff]  ;;  %v5099_v37 = vld [vmem:[#allocation2 + $0xc8] sm:$0xff] }
 0x134   : > { %v1956_v20 = vmax.f32 %v1936_v53, 0.0  ;;  %3143 = vmatmul.msk.f32.gmra.mxu2 %vm1608_vm1, %v2550_v27  ;;  %v1929_v3 = vadd.f32 %v4635_v55, %v1905_v57  ;;  %v2429_v4 = vmul.f32 %v4807_v42, %v5076_v21  ;;  %v2391_v53 = vadd.f32 %v2375_v34, %v2338_v13  ;;  %v5110_v10 = vld [vmem:[#allocation2 + $0xc2] sm:$0xff] }
 0x135   : > { %v2293_v27 = vadd.f32 %v2277_v51, %v2239_v23  ;;  %v2240_v6 = vadd.f32 %v2224_v15, %v2187_v41  ;;  %v2278_v59 = vmul.f32 %v4778_v14, %v5099_v37  ;;  %v2383_v48 = vmul.f32 %v4801_v33, %v5110_v10  ;;  %v5133_v13 = vld [vmem:[#allocation2 + $0xc9] sm:$0xff] }
 0x136   : > { %v2030_v0 = vsel %vm5046_vm14, %v1956_v20, 0.0  ;;  %v1949_v19 = vmax.f32 %v1929_v3, 0.0  ;;  %v5102_v20 = vld [vmem:[#allocation2 + $0x79] sm:$0xff]  ;;  %v2445_v60 = vadd.f32 %v2429_v4, %v2391_v53  ;;  %v2330_v3 = vmul.f32 %v4796_v50, %v5093_v26 }
 0x137   : > { %2081 = vst.msk [vmem:[#allocation2 + $0xd9] sm:$0xff] %vm1608_vm1, %v2030_v0  ;;  %v2376_v0 = vmul.f32 %v4801_v33, %v5021_v9  ;;  %v2482_v28 = vmul.f32 %v4827_v11, %v5102_v20  ;;  %v2112_v51 = vmul.f32 %v4756_v1, %v4998_v58  ;;  %v2165_v53 = vmul.f32 %v4761_v32, %v5009_v35 }
 0x138   : > { %v2023_v43 = vsel %vm5005_vm11, %v1949_v19, 0.0  ;;  %v1726_v52 = vpop.f32.mrf.mxu0  ;;  %v2346_v8 = vadd.f32 %v2330_v3, %v2293_v27 }
 0x139   : > { %2074 = vst.msk [vmem:[#allocation2 + $0x81] sm:$0xff] %vm1608_vm1, %v2023_v43  ;;  %v1887_v5 = vpop.f32.mrf.mxu3 }
 0x13a   : > { %v1888_v40 = vadd.f32 %v1887_v5, %v4814_v63  ;;  %v2339_v63 = vadd.f32 %v2323_v36, %v2286_v38  ;;  %v2294_v36 = vadd.f32 %v2278_v59, %v2240_v6  ;;  %v2399_v31 = vadd.f32 %v2383_v48, %v2346_v8  ;;  %v5158_v6 = vld [vmem:[#allocation2 + $0xca] sm:$0xff] }
 0x13b   : > { %v2384_v48 = vmul.f32 %v4801_v33, %v5158_v6 }
 0x13c   : > { %v1913_v57 = vmul.f32 %v4625_v44, %v1888_v40  ;;  %v2392_v34 = vadd.f32 %v2376_v0, %v2339_v63  ;;  %v2217_v63 = vmul.f32 %v4768_v30, %v4996_v47  ;;  %v2271_v47 = vmul.f32 %v4778_v14, %v5076_v21 }
 0x13d   : > { %v1866_v61 = vpop.f32.mrf.mxu1 }
 0x13e   : > { %v1867_v25 = vadd.f32 %v1866_v61, %v1726_v52  ;;  %v1937_v17 = vadd.f32 %v4635_v55, %v1913_v57  ;;  %v2416_v29 = vld [vmem:[#allocation2 + $0xd8] sm:$0xff]  ;;  %v2498_v52 = vadd.f32 %v2482_v28, %v2445_v60  ;;  %v2331_v61 = vmul.f32 %v4796_v50, %v5133_v13 }
 0x13f   : > { %v2437_v41 = vmul.f32 %v4807_v42, %v2416_v29  ;;  %v2469_v35 = vld [vmem:[#allocation2 + $0xd9] sm:$0xff]  ;;  %v2181_v28 = vadd.f32 %v2165_v53, %v2112_v51 }
 0x140   : > { %v1906_v54 = vmul.f32 %v4625_v44, %v1867_v25  ;;  %v1957_v19 = vmax.f32 %v1937_v17, 0.0  ;;  %v5120_v24 = vld [vmem:[#allocation2 + $0x7a] sm:$0xff]  ;;  %v1729_v58 = vpop.f32.mrf.mxu0  ;;  %v2180_v17 = vadd.f32 %v2164_v56, %v2111_v45  ;;  %v5161_v59 = vld [vmem:[#allocation2 + $0x82] sm:$0xff]  ;;  %v2218_v45 = vmul.f32 %v4768_v30, %v5021_v9 }
 0x141   : > { %v5124_v46 = vld [vmem:[#allocation2 + $0x80] sm:$0xff]  ;;  %v2535_v38 = vmul.f32 %v4840_v2, %v5120_v24  ;;  %v2453_v0 = vadd.f32 %v2437_v41, %v2399_v31 }
 0x142   : > { %v1930_v43 = vadd.f32 %v4635_v55, %v1906_v54  ;;  %v2430_v5 = vmul.f32 %v4807_v42, %v5124_v46  ;;  %v2031_v4 = vsel %vm5046_vm14, %v1957_v19, 0.0  ;;  %v5144_v40 = vld [vmem:[#allocation2 + $0x81] sm:$0xff]  ;;  %v2347_v54 = vadd.f32 %v2331_v61, %v2294_v36 }
 0x143   : > { %2082 = vst.msk [vmem:[#allocation2 + $0xe1] sm:$0xff] %vm1608_vm1, %v2031_v4  ;;  %v2551_v49 = vadd.f32 %v2535_v38, %v2498_v52  ;;  %v2483_v3 = vmul.f32 %v4827_v11, %v5144_v40  ;;  %v2490_v19 = vmul.f32 %v4827_v11, %v2469_v35  ;;  %v2272_v51 = vmul.f32 %v4778_v14, %v5124_v46 }
 0x144   : > { %v1950_v27 = vmax.f32 %v1930_v43, 0.0  ;;  %v2446_v15 = vadd.f32 %v2430_v5, %v2392_v34  ;;  %v2233_v34 = vadd.f32 %v2217_v63, %v2180_v17  ;;  %v2536_v43 = vmul.f32 %v4840_v2, %v5161_v59 }
 0x145   : > { %v1869_v57 = vpop.f32.mrf.mxu1  ;;  %3144 = vmatmul.msk.f32.gmra.mxu2 %vm1608_vm1, %v2551_v49  ;;  %v2506_v52 = vadd.f32 %v2490_v19, %v2453_v0  ;;  %v2400_v38 = vadd.f32 %v2384_v48, %v2347_v54  ;;  %v2377_v49 = vmul.f32 %v4801_v33, %v5120_v24  ;;  %v2113_v35 = vmul.f32 %v4756_v1, %v5076_v21 }
 0x146   : > { %v2024_v25 = vsel %vm5139_vm2, %v1950_v27, 0.0  ;;  %v1870_v60 = vadd.f32 %v1869_v57, %v1729_v58  ;;  %v2499_v29 = vadd.f32 %v2483_v3, %v2446_v15  ;;  %v2287_v4 = vadd.f32 %v2271_v47, %v2233_v34 }
 0x147   : > { %2075 = vst.msk [vmem:[#allocation2 + $0x91] sm:$0xff] %vm1608_vm1, %v2024_v25  ;;  %v2234_v58 = vadd.f32 %v2218_v45, %v2181_v28  ;;  %v2166_v3 = vmul.f32 %v4761_v32, %v5102_v20  ;;  %v2325_v17 = vmul.f32 %v4796_v50, %v5144_v40  ;;  %v2219_v47 = vmul.f32 %v4768_v30, %v5120_v24 }
 0x148   : > { %v1907_v8 = vmul.f32 %v4625_v44, %v1870_v60  ;;  %v2552_v53 = vadd.f32 %v2536_v43, %v2499_v29  ;;  %v2114_v21 = vmul.f32 %v4756_v1, %v5124_v46 }
 0x149   : > { %v2288_v63 = vadd.f32 %v2272_v51, %v2234_v58  ;;  %v2182_v48 = vadd.f32 %v2166_v3, %v2113_v35 }
 0x14a   : > { %v1931_v56 = vadd.f32 %v4635_v55, %v1907_v8  ;;  %v2522_v44 = vld [vmem:[#allocation2 + $0xda] sm:$0xff]  ;;  %v2324_v55 = vmul.f32 %v4796_v50, %v5102_v20  ;;  %v2523_v0 = vld [vmem:[#allocation2 + $0xe2] sm:$0xff]  ;;  %v2167_v20 = vmul.f32 %v4761_v32, %v5144_v40 }
 0x14b   : > { %v2417_v5 = vld [vmem:[#allocation2 + $0xe0] sm:$0xff]  ;;  %v2543_v36 = vmul.f32 %v4840_v2, %v2522_v44  ;;  %v2341_v29 = vadd.f32 %v2325_v17, %v2288_v63  ;;  %v2544_v45 = vmul.f32 %v4840_v2, %v2523_v0  ;;  %v2235_v43 = vadd.f32 %v2219_v47, %v2182_v48 }
 0x14c   : > { %v1951_v41 = vmax.f32 %v1931_v56, 0.0  ;;  %v2438_v9 = vmul.f32 %v4807_v42, %v2417_v5  ;;  %v2470_v27 = vld [vmem:[#allocation2 + $0xe1] sm:$0xff]  ;;  %v2340_v25 = vadd.f32 %v2324_v55, %v2287_v4  ;;  %v2378_v56 = vmul.f32 %v4801_v33, %v5161_v59 }
 0x14d   : > { %v2559_v57 = vadd.f32 %v2543_v36, %v2506_v52  ;;  %3145 = vmatmul.msk.f32.gmra.mxu2 %vm1608_vm1, %v2552_v53  ;;  %v2491_v23 = vmul.f32 %v4827_v11, %v2470_v27  ;;  %v2183_v46 = vadd.f32 %v2167_v20, %v2114_v21  ;;  %v2220_v53 = vmul.f32 %v4768_v30, %v5161_v59 }
 0x14e   : > { %v2025_v15 = vsel %vm5139_vm2, %v1951_v41, 0.0  ;;  %v2454_v31 = vadd.f32 %v2438_v9, %v2400_v38  ;;  %v2410_v61 = vld [vmem:[#allocation2 + $0x90] sm:$0xff]  ;;  %v2393_v54 = vadd.f32 %v2377_v49, %v2340_v25  ;;  %v2394_v44 = vadd.f32 %v2378_v56, %v2341_v29 }
 0x14f   : > { %2076 = vst.msk [vmem:[#allocation2 + $0x99] sm:$0xff] %vm1608_vm1, %v2025_v15  ;;  %v2431_v60 = vmul.f32 %v4807_v42, %v2410_v61  ;;  %3152 = vmatmul.msk.f32.vlgmr.msra.gmra.mxu3 %vm1608_vm1, %v2559_v57  ;;  %v2463_v8 = vld [vmem:[#allocation2 + $0x91] sm:$0xff]  ;;  %v2273_v34 = vmul.f32 %v4778_v14, %v2410_v61  ;;  %v2236_v15 = vadd.f32 %v2220_v53, %v2183_v46 }
 0x150   : > { %v2507_v28 = vadd.f32 %v2491_v23, %v2454_v31  ;;  %v2484_v24 = vmul.f32 %v4827_v11, %v2463_v8  ;;  %v2326_v36 = vmul.f32 %v4796_v50, %v2463_v8  ;;  %v2115_v63 = vmul.f32 %v4756_v1, %v2410_v61 }
 0x151   : > { %v2447_v19 = vadd.f32 %v2431_v60, %v2393_v54  ;;  %v2289_v58 = vadd.f32 %v2273_v34, %v2235_v43  ;;  %v2168_v25 = vmul.f32 %v4761_v32, %v2463_v8  ;;  %v2433_v0 = vmul.f32 %v4807_v42, %v5037_v7 }
 0x152   : > { %v2560_v51 = vadd.f32 %v2544_v45, %v2507_v28  ;;  %v2275_v34 = vmul.f32 %v4778_v14, %v5037_v7  ;;  %v2434_v43 = vmul.f32 %v4807_v42, %v5051_v62  ;;  %v2487_v7 = vmul.f32 %v4827_v11, %v5053_v16 }
 0x153   : > { %v2500_v5 = vadd.f32 %v2484_v24, %v2447_v19  ;;  %v2342_v31 = vadd.f32 %v2326_v36, %v2289_v58  ;;  %v2184_v47 = vadd.f32 %v2168_v25, %v2115_v63  ;;  %v2486_v19 = vmul.f32 %v4827_v11, %v5039_v12 }
 0x154   : > { %v2435_v36 = vmul.f32 %v4807_v42, %v5063_v22  ;;  %v2329_v53 = vmul.f32 %v4796_v50, %v5053_v16  ;;  %v2541_v22 = vmul.f32 %v4840_v2, %v5110_v10 }
 0x156   : > { %v2516_v52 = vld [vmem:[#allocation2 + $0x92] sm:$0xff]  ;;  %v2517_v60 = vld [vmem:[#allocation2 + $0x9a] sm:$0xff] }
 0x157   : > { %v2411_v38 = vld [vmem:[#allocation2 + $0x98] sm:$0xff]  ;;  %v2537_v40 = vmul.f32 %v4840_v2, %v2516_v52  ;;  %3153 = vmatmul.msk.f32.gmra.mxu3 %vm1608_vm1, %v2560_v51  ;;  %v2379_v55 = vmul.f32 %v4801_v33, %v2516_v52  ;;  %v2221_v23 = vmul.f32 %v4768_v30, %v2516_v52  ;;  %v2538_v17 = vmul.f32 %v4840_v2, %v2517_v60 }
 0x158   : > { %v2432_v4 = vmul.f32 %v4807_v42, %v2411_v38  ;;  %v2464_v41 = vld [vmem:[#allocation2 + $0x99] sm:$0xff]  ;;  %v2274_v49 = vmul.f32 %v4778_v14, %v2411_v38  ;;  %v2116_v28 = vmul.f32 %v4756_v1, %v2411_v38  ;;  %v2380_v48 = vmul.f32 %v4801_v33, %v2517_v60 }
 0x159   : > { %v2553_v9 = vadd.f32 %v2537_v40, %v2500_v5  ;;  %v2485_v57 = vmul.f32 %v4827_v11, %v2464_v41  ;;  %v2395_v3 = vadd.f32 %v2379_v55, %v2342_v31  ;;  %v2327_v54 = vmul.f32 %v4796_v50, %v2464_v41 }
 0x15a   : > { %v2448_v27 = vadd.f32 %v2432_v4, %v2394_v44  ;;  %v2290_v59 = vadd.f32 %v2274_v49, %v2236_v15  ;;  %v2169_v61 = vmul.f32 %v4761_v32, %v2464_v41  ;;  %v2237_v20 = vadd.f32 %v2221_v23, %v2184_v47 }
 0x15b   : > { %3146 = vmatmul.msk.f32.gmra.mxu2 %vm1608_vm1, %v2553_v9  ;;  %v2449_v8 = vadd.f32 %v2433_v0, %v2395_v3  ;;  %v2539_v32 = vmul.f32 %v4840_v2, %v5044_v18  ;;  %v2328_v51 = vmul.f32 %v4796_v50, %v5039_v12  ;;  %v2222_v52 = vmul.f32 %v4768_v30, %v2517_v60 }
 0x15c   : > { %v2501_v35 = vadd.f32 %v2485_v57, %v2448_v27  ;;  %v2343_v21 = vadd.f32 %v2327_v54, %v2290_v59  ;;  %v2291_v24 = vadd.f32 %v2275_v34, %v2237_v20  ;;  %v2185_v1 = vadd.f32 %v2169_v61, %v2116_v28 }
 0x15d   : > { %v2502_v45 = vadd.f32 %v2486_v19, %v2449_v8  ;;  %v2381_v40 = vmul.f32 %v4801_v33, %v5044_v18  ;;  %v2276_v4 = vmul.f32 %v4778_v14, %v5051_v62  ;;  %v2540_v30 = vmul.f32 %v4840_v2, %v5086_v39 }
 0x15e   : > { %v2554_v29 = vadd.f32 %v2538_v17, %v2501_v35  ;;  %v2396_v56 = vadd.f32 %v2380_v48, %v2343_v21  ;;  %v2344_v46 = vadd.f32 %v2328_v51, %v2291_v24  ;;  %v2238_v5 = vadd.f32 %v2222_v52, %v2185_v1 }
 0x15f   : > { %v2555_v44 = vadd.f32 %v2539_v32, %v2502_v45  ;;  %v2488_v14 = vmul.f32 %v4827_v11, %v5093_v26  ;;  %v2382_v18 = vmul.f32 %v4801_v33, %v5086_v39  ;;  %v2436_v50 = vmul.f32 %v4807_v42, %v5099_v37  ;;  %v5266_v33 = vld [vmem:[%s5359_s10] ss:$0 sm:$0xff] }
 0x160   : > { %v2450_v38 = vadd.f32 %v2434_v43, %v2396_v56  ;;  %v2397_v41 = vadd.f32 %v2381_v40, %v2344_v46  ;;  %v2292_v12 = vadd.f32 %v2276_v4, %v2238_v5  ;;  %v2489_v57 = vmul.f32 %v4827_v11, %v5133_v13  ;;  %v5273_v42 = vld [vmem:[%s5360_s11] ss:$0 sm:$0xff] }
 0x161   : > { %v2542_v39 = vmul.f32 %v4840_v2, %v5158_v6 }
 0x162   : > { %v2503_v58 = vadd.f32 %v2487_v7, %v2450_v38  ;;  %v2451_v27 = vadd.f32 %v2435_v36, %v2397_v41  ;;  %v2345_v55 = vadd.f32 %v2329_v53, %v2292_v12 }
 0x163   : > { %3147 = vmatmul.msk.f32.gmra.mxu2 %vm1608_vm1, %v2554_v29 }
 0x164   : > { %v2556_v9 = vadd.f32 %v2540_v30, %v2503_v58  ;;  %v2504_v62 = vadd.f32 %v2488_v14, %v2451_v27  ;;  %v2398_v49 = vadd.f32 %v2382_v18, %v2345_v55 }
 0x166   : > { %v2557_v16 = vadd.f32 %v2541_v22, %v2504_v62  ;;  %v2452_v15 = vadd.f32 %v2436_v50, %v2398_v49 }
 0x168   : > { %v2505_v26 = vadd.f32 %v2489_v57, %v2452_v15 }
 0x16a   : > { %v2558_v37 = vadd.f32 %v2542_v39, %v2505_v26 }
 0x16b   : > { %3148 = vmatmul.msk.f32.gmra.mxu2 %vm1608_vm1, %v2555_v44 }
 0x173   : > { %3149 = vmatmul.msk.f32.gmra.mxu2 %vm1608_vm1, %v2556_v9 }
 0x17b   : > { %3150 = vmatmul.msk.f32.gmra.mxu2 %vm1608_vm1, %v2557_v16 }
 0x180   : > { %v2630_v10 = vpop.f32.mrf.mxu2 }
 0x181   : > { %v2682_v31 = vmul.f32 %v5266_v33, %v2630_v10 }
 0x183   : > { %3151 = vmatmul.msk.f32.gmra.mxu2 %vm1608_vm1, %v2558_v37  ;;  %v2702_v11 = vadd.f32 %v5273_v42, %v2682_v31 }
 0x185   : > { %v2718_v2 = vmax.f32 %v2702_v11, 0.0 }
 0x187   : > { %2734 = vst.msk [vmem:[%s5282_s30] sm:$0xff] %vm1608_vm1, %v2718_v2 }
 0x188   : > { %v2633_v13 = vpop.f32.mrf.mxu2 }
 0x189   : > { %v2683_v6 = vmul.f32 %v5266_v33, %v2633_v13 }
 0x18b   : > { %v2703_v63 = vadd.f32 %v5273_v42, %v2683_v6 }
 0x18d   : > { %v2719_v25 = vmax.f32 %v2703_v63, 0.0 }
 0x18f   : > { %2735 = vst.msk [vmem:[%s5282_s30 + $0x8] sm:$0xff] %vm1608_vm1, %v2719_v25 }
 0x195   : > { %v2636_v60 = vpop.f32.mrf.mxu2 }
 0x196   : > { %v2684_v35 = vmul.f32 %v5266_v33, %v2636_v60 }
 0x198   : > { %v2704_v3 = vadd.f32 %v5273_v42, %v2684_v35 }
 0x19a   : > { %v2720_v59 = vmax.f32 %v2704_v3, 0.0 }
 0x19c   : > { %2736 = vst.msk [vmem:[%s5282_s30 + $0x10] sm:$0xff] %vm1608_vm1, %v2720_v59 }
 0x19d   : > { %v2639_v23 = vpop.f32.mrf.mxu2 }
 0x19e   : > { %v2685_v17 = vmul.f32 %v5266_v33, %v2639_v23 }
 0x1a0   : > { %v2705_v0 = vadd.f32 %v5273_v42, %v2685_v17 }
 0x1a2   : > { %v2721_v54 = vmax.f32 %v2705_v0, 0.0 }
 0x1a4   : > { %2737 = vst.msk [vmem:[%s5282_s30 + $0x18] sm:$0xff] %vm1608_vm1, %v2721_v54 }
 0x1af   : > { %v2642_v47 = vpop.f32.mrf.mxu2 }
 0x1b0   : > { %v2686_v28 = vmul.f32 %v5266_v33, %v2642_v47 }
 0x1b2   : > { %v2706_v61 = vadd.f32 %v5273_v42, %v2686_v28 }
 0x1b4   : > { %v2722_v29 = vmax.f32 %v2706_v61, 0.0 }
 0x1b6   : > { %2738 = vst.msk [vmem:[%s5282_s30 + $0x20] sm:$0xff] %vm1608_vm1, %v2722_v29 }
 0x1b7   : > { %v2645_v8 = vpop.f32.mrf.mxu2 }
 0x1b8   : > { %v2687_v21 = vmul.f32 %v5266_v33, %v2645_v8 }
 0x1ba   : > { %v2707_v20 = vadd.f32 %v5273_v42, %v2687_v21 }
 0x1bc   : > { %v2723_v19 = vmax.f32 %v2707_v20, 0.0 }
 0x1be   : > { %2739 = vst.msk [vmem:[%s5282_s30 + $0x28] sm:$0xff] %vm1608_vm1, %v2723_v19 }
 0x1c8   : > { %v2648_v48 = vpop.f32.mrf.mxu2 }
 0x1c9   : > { %v2688_v34 = vmul.f32 %v5266_v33, %v2648_v48 }
 0x1cb   : > { %v2708_v45 = vadd.f32 %v5273_v42, %v2688_v34 }
 0x1cd   : > { %v2724_v56 = vmax.f32 %v2708_v45, 0.0 }
 0x1cf   : > { %2740 = vst.msk [vmem:[%s5282_s30 + $0x30] sm:$0xff] %vm1608_vm1, %v2724_v56 }
 0x1d0   : > { %v2651_v24 = vpop.f32.mrf.mxu2 }
 0x1d1   : > { %v2689_v1 = vmul.f32 %v5266_v33, %v2651_v24 }
 0x1d2   : > { %v2672_v32 = vpop.f32.mrf.mxu3 }
 0x1d3   : > { %v2696_v43 = vmul.f32 %v5266_v33, %v2672_v32  ;;  %v2709_v51 = vadd.f32 %v5273_v42, %v2689_v1 }
 0x1d5   : > { %v2716_v52 = vadd.f32 %v5273_v42, %v2696_v43  ;;  %v2725_v44 = vmax.f32 %v2709_v51, 0.0 }
 0x1d7   : > { %v2732_v38 = vmax.f32 %v2716_v52, 0.0  ;;  %2741 = vst.msk [vmem:[%s5282_s30 + $0x38] sm:$0xff] %vm1608_vm1, %v2725_v44 }
 0x1d9   : > { %2748 = vst.msk [vmem:[%s5282_s30 + $0x70] sm:$0xff] %vm1608_vm1, %v2732_v38 }
 0x1da   : > { %v2675_v46 = vpop.f32.mrf.mxu3 }
 0x1db   : > { %v2697_v5 = vmul.f32 %v5266_v33, %v2675_v46 }
 0x1dd   : > { %v2717_v7 = vadd.f32 %v5273_v42, %v2697_v5 }
 0x1de   : > { %v2654_v40 = vpop.f32.mrf.mxu2 }
 0x1df   : > { %v2690_v4 = vmul.f32 %v5266_v33, %v2654_v40  ;;  %v2733_v58 = vmax.f32 %v2717_v7, 0.0 }
 0x1e1   : > { %v2710_v41 = vadd.f32 %v5273_v42, %v2690_v4  ;;  %2749 = vst.msk [vmem:[%s5282_s30 + $0x78] sm:$0xff] %vm1608_vm1, %v2733_v58 }
 0x1e3   : > { %v2726_v12 = vmax.f32 %v2710_v41, 0.0 }
 0x1e5   : > { %2742 = vst.msk [vmem:[%s5282_s30 + $0x40] sm:$0xff] %vm1608_vm1, %v2726_v12 }
 0x1e6   : > { %v2657_v30 = vpop.f32.mrf.mxu2 }
 0x1e7   : > { %v2691_v36 = vmul.f32 %v5266_v33, %v2657_v30 }
 0x1e9   : > { %v2711_v53 = vadd.f32 %v5273_v42, %v2691_v36 }
 0x1eb   : > { %v2727_v9 = vmax.f32 %v2711_v53, 0.0 }
 0x1ed   : > { %2743 = vst.msk [vmem:[%s5282_s30 + $0x48] sm:$0xff] %vm1608_vm1, %v2727_v9 }
 0x1ee   : > { %v2660_v27 = vpop.f32.mrf.mxu2 }
 0x1ef   : > { %v2692_v55 = vmul.f32 %v5266_v33, %v2660_v27 }
 0x1f1   : > { %v2712_v14 = vadd.f32 %v5273_v42, %v2692_v55 }
 0x1f3   : > { %v2728_v18 = vmax.f32 %v2712_v14, 0.0 }
 0x1f5   : > { %2744 = vst.msk [vmem:[%s5282_s30 + $0x50] sm:$0xff] %vm1608_vm1, %v2728_v18 }
 0x1f6   : > { %v2663_v62 = vpop.f32.mrf.mxu2 }
 0x1f7   : > { %v2693_v49 = vmul.f32 %v5266_v33, %v2663_v62 }
 0x1f9   : > { %v2713_v22 = vadd.f32 %v5273_v42, %v2693_v49 }
 0x1fb   : > { %v2729_v50 = vmax.f32 %v2713_v22, 0.0 }
 0x1fd   : > { %2745 = vst.msk [vmem:[%s5282_s30 + $0x58] sm:$0xff] %vm1608_vm1, %v2729_v50 }
 0x1fe   : > { %v2666_v16 = vpop.f32.mrf.mxu2 }
 0x1ff   : > { %v2694_v15 = vmul.f32 %v5266_v33, %v2666_v16 }
 0x201   : > { %v2714_v57 = vadd.f32 %v5273_v42, %v2694_v15 }
 0x203   : > { %v2730_v26 = vmax.f32 %v2714_v57, 0.0 }
 0x205   : > { %2746 = vst.msk [vmem:[%s5282_s30 + $0x60] sm:$0xff] %vm1608_vm1, %v2730_v26 }
 0x206   : > { %v2669_v39 = vpop.f32.mrf.mxu2 }
 0x207   : > { %v2695_v37 = vmul.f32 %v5266_v33, %v2669_v39 }
 0x209   : > { %v2715_v10 = vadd.f32 %v5273_v42, %v2695_v37 }
 0x20b   : > { %v2731_v31 = vmax.f32 %v2715_v10, 0.0 }
 0x20d   : > { %2747 = vst.msk [vmem:[%s5282_s30 + $0x68] sm:$0xff] %vm1608_vm1, %v2731_v31 }
 0x20e PF: > { %s22_s21 = sadd.s32 1, %s3225_s21  }
 0x20f   : > { %p19_p6 = scmp.ge.s32.totalorder %s22_s21, 6  }
 0x211   :  { %21 = sbr.rel (!%p19_p6) target bundleno = 1 (0x1), region = 131 }

</bundles_post_ra>
